<compile_context>
chip_gen: v7x
topology: tpu7x:2x2x1
jax: 0.10.0
libtpu: 0.0.40
codegen_flags: <defaults>
</compile_context>

<pallas_src>
import functools

import jax
import jax.numpy as jnp
from jax.experimental import pallas as pl
from jax.experimental.pallas import tpu as pltpu


def _round_up(v, m):
    return ((v + m - 1) // m) * m


def _pad_to(a, shape):
    pads = [(0, s - d) for d, s in zip(a.shape, shape)]
    if all(p == (0, 0) for p in pads):
        return a
    return jnp.pad(a, pads)


def luong_attention_kernel(h_ref, x_ref, ctx_ref,
                           w_h_ref, b_in_ref,
                           w_out_c_ref, w_out_x_ref, b_out_ref,
                           out_ref, wts_ref, *, t_valid):
    h   = h_ref[...]            # (Bt, H)
    xx  = x_ref[...]            # (Bt, E)
    ctx = ctx_ref[...]          # (Bt, Tp, H)
    H = h.shape[-1]
    Hp = out_ref.shape[-1]

    # Fused h matmul: one MXU dot covers linear_in(h) and the h-part of
    # linear_out.  w_h_ref = [W_in (cols padded to Hp) | W_out_h (cols padded)].
    hw = jnp.dot(h, w_h_ref[...], preferred_element_type=jnp.float32)   # (Bt, 2*Hp)
    gamma = hw[:, :H] + b_in_ref[...]          # (Bt, H)   = linear_in(h)
    out_h = hw[:, Hp:]                         # (Bt, Hp)  = h @ W_out_h (pad cols are 0)

    # scores = bmm(context, gamma_h.unsqueeze(2)).squeeze(2): VPU mul + lane reduce.
    scores = jnp.sum(ctx * gamma[:, None, :], axis=-1)        # (Bt, Tp)
    t_idx = jax.lax.broadcasted_iota(jnp.int32, scores.shape, 1)
    scores = jnp.where(t_idx < t_valid, scores, -1e30)         # mask padded T lanes

    # softmax over T — exact divide so the returned weights match torch.softmax.
    m = jnp.max(scores, axis=-1, keepdims=True)
    e = jnp.exp(scores - m)
    w = e / jnp.sum(e, axis=-1, keepdims=True)
    wts_ref[...] = w.astype(wts_ref.dtype)

    # c_t = bmm(weights.unsqueeze(1), context).squeeze(1): VPU mul + sublane reduce.
    # TODO(synk): if the XLU slot binds at production T, switch this reduction
    # to a batched lax.dot_general so the T-sum runs on the (idle) MXU.
    c_t = jnp.sum(w[:, :, None] * ctx, axis=1)                 # (Bt, H)

    # output = tanh(linear_out(cat([c_t, h, x], 1))): split-weight sum, no concat.
    out = jnp.tanh(
        jnp.dot(c_t, w_out_c_ref[...], preferred_element_type=jnp.float32)
        + out_h
        + jnp.dot(xx, w_out_x_ref[...], preferred_element_type=jnp.float32)
        + b_out_ref[...])
    out_ref[...] = out.astype(out_ref.dtype)


def luong_attention(h, x, context, w_in, b_in, w_out, b_out,
                    *, ctx_tile_budget_bytes=8 * 1024 * 1024,
                    bt_cap=512,
                    vmem_limit_bytes=48 * 1024 * 1024):
    """
    h:       (B, H)
    x:       (B, E)
    context: (B, T, H)   (already transposed, as after init_context)
    w_in:    (H, H)      pre-transposed (in, out)
    b_in:    (1, H)
    w_out:   (2H+E, H)   pre-transposed (in, out)
    b_out:   (1, H)
    returns: output (B, H), weights (B, T)
    """
    B, H = h.shape
    _, E = x.shape
    _, T, _ = context.shape
    assert w_out.shape[0] == 2 * H + E

    Hp = _round_up(H, 128)     # lane-dense output columns
    Tp = _round_up(T, 128)     # lane-dense attention-weight lanes

    # ---- batch tile: as large as the (double-buffered) context VMEM budget
    # allows, capped at bt_cap rows; keep >=2 grid steps when possible so both
    # v7x TensorCores get work. B is padded to a multiple of Bt. ----
    itemsize = jnp.dtype(context.dtype).itemsize
    row_bytes = Tp * H * itemsize
    Bt = max(8, min(bt_cap, ctx_tile_budget_bytes // max(row_bytes, 1)))
    Bt = (Bt // 8) * 8
    B8 = _round_up(B, 8)
    Bt = min(Bt, B8)
    if Bt >= B8 and B8 >= 16:
        Bt = _round_up(B8 // 2, 8)
    Bp = _round_up(B, Bt)
    grid = (Bp // Bt,)

    # ---- wrapper-side padding (zeros) ----
    h_p   = _pad_to(h, (Bp, H))
    x_p   = _pad_to(x, (Bp, E))
    ctx_p = _pad_to(context, (Bp, Tp, H))

    # Pre-split / pre-fuse the linear_out weight (static slices, done once here).
    w_out_c = _pad_to(w_out[:H], (H, Hp))
    w_out_h = _pad_to(w_out[H:2 * H], (H, Hp))
    w_out_x = _pad_to(w_out[2 * H:], (E, Hp))
    b_out_p = _pad_to(b_out, (1, Hp))
    w_h_fused = jnp.concatenate([_pad_to(w_in, (H, Hp)), w_out_h], axis=1)  # (H, 2*Hp)

    def batch_spec(shape):
        return pl.BlockSpec(shape, lambda i: (i,) + (0,) * (len(shape) - 1))

    def const_spec(shape):
        idx = lambda i, _n=len(shape): (0,) * _n
        try:
            # single-buffer the resident weights/biases
            return pl.BlockSpec(shape, idx, pipeline_mode=pl.Buffered(1))
        except TypeError:
            return pl.BlockSpec(shape, idx)

    out_shapes = (
        jax.ShapeDtypeStruct((Bp, Hp), jnp.float32),
        jax.ShapeDtypeStruct((Bp, Tp), jnp.float32),
    )

    out_p, wts_p = pl.pallas_call(
        functools.partial(luong_attention_kernel, t_valid=T),
        out_shape=out_shapes,
        grid_spec=pl.GridSpec(
            grid=grid,
            in_specs=[
                batch_spec((Bt, H)),         # h
                batch_spec((Bt, E)),         # x
                batch_spec((Bt, Tp, H)),     # context (the only HBM-heavy stream)
                const_spec((H, 2 * Hp)),     # [W_in | W_out_h]  (resident)
                const_spec((1, H)),          # b_in              (resident)
                const_spec((H, Hp)),         # W_out_c           (resident)
                const_spec((E, Hp)),         # W_out_x           (resident)
                const_spec((1, Hp)),         # b_out             (resident)
            ],
            out_specs=[
                batch_spec((Bt, Hp)),        # output (lane-dense, padded cols = 0)
                batch_spec((Bt, Tp)),        # weights (lane-dense, padded lanes = 0)
            ],
        ),
        compiler_params=pltpu.CompilerParams(
            dimension_semantics=("parallel",),
            vmem_limit_bytes=vmem_limit_bytes),
    )(h_p, x_p, ctx_p, w_h_fused, b_in, w_out_c, w_out_x, b_out_p)

    return out_p[:B, :H], wts_p[:B, :T]


def reference(h, x, context, w_in, b_in, w_out, b_out):
    gamma = h @ w_in + b_in                                   # (B, H)
    scores = jnp.einsum('bth,bh->bt', context, gamma)         # (B, T)
    w = jax.nn.softmax(scores, axis=1)
    c_t = jnp.einsum('bt,bth->bh', w, context)                # (B, H)
    cat = jnp.concatenate([c_t, h, x], axis=1)
    out = jnp.tanh(cat @ w_out + b_out)
    return out, w


if __name__ == "__main__":
    B, T, H, E = 16, 16, 32, 16   # batch, src length, hidden_size, emb_size

    key = jax.random.PRNGKey(0)
    k1, k2, k3, k4, k5, k6, k7 = jax.random.split(key, 7)

    h = jax.random.normal(k1, (B, H), jnp.float32)
    x = jax.random.normal(k2, (B, E), jnp.float32)
    # context handed to init_context is (T, B, H); it is stored transposed.
    context_tbh = jax.random.normal(k3, (T, B, H), jnp.float32)
    context = jnp.transpose(context_tbh, (1, 0, 2))           # (B, T, H)

    # PyTorch nn.Linear params (W: (out, in), b: (out,)) stored pre-transposed to (in, out).
    scale_in = 1.0 / jnp.sqrt(jnp.float32(H))
    w_in = jax.random.uniform(k4, (H, H), jnp.float32, -scale_in, scale_in)
    b_in = jax.random.uniform(k5, (1, H), jnp.float32, -scale_in, scale_in)

    scale_out = 1.0 / jnp.sqrt(jnp.float32(2 * H + E))
    w_out = jax.random.uniform(k6, (2 * H + E, H), jnp.float32, -scale_out, scale_out)
    b_out = jax.random.uniform(k7, (1, H), jnp.float32, -scale_out, scale_out)

    out, wts = luong_attention(h, x, context, w_in, b_in, w_out, b_out)
    jax.block_until_ready((out, wts))

    ref_out, ref_wts = reference(h, x, context, w_in, b_in, w_out, b_out)
    # softmax is exact in-kernel now; 1e-4 is comfortably loose for f32 reordering.
    assert jnp.allclose(out, ref_out, atol=1e-4, rtol=1e-4), "output mismatch"
    assert jnp.allclose(wts, ref_wts, atol=1e-4, rtol=1e-4), "weights mismatch"

    print("KERNEL_OK")
</pallas_src>

<mosaic_0001>
module attributes {stable_mosaic.version = 11 : i64} {
  func.func @luong_attention_kernel(%arg0: i32, %arg1: memref<8x32xf32, #tpu.memory_space<vmem>>, %arg2: memref<8x16xf32, #tpu.memory_space<vmem>>, %arg3: memref<8x128x32xf32, #tpu.memory_space<vmem>>, %arg4: memref<32x256xf32, #tpu.memory_space<vmem>>, %arg5: memref<1x32xf32, #tpu.memory_space<vmem>>, %arg6: memref<32x128xf32, #tpu.memory_space<vmem>>, %arg7: memref<16x128xf32, #tpu.memory_space<vmem>>, %arg8: memref<1x128xf32, #tpu.memory_space<vmem>>, %arg9: memref<8x128xf32, #tpu.memory_space<vmem>>, %arg10: memref<8x128xf32, #tpu.memory_space<vmem>>) attributes {dimension_semantics = [#tpu.dimension_semantics<parallel>], iteration_bounds = array<i64: 2>, scalar_prefetch = 0 : i64, scratch_operands = 0 : i64, tpu.core_type = #tpu.core_type<tc>, window_params = [{transform_indices = @transform_0, window_bounds = array<i64: 8, 32>}, {transform_indices = @transform_1, window_bounds = array<i64: 8, 16>}, {transform_indices = @transform_2, window_bounds = array<i64: 8, 128, 32>}, {pipeline_mode = #tpu.pipeline_mode<synchronous>, transform_indices = @transform_3, window_bounds = array<i64: 32, 256>}, {pipeline_mode = #tpu.pipeline_mode<synchronous>, transform_indices = @transform_4, window_bounds = array<i64: 1, 32>}, {pipeline_mode = #tpu.pipeline_mode<synchronous>, transform_indices = @transform_5, window_bounds = array<i64: 32, 128>}, {pipeline_mode = #tpu.pipeline_mode<synchronous>, transform_indices = @transform_6, window_bounds = array<i64: 16, 128>}, {pipeline_mode = #tpu.pipeline_mode<synchronous>, transform_indices = @transform_7, window_bounds = array<i64: 1, 128>}, {transform_indices = @transform_8, window_bounds = array<i64: 8, 128>}, {transform_indices = @transform_9, window_bounds = array<i64: 8, 128>}]} {
    %c0 = arith.constant 0 : index
    %c0_0 = arith.constant 0 : index
    %0 = vector.load %arg1[%c0, %c0_0] : memref<8x32xf32, #tpu.memory_space<vmem>>, vector<8x32xf32>
    %c0_1 = arith.constant 0 : index
    %c0_2 = arith.constant 0 : index
    %1 = vector.load %arg2[%c0_1, %c0_2] : memref<8x16xf32, #tpu.memory_space<vmem>>, vector<8x16xf32>
    %c0_3 = arith.constant 0 : index
    %c0_4 = arith.constant 0 : index
    %c0_5 = arith.constant 0 : index
    %2 = vector.load %arg3[%c0_3, %c0_4, %c0_5] : memref<8x128x32xf32, #tpu.memory_space<vmem>>, vector<8x128x32xf32>
    %c0_6 = arith.constant 0 : index
    %c0_7 = arith.constant 0 : index
    %3 = vector.load %arg4[%c0_6, %c0_7] : memref<32x256xf32, #tpu.memory_space<vmem>>, vector<32x256xf32>
    %cst = arith.constant dense<0.000000e+00> : vector<8x256xf32>
    %4 = tpu.matmul %0, %3, %cst {dimension_numbers = #tpu.dot_dimension_numbers<[1], [0], [0], [1], [0, 0, 1, 1], [], []>} : vector<8x32xf32>, vector<32x256xf32>, vector<8x256xf32> -> vector<8x256xf32>
    %5 = vector.extract_strided_slice %4 {offsets = [0, 0], sizes = [8, 32], strides = [1, 1]} : vector<8x256xf32> to vector<8x32xf32>
    %c0_8 = arith.constant 0 : index
    %c0_9 = arith.constant 0 : index
    %6 = vector.load %arg5[%c0_8, %c0_9] : memref<1x32xf32, #tpu.memory_space<vmem>>, vector<1x32xf32>
    %7 = vector.broadcast %6 : vector<1x32xf32> to vector<8x32xf32>
    %8 = arith.addf %5, %7 : vector<8x32xf32>
    %9 = vector.extract_strided_slice %4 {offsets = [0, 128], sizes = [8, 128], strides = [1, 1]} : vector<8x256xf32> to vector<8x128xf32>
    %10 = vector.shape_cast %8 : vector<8x32xf32> to vector<8x1x32xf32>
    %11 = vector.broadcast %10 : vector<8x1x32xf32> to vector<8x128x32xf32>
    %12 = arith.mulf %2, %11 : vector<8x128x32xf32>
    %cst_10 = arith.constant dense<0.000000e+00> : vector<8x128xf32>
    %13 = vector.multi_reduction <add>, %12, %cst_10 [2] : vector<8x128x32xf32> to vector<8x128xf32>
    %14 = tpu.iota {dimensions = array<i32: 1>} : vector<8x128xi32>
    %c16_i32 = arith.constant 16 : i32
    %15 = vector.broadcast %c16_i32 : i32 to vector<8x128xi32>
    %16 = arith.cmpi slt, %14, %15 : vector<8x128xi32>
    %cst_11 = arith.constant -1.000000e+30 : f32
    %17 = vector.broadcast %cst_11 : f32 to vector<8x128xf32>
    %18 = arith.select %16, %13, %17 : vector<8x128xi1>, vector<8x128xf32>
    %cst_12 = arith.constant dense<0xFF800000> : vector<8xf32>
    %19 = vector.multi_reduction <maximumf>, %18, %cst_12 [1] : vector<8x128xf32> to vector<8xf32>
    %20 = vector.shape_cast %19 : vector<8xf32> to vector<8x1xf32>
    %21 = vector.broadcast %20 : vector<8x1xf32> to vector<8x128xf32>
    %22 = arith.subf %18, %21 : vector<8x128xf32>
    %23 = math.exp %22 : vector<8x128xf32>
    %cst_13 = arith.constant dense<0.000000e+00> : vector<8xf32>
    %24 = vector.multi_reduction <add>, %23, %cst_13 [1] : vector<8x128xf32> to vector<8xf32>
    %25 = vector.shape_cast %24 : vector<8xf32> to vector<8x1xf32>
    %26 = vector.broadcast %25 : vector<8x1xf32> to vector<8x128xf32>
    %27 = arith.divf %23, %26 : vector<8x128xf32>
    %c0_14 = arith.constant 0 : index
    %c0_15 = arith.constant 0 : index
    %28 = vector.load %arg10[%c0_14, %c0_15] : memref<8x128xf32, #tpu.memory_space<vmem>>, vector<8x128xf32>
    tpu.vector_store %arg10[%c0_14, %c0_15], %27 {strides = array<i32>} : memref<8x128xf32, #tpu.memory_space<vmem>>, vector<8x128xf32>,
    %29 = vector.shape_cast %27 : vector<8x128xf32> to vector<8x128x1xf32>
    %30 = vector.broadcast %29 : vector<8x128x1xf32> to vector<8x128x32xf32>
    %31 = arith.mulf %30, %2 : vector<8x128x32xf32>
    %cst_16 = arith.constant dense<0.000000e+00> : vector<8x32xf32>
    %32 = vector.multi_reduction <add>, %31, %cst_16 [1] : vector<8x128x32xf32> to vector<8x32xf32>
    %c0_17 = arith.constant 0 : index
    %c0_18 = arith.constant 0 : index
    %33 = vector.load %arg6[%c0_17, %c0_18] : memref<32x128xf32, #tpu.memory_space<vmem>>, vector<32x128xf32>
    %cst_19 = arith.constant dense<0.000000e+00> : vector<8x128xf32>
    %34 = tpu.matmul %32, %33, %cst_19 {dimension_numbers = #tpu.dot_dimension_numbers<[1], [0], [0], [1], [0, 0, 1, 1], [], []>} : vector<8x32xf32>, vector<32x128xf32>, vector<8x128xf32> -> vector<8x128xf32>
    %35 = arith.addf %34, %9 : vector<8x128xf32>
    %c0_20 = arith.constant 0 : index
    %c0_21 = arith.constant 0 : index
    %36 = vector.load %arg7[%c0_20, %c0_21] : memref<16x128xf32, #tpu.memory_space<vmem>>, vector<16x128xf32>
    %cst_22 = arith.constant dense<0.000000e+00> : vector<8x128xf32>
    %37 = tpu.matmul %1, %36, %cst_22 {dimension_numbers = #tpu.dot_dimension_numbers<[1], [0], [0], [1], [0, 0, 1, 1], [], []>} : vector<8x16xf32>, vector<16x128xf32>, vector<8x128xf32> -> vector<8x128xf32>
    %38 = arith.addf %35, %37 : vector<8x128xf32>
    %c0_23 = arith.constant 0 : index
    %c0_24 = arith.constant 0 : index
    %39 = vector.load %arg8[%c0_23, %c0_24] : memref<1x128xf32, #tpu.memory_space<vmem>>, vector<1x128xf32>
    %40 = vector.broadcast %39 : vector<1x128xf32> to vector<8x128xf32>
    %41 = arith.addf %38, %40 : vector<8x128xf32>
    %42 = math.tanh %41 : vector<8x128xf32>
    %c0_25 = arith.constant 0 : index
    %c0_26 = arith.constant 0 : index
    %43 = vector.load %arg9[%c0_25, %c0_26] : memref<8x128xf32, #tpu.memory_space<vmem>>, vector<8x128xf32>
    tpu.vector_store %arg9[%c0_25, %c0_26], %42 {strides = array<i32>} : memref<8x128xf32, #tpu.memory_space<vmem>>, vector<8x128xf32>,
    return
  }
  func.func @transform_0(%arg0: i32) -> (i32, i32) {
    %c0_i32 = arith.constant 0 : i32
    %c0_i32_0 = arith.constant 0 : i32
    return %arg0, %c0_i32 : i32, i32
  }
  func.func @transform_1(%arg0: i32) -> (i32, i32) {
    %c0_i32 = arith.constant 0 : i32
    %c0_i32_0 = arith.constant 0 : i32
    return %arg0, %c0_i32 : i32, i32
  }
  func.func @transform_2(%arg0: i32) -> (i32, i32, i32) {
    %c0_i32 = arith.constant 0 : i32
    %c0_i32_0 = arith.constant 0 : i32
    %c0_i32_1 = arith.constant 0 : i32
    return %arg0, %c0_i32, %c0_i32_0 : i32, i32, i32
  }
  func.func @transform_3(%arg0: i32) -> (i32, i32) {
    %c0_i32 = arith.constant 0 : i32
    %c0_i32_0 = arith.constant 0 : i32
    %c0_i32_1 = arith.constant 0 : i32
    return %c0_i32, %c0_i32_0 : i32, i32
  }
  func.func @transform_4(%arg0: i32) -> (i32, i32) {
    %c0_i32 = arith.constant 0 : i32
    %c0_i32_0 = arith.constant 0 : i32
    %c0_i32_1 = arith.constant 0 : i32
    return %c0_i32, %c0_i32_0 : i32, i32
  }
  func.func @transform_5(%arg0: i32) -> (i32, i32) {
    %c0_i32 = arith.constant 0 : i32
    %c0_i32_0 = arith.constant 0 : i32
    %c0_i32_1 = arith.constant 0 : i32
    return %c0_i32, %c0_i32_0 : i32, i32
  }
  func.func @transform_6(%arg0: i32) -> (i32, i32) {
    %c0_i32 = arith.constant 0 : i32
    %c0_i32_0 = arith.constant 0 : i32
    %c0_i32_1 = arith.constant 0 : i32
    return %c0_i32, %c0_i32_0 : i32, i32
  }
  func.func @transform_7(%arg0: i32) -> (i32, i32) {
    %c0_i32 = arith.constant 0 : i32
    %c0_i32_0 = arith.constant 0 : i32
    %c0_i32_1 = arith.constant 0 : i32
    return %c0_i32, %c0_i32_0 : i32, i32
  }
  func.func @transform_8(%arg0: i32) -> (i32, i32) {
    %c0_i32 = arith.constant 0 : i32
    %c0_i32_0 = arith.constant 0 : i32
    return %arg0, %c0_i32 : i32, i32
  }
  func.func @transform_9(%arg0: i32) -> (i32, i32) {
    %c0_i32 = arith.constant 0 : i32
    %c0_i32_0 = arith.constant 0 : i32
    return %arg0, %c0_i32 : i32, i32
  }
}

</mosaic_0001>

<bundles_post_ra>
// kernel: tpu_custom_call.1
= control target key start
LH: loop header
LB: loop body
LE: loop exit
PB: predicated region body
PF: predicated region fallthrough
CT: control target
= control target key end

     0   :  { %s5517_s0 = inlined_call_operand.vmem [shape: f32[16,32], index: 0, kind: input, shape index: {}]   ;;  %s5518_s1 = inlined_call_operand.vmem [shape: f32[16,16], index: 1, kind: input, shape index: {}]   ;;  %s5519_s2 = inlined_call_operand.vmem [shape: f32[16,128,32], index: 2, kind: input, shape index: {}]   ;;  %s5520_s3 = inlined_call_operand.vmem [shape: f32[32,256], index: 3, kind: input, shape index: {}]   ;;  %s5521_s4 = inlined_call_operand.vmem [shape: f32[1,32], index: 4, kind: input, shape index: {}]   ;;  %s5522_s5 = inlined_call_operand.vmem [shape: f32[32,128], index: 5, kind: input, shape index: {}]   ;;  %s5523_s6 = inlined_call_operand.vmem [shape: f32[16,128], index: 6, kind: input, shape index: {}]   ;;  %s5524_s7 = inlined_call_operand.vmem [shape: f32[1,128], index: 7, kind: input, shape index: {}]   ;;  %s5525_s8 = inlined_call_operand.hbm [shape: f32[16,128], index: 8, kind: output, shape index: {0}]   ;;  %s5526_s9 = inlined_call_operand.hbm [shape: f32[16,128], index: 9, kind: output, shape index: {1}]  }
   0x1   :  { %5539 = sst [smem:[#allocation19_spill]] %s5517_s0 }
   0x2   :  { %5540 = sst [smem:[#allocation20_spill]] %s5519_s2 }
   0x3   :  { %15 = vsyncpa [#allocation3], 0 }
   0x4   :  { %17 = vsyncpa [#allocation3 + $0x1], 0 }
   0x5   :  { %18 = vsyncpa [#allocation5], 0 }
   0x6   :  { %20 = vsyncpa [#allocation5 + $0x1], 0  ;;  %s3708_s30 = smov 0   ;;  %s3710_s10 = smov 0  }
   0x7   :  { %s3712_s11 = smov 0   ;;  %s3714_s12 = smov 0  }
   0x8 LB: > { %s3729_s13 = sadd.s32 4294967295, %s3650_s12   ;;  %s3308_s14 = sadd.s32 4294967294, %s3650_s12   ;;  %s3650_s12 = sphi %s3714_s12, %s5699_s12   ;;  %s3646_s11 = sphi %s3712_s11, %s5698_s11   ;;  %s3642_s10 = sphi %s3710_s10, %s5697_s10   ;;  %s3638_s30 = sphi %s3708_s30, %s5696_s30  }
   0x9   : > { %s3733_s15 = sadd.s32 1, %s3650_s12   ;;  %s216_s16 = sadd.s32 1, %s3646_s11 }
   0xa   : > { %s213_s17 = ssub.s32 %s3650_s12, %s3733_s15  ;;  %p226_p0 = scmp.ne.s32.totalorder %s3646_s11, %s3642_s10 }
   0xb   : > { %p214_p1 = scmp.eq.s32.totalorder %s213_s17, 0  ;;  %p227_p2 = scmp.eq.s32.totalorder %s3729_s13, 1 }
   0xc   : > { %p232_p3 = scmp.ne.s32.totalorder %s3642_s10, %s3638_s30  ;;  %p233_p4 = scmp.eq.s32.totalorder %s3308_s14, 1 }
   0xd   : > { %s3744_s18 = scalar_select %p214_p1, %s3646_s11, %s216_s16  }
   0xe   : > { %p3746_p5 = por %p227_p2, %p226_p0  ;;  %p3750_p6 = por %p233_p4, %p232_p3 }
   0xf   : > { %p3311_p7 = scmp.ge.s32.totalorder %s3650_s12, 1  ;;  %p316_p8 = scmp.lt.s32.totalorder %s3650_s12, 3 }
  0x11   : > { %p317_p9 = pnand %p3311_p7, %p316_p8 }
  0x13   : > { %320 = sbr.rel (%p317_p9) target bundleno = 1606 (0x646), region = 52 }
  0x1a   : > { %v512_v0 = vld [vmem:[%s5520_s3 + $0x8] sm:$0xff]  ;;  %v514_v1 = vld [vmem:[%s5520_s3 + $0x18] sm:$0xff]  ;;  %v511_v2 = vld [vmem:[%s5520_s3] sm:$0xff]  ;;  %p366_p10 = scmp.lt.s32.totalorder %s3729_s13, 1  ;;  %v5529_v7 = vmov 0.0   ;;  %s5543_s0 = sld [smem:[#allocation19_spill]]  ;;  %v607_v16 = vlaneseq }
  0x1b   : > { %v3357_v3 = vpack.c.bf16 %v514_v1, %v512_v0  ;;  %v513_v4 = vld [vmem:[%s5520_s3 + $0x10] sm:$0xff]  ;;  %v516_v5 = vld [vmem:[%s5520_s3 + $0x28] sm:$0xff]  ;;  %v518_v6 = vld [vmem:[%s5520_s3 + $0x38] sm:$0xff]  ;;  %587 = vmatprep.mubr.f32.mxu0 %v5529_v7  ;;  %vm5536_vm0 = vcmask 261120   ;;  %s3316_s14 = sshll.u32 %s3729_s13, 3  ;;  %s5547_s2 = sld [smem:[#allocation20_spill]] }
  0x1c   : > { %v3359_v8 = vpack.c.bf16 %v513_v4, %v511_v2  ;;  %v3361_v9 = vpack.c.bf16 %v518_v6, %v516_v5  ;;  %v515_v10 = vld [vmem:[%s5520_s3 + $0x20] sm:$0xff]  ;;  %v517_v11 = vld [vmem:[%s5520_s3 + $0x30] sm:$0xff]  ;;  %s3783_s25 = scalar_select %p366_p10, %s3729_s13, 1  ;;  %v3653_v14 = vmov 1966171168   ;;  %v3794_v18 = vshrl.u32 %v607_v16, 7 }
  0x1d   : > { %3358 = vmatprep.subr.bf16.mxu0 %v3357_v3  ;;  %v3363_v12 = vpack.c.bf16 %v517_v11, %v515_v10  ;;  %v605_v15 = vunpack.c.l.s4 %v3653_v14  ;;  %p375_p11 = scmp.lt.s32.totalorder %s3316_s14, 15  ;;  %v3320_v19 = vld [vmem:[%s5521_s4] ss:$0 sm:$0xff]  ;;  %vm1344_vm1 = vcmask 130112   ;;  %vm1351_vm2 = vcmask 195712   ;;  %s4807_s27 = sand.u32 1, %s3642_s10  }
  0x1e   : > { %3360 = vmatpush1.bf16.msra.mxu0 %v3359_v8  ;;  %s3314_s26 = sshll.u32 %s3783_s25, 3  ;;  %5544 = vst [vmem:[#allocation8_spill] sm:$0xff] %v3794_v18  ;;  %v3806_v26 = vsub.s32 0, %v3794_v18  ;;  %vm1358_vm3 = vcmask 261312   ;;  %vm1365_vm4 = vcmask 326912   ;;  %vm1372_vm5 = vcmask 392512  }
  0x1f   : > { %3362 = vmatprep.subr.bf16.mxu0 %v3361_v9  ;;  %v606_v17 = vunpack.c.0.s8 %v605_v15  ;;  %s5701_s14 = smov (!%p375_p11, %s3316_s14), 15  ;;  %vm5527_vm6 = vcmask 458112   ;;  %vm1386_vm7 = vcmask 523712   ;;  %vm1393_vm8 = vcmask 589312   ;;  %s5538_s28 = sshll.u32 %s4807_s27, 3 }
  0x20   : > { %s369_s29 = scalar_lea.vmem %s5543_s0, %s3314_s26  ;;  %s3330_s21 = sshll.u32 %s5701_s14, 7  ;;  %5546 = vst [vmem:[#allocation10_spill] sm:$0xff] %v3806_v26  ;;  %vm1400_vm9 = vcmask 654912   ;;  %vm1407_vm10 = vcmask 720512   ;;  %vm1414_vm11 = vcmask 786112   ;;  %vm1421_vm12 = vcmask 851712  }
  0x21   : > { %v381_v13 = vld [vmem:[%s369_s29] sm:$0xff]  ;;  %v3800_v20 = vsub.s32 %v606_v17, %v3794_v18  ;;  %s3811_s24 = scalar_lea.vmem %s5547_s2, %s3330_s21  ;;  %vm1428_vm13 = vcmask 917312   ;;  %vm1435_vm14 = vcmask 982912   ;;  %vm1442_vm15 = vcmask 1048512   ;;  %s4817_s29 = scalar_lea.vmem [#allocation4], %s5538_s28 }
  0x22   : > { %3364 = vmatpush1.bf16.msra.mxu0 %v3363_v12  ;;  %v387_v30 = vld [vmem:[%s3811_s24 + $0x20] sm:$0xff]  ;;  %v388_v34 = vld [vmem:[%s3811_s24 + $0x28] sm:$0xff]  ;;  %v385_v43 = vld [vmem:[%s3811_s24 + $0x10] sm:$0xff]  ;;  %s373_s2 = scalar_lea.vmem %s5518_s1, %s3314_s26  ;;  %s3326_s0 = sshll.u32 %s3729_s13, 7 }
  0x23   : > { %v383_v31 = vld [vmem:[%s3811_s24] sm:$0xff]  ;;  %v384_v35 = vld [vmem:[%s3811_s24 + $0x8] sm:$0xff]  ;;  %v386_v49 = vld [vmem:[%s3811_s24 + $0x18] sm:$0xff]  ;;  %s5442_s26 = scalar_lea.hbm %s5526_s9, %s3326_s0  ;;  %s3167_s28 = scalar_lea.sflag [#allocation5], %s4807_s27 }
  0x24   : > { %v391_v42 = vld [vmem:[%s3811_s24 + $0x40] sm:$0xff]  ;;  %v392_v48 = vld [vmem:[%s3811_s24 + $0x48] sm:$0xff]  ;;  %v393_v54 = vld [vmem:[%s3811_s24 + $0x50] sm:$0xff]  ;;  %s3656_s16 = smov [#allocation4]  }
  0x25   : > { %3319 = vmatmul.mubr.msk.f32.vlgmr.msra.gmra.mrb[0].mxu0 %vm5536_vm0, %v381_v13  ;;  %v389_v55 = vld [vmem:[%s3811_s24 + $0x30] sm:$0xff]  ;;  %v394_v61 = vld [vmem:[%s3811_s24 + $0x58] sm:$0xff]  ;;  %v395_v5 = vld [vmem:[%s3811_s24 + $0x60] sm:$0xff]  ;;  %s3560_s17 = sshll.u32 %s3656_s16, 4  ;;  %s3561_s17 = int_to_ptr.vmem [resolvable:$false] %s3560_s17 }
  0x26   : > { %v390_v62 = vld [vmem:[%s3811_s24 + $0x38] sm:$0xff]  ;;  %v415_v6 = vld [vmem:[%s3811_s24 + $0x100] sm:$0xff]  ;;  %v396_v13 = vld [vmem:[%s3811_s24 + $0x68] sm:$0xff]  ;;  %s3562_s21 = scalar_lea.vmem %s3561_s17, 256 }
  0x27   : > { %v417_v14 = vld [vmem:[%s3811_s24 + $0x110] sm:$0xff] }
  0xf8   : > { %v589_v21 = vpop.f32.mrb[0].mxu0 }
  0xf9   : > { %v601_v22 = vadd.f32 %v3320_v19, %v589_v21  ;;  %v3802_v23 = vpop.f32.mrb[1].mxu0 }
  0xfa   : > { %5545 = vst [vmem:[#allocation9_spill] sm:$0xff] %v3802_v23 }
  0xfb   : > { %v603_v24 = vcombine.high %v601_v22, %v601_v22  ;;  %v610_v25 = vrot.slane %v601_v22, %v3800_v20 }
  0xfd   : > { %v3814_v27 = vrot.slane %v603_v24, %v3800_v20  ;;  %v626_v28 = vrot.slane %v610_v25, %v3800_v20  ;;  %v618_v63 = vcombine.high %v610_v25, %v610_v25  ;;  %v397_v25 = vld [vmem:[%s3811_s24 + $0x70] sm:$0xff] }
  0xff   : > { %v619_v29 = vcombine.high %v3814_v27, %v3814_v27  ;;  %v3822_v32 = vrot.slane %v626_v28, %v3806_v26  ;;  %v648_v56 = vcombine.high %v626_v28, %v626_v28  ;;  %v3865_v8 = vrot.slane %v618_v63, %v3800_v20  ;;  %v403_v28 = vld [vmem:[%s3811_s24 + $0xa0] sm:$0xff]  ;;  %v402_v63 = vld [vmem:[%s3811_s24 + $0x98] sm:$0xff] }
 0x100   : > { %v3875_v15 = vrot.slane %v3814_v27, %v3800_v20 }
 0x101   : > { %v3825_v33 = vrot.slane %v619_v29, %v3800_v20  ;;  %v696_v36 = vmul.f32 %v3822_v32, %v387_v30  ;;  %v692_v37 = vmul.f32 %v3822_v32, %v383_v31  ;;  %v697_v40 = vmul.f32 %v3822_v32, %v388_v34  ;;  %v398_v34 = vld [vmem:[%s3811_s24 + $0x78] sm:$0xff] }
 0x102   : > { %v693_v41 = vmul.f32 %v3822_v32, %v384_v35  ;;  %v700_v46 = vmul.f32 %v3822_v32, %v391_v42  ;;  %v694_v47 = vmul.f32 %v3822_v32, %v385_v43  ;;  %v701_v52 = vmul.f32 %v3822_v32, %v392_v48  ;;  %v448_v35 = vld [vmem:[%s3811_s24 + $0x208] sm:$0xff] }
 0x103   : > { %v832_v38 = vsel %vm5536_vm0, %v696_v36, 0.0  ;;  %v820_v39 = vsel %vm5536_vm0, %v692_v37, 0.0  ;;  %v835_v44 = vsel %vm5536_vm0, %v697_v40, 0.0  ;;  %v695_v53 = vmul.f32 %v3822_v32, %v386_v49  ;;  %v399_v40 = vld [vmem:[%s3811_s24 + $0x80] sm:$0xff] }
 0x104   : > { %833 = vadd.xlane.f32.xlu1 %v832_v38  ;;  %821 = vadd.xlane.f32.xlu0 %v820_v39  ;;  %v823_v45 = vsel %vm5536_vm0, %v693_v41, 0.0  ;;  %v844_v50 = vsel %vm5536_vm0, %v700_v46, 0.0  ;;  %v826_v51 = vsel %vm5536_vm0, %v694_v47, 0.0  ;;  %v847_v57 = vsel %vm5536_vm0, %v701_v52, 0.0  ;;  %v404_v41 = vld [vmem:[%s3811_s24 + $0xa8] sm:$0xff]  ;;  %v450_v52 = vld [vmem:[%s3811_s24 + $0x218] sm:$0xff] }
 0x105   : > { %v829_v58 = vsel %vm5536_vm0, %v695_v53, 0.0  ;;  %v702_v59 = vmul.f32 %v3822_v32, %v393_v54  ;;  %v698_v60 = vmul.f32 %v3822_v32, %v389_v55  ;;  %v3856_v0 = vrot.slane %v648_v56, %v3806_v26  ;;  %v400_v46 = vld [vmem:[%s3811_s24 + $0x88] sm:$0xff] }
 0x106   : > { %v703_v3 = vmul.f32 %v3822_v32, %v394_v61  ;;  %v699_v4 = vmul.f32 %v3822_v32, %v390_v62  ;;  %v704_v11 = vmul.f32 %v3822_v32, %v395_v5  ;;  %v3879_v17 = vrot.slane %v3865_v8, %v3806_v26 }
 0x107   : > { %v850_v1 = vsel %vm5536_vm0, %v702_v59, 0.0  ;;  %v838_v2 = vsel %vm5536_vm0, %v698_v60, 0.0  ;;  %v724_v12 = vmul.f32 %v3856_v0, %v415_v6  ;;  %v705_v22 = vmul.f32 %v3822_v32, %v396_v13  ;;  %v418_v6 = vld [vmem:[%s3811_s24 + $0x118] sm:$0xff] }
 0x108   : > { %836 = vadd.xlane.f32.xlu1 %v835_v44  ;;  %824 = vadd.xlane.f32.xlu0 %v823_v45  ;;  %v853_v9 = vsel %vm5536_vm0, %v703_v3, 0.0  ;;  %v841_v10 = vsel %vm5536_vm0, %v699_v4, 0.0  ;;  %v856_v19 = vsel %vm5536_vm0, %v704_v11, 0.0  ;;  %v726_v24 = vmul.f32 %v3856_v0, %v417_v14  ;;  %v408_v14 = vld [vmem:[%s3811_s24 + $0xc8] sm:$0xff] }
 0x109   : > { %v916_v21 = vsel %vm5536_vm0, %v724_v12, 0.0  ;;  %v3889_v20 = vrot.slane %v3875_v15, %v3806_v26  ;;  %v859_v27 = vsel %vm5536_vm0, %v705_v22, 0.0  ;;  %v706_v30 = vmul.f32 %v3822_v32, %v397_v25 }
 0x10a   : > { %v922_v29 = vsel %vm5536_vm0, %v726_v24, 0.0  ;;  %v712_v31 = vmul.f32 %v3879_v17, %v403_v28  ;;  %v707_v38 = vmul.f32 %v3822_v32, %v398_v34  ;;  %v708_v44 = vmul.f32 %v3879_v17, %v399_v40  ;;  %v420_v32 = vld [vmem:[%s3811_s24 + $0x128] sm:$0xff]  ;;  %v409_v28 = vld [vmem:[%s3811_s24 + $0xd0] sm:$0xff] }
 0x10b   : > { %v862_v36 = vsel %vm5536_vm0, %v706_v30, 0.0  ;;  %v757_v39 = vmul.f32 %v3889_v20, %v448_v35  ;;  %v713_v45 = vmul.f32 %v3879_v17, %v404_v41  ;;  %v709_v49 = vmul.f32 %v3879_v17, %v400_v46  ;;  %v410_v35 = vld [vmem:[%s3811_s24 + $0xd8] sm:$0xff]  ;;  %v411_v41 = vld [vmem:[%s3811_s24 + $0xe0] sm:$0xff] }
 0x10c   : > { %845 = vadd.xlane.f32.xlu1 %v844_v50  ;;  %827 = vadd.xlane.f32.xlu0 %v826_v51  ;;  %v880_v37 = vsel %vm5536_vm0, %v712_v31, 0.0  ;;  %v865_v42 = vsel %vm5536_vm0, %v707_v38, 0.0  ;;  %v868_v47 = vsel %vm5536_vm0, %v708_v44, 0.0  ;;  %v729_v50 = vmul.f32 %v3856_v0, %v420_v32  ;;  %v401_v51 = vld [vmem:[%s3811_s24 + $0x90] sm:$0xff]  ;;  %v412_v32 = vld [vmem:[%s3811_s24 + $0xe8] sm:$0xff] }
 0x10d   : > { %v1015_v43 = vsel %vm5536_vm0, %v757_v39, 0.0  ;;  %v883_v48 = vsel %vm5536_vm0, %v713_v45, 0.0  ;;  %v871_v53 = vsel %vm5536_vm0, %v709_v49, 0.0  ;;  %v710_v55 = vmul.f32 %v3879_v17, %v401_v51 }
 0x10e   : > { %v931_v54 = vsel %vm5536_vm0, %v729_v50, 0.0  ;;  %v759_v56 = vmul.f32 %v3889_v20, %v450_v52  ;;  %v711_v4 = vmul.f32 %v3879_v17, %v402_v63  ;;  %v727_v12 = vmul.f32 %v3856_v0, %v418_v6  ;;  %v413_v52 = vld [vmem:[%s3811_s24 + $0xf0] sm:$0xff] }
 0x10f   : > { %v874_v59 = vsel %vm5536_vm0, %v710_v55, 0.0  ;;  %v717_v24 = vmul.f32 %v3879_v17, %v408_v14  ;;  %v718_v31 = vmul.f32 %v3879_v17, %v409_v28  ;;  %v719_v39 = vmul.f32 %v3879_v17, %v410_v35 }
 0x110   : > { %848 = vadd.xlane.f32.xlu1 %v847_v57  ;;  %830 = vadd.xlane.f32.xlu0 %v829_v58  ;;  %v416_v57 = vld [vmem:[%s3811_s24 + $0x108] sm:$0xff]  ;;  %v421_v58 = vld [vmem:[%s3811_s24 + $0x130] sm:$0xff]  ;;  %v1021_v60 = vsel %vm5536_vm0, %v759_v56, 0.0  ;;  %v720_v45 = vmul.f32 %v3879_v17, %v411_v41  ;;  %v721_v50 = vmul.f32 %v3879_v17, %v412_v32  ;;  %v722_v56 = vmul.f32 %v3879_v17, %v413_v52 }
 0x111   : > { %v725_v61 = vmul.f32 %v3856_v0, %v416_v57  ;;  %v730_v62 = vmul.f32 %v3856_v0, %v421_v58  ;;  %v414_v58 = vld [vmem:[%s3811_s24 + $0xf8] sm:$0xff] }
 0x113   : > { %v934_v3 = vsel %vm5536_vm0, %v730_v62, 0.0  ;;  %v723_v62 = vmul.f32 %v3879_v17, %v414_v58 }
 0x114   : > { %851 = vadd.xlane.f32.xlu1 %v850_v1  ;;  %839 = vadd.xlane.f32.xlu0 %v838_v2  ;;  %v451_v1 = vld [vmem:[%s3811_s24 + $0x220] sm:$0xff]  ;;  %v919_v2 = vsel %vm5536_vm0, %v725_v61, 0.0 }
 0x115   : > { %v760_v5 = vmul.f32 %v3889_v20, %v451_v1  ;;  %v461_v1 = vld [vmem:[%s3811_s24 + $0x270] sm:$0xff] }
 0x116   : > { %v770_v6 = vmul.f32 %v3889_v20, %v461_v1 }
 0x117   : > { %v1024_v11 = vsel %vm5536_vm0, %v760_v5, 0.0 }
 0x118   : > { %854 = vadd.xlane.f32.xlu1 %v853_v9  ;;  %842 = vadd.xlane.f32.xlu0 %v841_v10  ;;  %v407_v9 = vld [vmem:[%s3811_s24 + $0xc0] sm:$0xff]  ;;  %v877_v10 = vsel %vm5536_vm0, %v711_v4, 0.0  ;;  %v913_v4 = vsel %vm5536_vm0, %v723_v62, 0.0  ;;  %v437_v62 = vld [vmem:[%s3811_s24 + $0x1b0] sm:$0xff] }
 0x119   : > { %v716_v13 = vmul.f32 %v3879_v17, %v407_v9 }
 0x11b   : > { %v892_v22 = vsel %vm5536_vm0, %v716_v13, 0.0 }
 0x11c   : > { %857 = vadd.xlane.f32.xlu1 %v856_v19  ;;  %917 = vadd.xlane.f32.xlu0 %v916_v21  ;;  %v447_v19 = vld [vmem:[%s3811_s24 + $0x200] sm:$0xff]  ;;  %v925_v21 = vsel %vm5536_vm0, %v727_v12, 0.0 }
 0x11d   : > { %v756_v25 = vmul.f32 %v3889_v20, %v447_v19  ;;  %v432_v19 = vld [vmem:[%s3811_s24 + $0x188] sm:$0xff] }
 0x11f   : > { %v1012_v30 = vsel %vm5536_vm0, %v756_v25, 0.0 }
 0x120   : > { %860 = vadd.xlane.f32.xlu1 %v859_v27  ;;  %923 = vadd.xlane.f32.xlu0 %v922_v29  ;;  %v419_v27 = vld [vmem:[%s3811_s24 + $0x120] sm:$0xff]  ;;  %v895_v29 = vsel %vm5536_vm0, %v717_v24, 0.0 }
 0x121   : > { %v728_v34 = vmul.f32 %v3856_v0, %v419_v27  ;;  %v433_v27 = vld [vmem:[%s3811_s24 + $0x190] sm:$0xff] }
 0x123   : > { %v928_v38 = vsel %vm5536_vm0, %v728_v34, 0.0 }
 0x124   : > { %863 = vadd.xlane.f32.xlu1 %v862_v36  ;;  %881 = vadd.xlane.f32.xlu0 %v880_v37  ;;  %v449_v36 = vld [vmem:[%s3811_s24 + $0x210] sm:$0xff]  ;;  %v898_v37 = vsel %vm5536_vm0, %v718_v31, 0.0 }
 0x125   : > { %v758_v40 = vmul.f32 %v3889_v20, %v449_v36  ;;  %v434_v36 = vld [vmem:[%s3811_s24 + $0x198] sm:$0xff] }
 0x127   : > { %v1018_v44 = vsel %vm5536_vm0, %v758_v40, 0.0 }
 0x128   : > { %866 = vadd.xlane.f32.xlu1 %v865_v42  ;;  %1016 = vadd.xlane.f32.xlu0 %v1015_v43  ;;  %v405_v42 = vld [vmem:[%s3811_s24 + $0xb0] sm:$0xff]  ;;  %v901_v43 = vsel %vm5536_vm0, %v719_v39, 0.0  ;;  %v4014_v39 = vrot.slane %v3825_v33, %v3806_v26 }
 0x129   : > { %v714_v46 = vmul.f32 %v3879_v17, %v405_v42 }
 0x12b   : > { %v886_v49 = vsel %vm5536_vm0, %v714_v46, 0.0 }
 0x12c   : > { %869 = vadd.xlane.f32.xlu1 %v868_v47  ;;  %884 = vadd.xlane.f32.xlu0 %v883_v48  ;;  %v406_v47 = vld [vmem:[%s3811_s24 + $0xb8] sm:$0xff]  ;;  %v904_v48 = vsel %vm5536_vm0, %v720_v45, 0.0  ;;  %v463_v45 = vld [vmem:[%s3811_s24 + $0x280] sm:$0xff] }
 0x12d   : > { %v715_v51 = vmul.f32 %v3879_v17, %v406_v47  ;;  %v462_v17 = vld [vmem:[%s3811_s24 + $0x278] sm:$0xff] }
 0x12e   : > { %v771_v13 = vmul.f32 %v3889_v20, %v462_v17 }
 0x12f   : > { %v889_v55 = vsel %vm5536_vm0, %v715_v51, 0.0 }
 0x130   : > { %872 = vadd.xlane.f32.xlu1 %v871_v53  ;;  %932 = vadd.xlane.f32.xlu0 %v931_v54  ;;  %v422_v53 = vld [vmem:[%s3811_s24 + $0x138] sm:$0xff]  ;;  %v907_v54 = vsel %vm5536_vm0, %v721_v50, 0.0  ;;  %v479_v50 = vld [vmem:[%s3811_s24 + $0x300] sm:$0xff] }
 0x131   : > { %v731_v57 = vmul.f32 %v3856_v0, %v422_v53 }
 0x133   : > { %v937_v61 = vsel %vm5536_vm0, %v731_v57, 0.0 }
 0x134   : > { %875 = vadd.xlane.f32.xlu1 %v874_v59  ;;  %1022 = vadd.xlane.f32.xlu0 %v1021_v60  ;;  %v452_v59 = vld [vmem:[%s3811_s24 + $0x228] sm:$0xff]  ;;  %v910_v60 = vsel %vm5536_vm0, %v722_v56, 0.0  ;;  %v481_v56 = vld [vmem:[%s3811_s24 + $0x310] sm:$0xff] }
 0x135   : > { %v761_v63 = vmul.f32 %v3889_v20, %v452_v59 }
 0x137   : > { %v1027_v5 = vsel %vm5536_vm0, %v761_v63, 0.0 }
 0x138   : > { %920 = vadd.xlane.f32.xlu1 %v919_v2  ;;  %935 = vadd.xlane.f32.xlu0 %v934_v3  ;;  %v423_v2 = vld [vmem:[%s3811_s24 + $0x140] sm:$0xff]  ;;  %v650_v3 = vcombine.high %v3865_v8, %v3865_v8  ;;  %v1054_v8 = vsel %vm5536_vm0, %v770_v6, 0.0 }
 0x139   : > { %v732_v9 = vmul.f32 %v3856_v0, %v423_v2 }
 0x13b   : > { %v940_v12 = vsel %vm5536_vm0, %v732_v9, 0.0 }
 0x13c   : > { %878 = vadd.xlane.f32.xlu1 %v877_v10  ;;  %1025 = vadd.xlane.f32.xlu0 %v1024_v11  ;;  %v453_v10 = vld [vmem:[%s3811_s24 + $0x230] sm:$0xff]  ;;  %v3990_v11 = vrot.slane %v650_v3, %v3806_v26 }
 0x13d   : > { %v762_v14 = vmul.f32 %v3889_v20, %v453_v10 }
 0x13e   : > { %v741_v25 = vmul.f32 %v3990_v11, %v432_v19  ;;  %v742_v34 = vmul.f32 %v3990_v11, %v433_v27  ;;  %v743_v42 = vmul.f32 %v3990_v11, %v434_v36  ;;  %v746_v3 = vmul.f32 %v3990_v11, %v437_v62 }
 0x13f   : > { %v1030_v24 = vsel %vm5536_vm0, %v762_v14, 0.0 }
 0x140   : > { %926 = vadd.xlane.f32.xlu1 %v925_v21  ;;  %893 = vadd.xlane.f32.xlu0 %v892_v22  ;;  %v424_v21 = vld [vmem:[%s3811_s24 + $0x148] sm:$0xff]  ;;  %v1057_v22 = vsel %vm5536_vm0, %v771_v13, 0.0  ;;  %v970_v40 = vsel %vm5536_vm0, %v742_v34, 0.0  ;;  %v973_v46 = vsel %vm5536_vm0, %v743_v42, 0.0  ;;  %v982_v9 = vsel %vm5536_vm0, %v746_v3, 0.0 }
 0x141   : > { %v733_v28 = vmul.f32 %v3856_v0, %v424_v21 }
 0x143   : > { %v943_v31 = vsel %vm5536_vm0, %v733_v28, 0.0 }
 0x144   : > { %896 = vadd.xlane.f32.xlu0 %v895_v29  ;;  %1013 = vadd.xlane.f32.xlu1 %v1012_v30  ;;  %v454_v29 = vld [vmem:[%s3811_s24 + $0x238] sm:$0xff]  ;;  %v967_v30 = vsel %vm5536_vm0, %v741_v25, 0.0 }
 0x145   : > { %v763_v35 = vmul.f32 %v3889_v20, %v454_v29 }
 0x147   : > { %v1033_v41 = vsel %vm5536_vm0, %v763_v35, 0.0 }
 0x148   : > { %899 = vadd.xlane.f32.xlu0 %v898_v37  ;;  %929 = vadd.xlane.f32.xlu1 %v928_v38  ;;  %v425_v37 = vld [vmem:[%s3811_s24 + $0x150] sm:$0xff]  ;;  %v649_v38 = vcombine.high %v3875_v15, %v3875_v15 }
 0x14a   : > { %v4023_v15 = vrot.slane %v649_v38, %v3806_v26  ;;  %v4072_v38 = vand.u32 127, %v607_v16 }
 0x14c   : > { %902 = vadd.xlane.f32.xlu0 %v901_v43  ;;  %1019 = vadd.xlane.f32.xlu1 %v1018_v44  ;;  %v734_v43 = vmul.f32 %v3856_v0, %v425_v37  ;;  %v455_v44 = vld [vmem:[%s3811_s24 + $0x240] sm:$0xff]  ;;  %5548 = vst [vmem:[#allocation11_spill] sm:$0xff] %v4072_v38  ;;  %v1339_v42 = vadd.s32 4294967288, %v4072_v38 }
 0x14d   : > { %v764_v47 = vmul.f32 %v3889_v20, %v455_v44 }
 0x14e   : > { %v946_v32 = vsel %vm5536_vm0, %v734_v43, 0.0 }
 0x14f   : > { %v1036_v51 = vsel %vm5536_vm0, %v764_v47, 0.0  ;;  %v440_v47 = vld [vmem:[%s3811_s24 + $0x1c8] sm:$0xff] }
 0x150   : > { %905 = vadd.xlane.f32.xlu0 %v904_v48  ;;  %887 = vadd.xlane.f32.xlu1 %v886_v49  ;;  %v772_v48 = vmul.f32 %v4014_v39, %v463_v45  ;;  %v426_v49 = vld [vmem:[%s3811_s24 + $0x158] sm:$0xff] }
 0x151   : > { %v735_v53 = vmul.f32 %v3856_v0, %v426_v49  ;;  %v4087_v49 = vsub.s32 %v4072_v38, %v3794_v18 }
 0x152   : > { %v1060_v52 = vsel %vm5536_vm0, %v772_v48, 0.0 }
 0x153   : > { %v949_v57 = vsel %vm5536_vm0, %v735_v53, 0.0 }
 0x154   : > { %908 = vadd.xlane.f32.xlu0 %v907_v54  ;;  %890 = vadd.xlane.f32.xlu1 %v889_v55  ;;  %v788_v54 = vmul.f32 %v4023_v15, %v479_v50  ;;  %v456_v55 = vld [vmem:[%s3811_s24 + $0x248] sm:$0xff]  ;;  %v4090_v50 = vsub.s32 %v1339_v42, %v3794_v18 }
 0x155   : > { %v765_v59 = vmul.f32 %v3889_v20, %v456_v55  ;;  %v749_v55 = vmul.f32 %v3990_v11, %v440_v47  ;;  %v1402_v47 = vadd.s32 4294967216, %v4072_v38 }
 0x156   : > { %v1108_v58 = vsel %vm5536_vm0, %v788_v54, 0.0 }
 0x157   : > { %v1039_v63 = vsel %vm5536_vm0, %v765_v59, 0.0 }
 0x158   : > { %911 = vadd.xlane.f32.xlu0 %v910_v60  ;;  %938 = vadd.xlane.f32.xlu1 %v937_v61  ;;  %v790_v60 = vmul.f32 %v4023_v15, %v481_v56  ;;  %v427_v61 = vld [vmem:[%s3811_s24 + $0x160] sm:$0xff]  ;;  %v460_v56 = vld [vmem:[%s3811_s24 + $0x268] sm:$0xff] }
 0x159   : > { %v736_v2 = vmul.f32 %v3856_v0, %v427_v61  ;;  %v769_v3 = vmul.f32 %v3889_v20, %v460_v56 }
 0x15a   : > { %v1114_v1 = vsel %vm5536_vm0, %v790_v60, 0.0 }
 0x15b   : > { %v952_v6 = vsel %vm5536_vm0, %v736_v2, 0.0  ;;  %v991_v2 = vsel %vm5536_vm0, %v749_v55, 0.0  ;;  %v1409_v55 = vadd.s32 4294967208, %v4072_v38 }
 0x15c   : > { %914 = vadd.xlane.f32.xlu0 %v913_v4  ;;  %1028 = vadd.xlane.f32.xlu1 %v1027_v5  ;;  %v457_v4 = vld [vmem:[%s3811_s24 + $0x250] sm:$0xff]  ;;  %v467_v5 = vld [vmem:[%s3811_s24 + $0x2a0] sm:$0xff] }
 0x15d   : > { %v766_v17 = vmul.f32 %v3889_v20, %v457_v4  ;;  %v776_v10 = vmul.f32 %v4014_v39, %v467_v5  ;;  %v431_v5 = vld [vmem:[%s3811_s24 + $0x180] sm:$0xff] }
 0x15f   : > { %v1042_v13 = vsel %vm5536_vm0, %v766_v17, 0.0  ;;  %v1072_v14 = vsel %vm5536_vm0, %v776_v10, 0.0  ;;  %v441_v17 = vld [vmem:[%s3811_s24 + $0x1d0] sm:$0xff] }
 0x160   : > { %1055 = vadd.xlane.f32.xlu0 %v1054_v8  ;;  %941 = vadd.xlane.f32.xlu1 %v940_v12  ;;  %v428_v8 = vld [vmem:[%s3811_s24 + $0x168] sm:$0xff]  ;;  %v438_v12 = vld [vmem:[%s3811_s24 + $0x1b8] sm:$0xff] }
 0x161   : > { %v737_v19 = vmul.f32 %v3856_v0, %v428_v8  ;;  %v747_v21 = vmul.f32 %v3990_v11, %v438_v12 }
 0x163   : > { %v955_v25 = vsel %vm5536_vm0, %v737_v19, 0.0  ;;  %v985_v28 = vsel %vm5536_vm0, %v747_v21, 0.0  ;;  %v1051_v21 = vsel %vm5536_vm0, %v769_v3, 0.0  ;;  %v4177_v3 = vsub.s32 %v1402_v47, %v3794_v18 }
 0x164   : > { %1058 = vadd.xlane.f32.xlu0 %v1057_v22  ;;  %1031 = vadd.xlane.f32.xlu1 %v1030_v24  ;;  %v458_v22 = vld [vmem:[%s3811_s24 + $0x258] sm:$0xff]  ;;  %v468_v24 = vld [vmem:[%s3811_s24 + $0x2a8] sm:$0xff] }
 0x165   : > { %v767_v27 = vmul.f32 %v3889_v20, %v458_v22  ;;  %v777_v29 = vmul.f32 %v4014_v39, %v468_v24  ;;  %v750_v24 = vmul.f32 %v3990_v11, %v441_v17 }
 0x167   : > { %v1045_v34 = vsel %vm5536_vm0, %v767_v27, 0.0  ;;  %v1075_v35 = vsel %vm5536_vm0, %v777_v29, 0.0  ;;  %v464_v27 = vld [vmem:[%s3811_s24 + $0x288] sm:$0xff]  ;;  %v471_v29 = vld [vmem:[%s3811_s24 + $0x2c0] sm:$0xff]  ;;  %v994_v42 = vsel %vm5536_vm0, %v750_v24, 0.0 }
 0x168   : > { %968 = vadd.xlane.f32.xlu0 %v967_v30  ;;  %944 = vadd.xlane.f32.xlu1 %v943_v31  ;;  %v429_v30 = vld [vmem:[%s3811_s24 + $0x170] sm:$0xff]  ;;  %v439_v31 = vld [vmem:[%s3811_s24 + $0x1c0] sm:$0xff] }
 0x169   : > { %v738_v36 = vmul.f32 %v3856_v0, %v429_v30  ;;  %v748_v37 = vmul.f32 %v3990_v11, %v439_v31  ;;  %v1388_v30 = vadd.s32 4294967232, %v4072_v38 }
 0x16b   : > { %v958_v43 = vsel %vm5536_vm0, %v738_v36, 0.0  ;;  %v988_v44 = vsel %vm5536_vm0, %v748_v37, 0.0 }
 0x16c   : > { %971 = vadd.xlane.f32.xlu0 %v970_v40  ;;  %1034 = vadd.xlane.f32.xlu1 %v1033_v41  ;;  %v459_v40 = vld [vmem:[%s3811_s24 + $0x260] sm:$0xff]  ;;  %v469_v41 = vld [vmem:[%s3811_s24 + $0x2b0] sm:$0xff] }
 0x16d   : > { %v768_v45 = vmul.f32 %v3889_v20, %v459_v40  ;;  %v1381_v40 = vadd.s32 4294967240, %v4072_v38 }
 0x170   : > { %974 = vadd.xlane.f32.xlu0 %v973_v46  ;;  %947 = vadd.xlane.f32.xlu1 %v946_v32  ;;  %v778_v46 = vmul.f32 %v4014_v39, %v469_v41  ;;  %v430_v32 = vld [vmem:[%s3811_s24 + $0x178] sm:$0xff] }
 0x171   : > { %v739_v54 = vmul.f32 %v3856_v0, %v430_v32 }
 0x172   : > { %v1078_v53 = vsel %vm5536_vm0, %v778_v46, 0.0  ;;  %v1395_v46 = vadd.s32 4294967224, %v4072_v38 }
 0x174   : > { %1037 = vadd.xlane.f32.xlu1 %v1036_v51  ;;  %1061 = vadd.xlane.f32.xlu0 %v1060_v52  ;;  %v1346_v51 = vadd.s32 4294967280, %v4072_v38  ;;  %v1048_v52 = vsel %vm5536_vm0, %v768_v45, 0.0 }
 0x176   : > { %v4105_v0 = vsub.s32 %v1346_v51, %v3794_v18  ;;  %v4158_v51 = vsub.s32 %v1388_v30, %v3794_v18  ;;  %v480_v30 = vld [vmem:[%s3811_s24 + $0x308] sm:$0xff] }
 0x177   : > { %v789_v47 = vmul.f32 %v4023_v15, %v480_v30  ;;  %v474_v30 = vld [vmem:[%s3811_s24 + $0x2d8] sm:$0xff] }
 0x178   : > { %950 = vadd.xlane.f32.xlu1 %v949_v57  ;;  %1109 = vadd.xlane.f32.xlu0 %v1108_v58  ;;  %v470_v57 = vld [vmem:[%s3811_s24 + $0x2b8] sm:$0xff]  ;;  %v1360_v58 = vadd.s32 4294967264, %v4072_v38 }
 0x179   : > { %v779_v4 = vmul.f32 %v4014_v39, %v470_v57 }
 0x17a   : > { %v4125_v19 = vsub.s32 %v1360_v58, %v3794_v18  ;;  %v4165_v58 = vsub.s32 %v1381_v40, %v3794_v18 }
 0x17b   : > { %v1081_v22 = vsel %vm5536_vm0, %v779_v4, 0.0 }
 0x17c   : > { %1040 = vadd.xlane.f32.xlu1 %v1039_v63  ;;  %1115 = vadd.xlane.f32.xlu0 %v1114_v1  ;;  %v1353_v63 = vadd.s32 4294967272, %v4072_v38  ;;  %v961_v1 = vsel %vm5536_vm0, %v739_v54, 0.0 }
 0x17e   : > { %v4120_v20 = vsub.s32 %v1353_v63, %v3794_v18 }
 0x180   : > { %953 = vadd.xlane.f32.xlu1 %v952_v6  ;;  %983 = vadd.xlane.f32.xlu0 %v982_v9  ;;  %v1367_v6 = vadd.s32 4294967256, %v4072_v38 }
 0x184   : > { %1043 = vadd.xlane.f32.xlu1 %v1042_v13  ;;  %1073 = vadd.xlane.f32.xlu0 %v1072_v14  ;;  %v740_v13 = vmul.f32 %v3990_v11, %v431_v5  ;;  %v1374_v14 = vadd.s32 4294967248, %v4072_v38  ;;  %v472_v5 = vld [vmem:[%s3811_s24 + $0x2c8] sm:$0xff] }
 0x186   : > { %v964_v36 = vsel %vm5536_vm0, %v740_v13, 0.0  ;;  %v4142_v37 = vsub.s32 %v1374_v14, %v3794_v18 }
 0x188   : > { %956 = vadd.xlane.f32.xlu1 %v955_v25  ;;  %986 = vadd.xlane.f32.xlu0 %v985_v28  ;;  %v4131_v25 = vsub.s32 %v1367_v6, %v3794_v18  ;;  %v4182_v6 = vsub.s32 %v1409_v55, %v3794_v18 }
 0x18c   : > { %1046 = vadd.xlane.f32.xlu1 %v1045_v34  ;;  %1076 = vadd.xlane.f32.xlu0 %v1075_v35 }
 0x190   : > { %959 = vadd.xlane.f32.xlu1 %v958_v43  ;;  %989 = vadd.xlane.f32.xlu0 %v988_v44  ;;  %v773_v43 = vmul.f32 %v4014_v39, %v464_v27  ;;  %v780_v44 = vmul.f32 %v4014_v39, %v471_v29 }
 0x191   : > { %v4083_v16 = vpop.xlane.xlu1 %833  ;;  %v822_v48 = vpop.xlane.xlu0 %821 }
 0x192   : > { %v1338_v61 = vrot.slane %v822_v48, %v4087_v49  ;;  %v1364_v41 = vrot.slane %v4083_v16, %v4125_v19  ;;  %v435_v48 = vld [vmem:[%s3811_s24 + $0x1a0] sm:$0xff]  ;;  %v442_v16 = vld [vmem:[%s3811_s24 + $0x1d8] sm:$0xff] }
 0x193   : > { %v744_v63 = vmul.f32 %v3990_v11, %v435_v48 }
 0x194   : > { %1049 = vadd.xlane.f32.xlu1 %v1048_v52  ;;  %1079 = vadd.xlane.f32.xlu0 %v1078_v53 }
 0x195   : > { %v4100_v59 = vpop.xlane.xlu1 %836  ;;  %v825_v60 = vpop.xlane.xlu0 %824 }
 0x196   : > { %v1343_v62 = vrot.slane %v825_v60, %v4090_v50  ;;  %v1371_v45 = vrot.slane %v4100_v59, %v4131_v25  ;;  %v1416_v59 = vadd.s32 4294967200, %v4072_v38  ;;  %v465_v60 = vld [vmem:[%s3811_s24 + $0x290] sm:$0xff] }
 0x198   : > { %v1345_v9 = vsel %vm1344_vm1, %v1343_v62, %v1338_v61  ;;  %962 = vadd.xlane.f32.xlu1 %v961_v1  ;;  %992 = vadd.xlane.f32.xlu0 %v991_v2  ;;  %v1063_v61 = vsel %vm5536_vm0, %v773_v43, 0.0  ;;  %v1084_v62 = vsel %vm5536_vm0, %v780_v44, 0.0  ;;  %v751_v1 = vmul.f32 %v3990_v11, %v442_v16 }
 0x199   : > { %v4116_v10 = vpop.xlane.xlu1 %845  ;;  %v828_v8 = vpop.xlane.xlu0 %827  ;;  %v4174_v2 = vsub.s32 %v1395_v46, %v3794_v18  ;;  %v4188_v14 = vsub.s32 %v1416_v59, %v3794_v18 }
 0x19a   : > { %v1350_v12 = vrot.slane %v828_v8, %v4105_v0  ;;  %v774_v8 = vmul.f32 %v4014_v39, %v465_v60  ;;  %v997_v24 = vsel %vm5536_vm0, %v751_v1, 0.0  ;;  %v1437_v60 = vadd.s32 4294967176, %v4072_v38 }
 0x19c   : > { %v1352_v28 = vsel %vm1351_vm2, %v1350_v12, %v1345_v9  ;;  %1052 = vadd.xlane.f32.xlu1 %v1051_v21  ;;  %1082 = vadd.xlane.f32.xlu0 %v1081_v22  ;;  %v1423_v12 = vadd.s32 4294967192, %v4072_v38  ;;  %v1392_v21 = vrot.slane %v4116_v10, %v4158_v51  ;;  %v976_v22 = vsel %vm5536_vm0, %v744_v63, 0.0 }
 0x19d   : > { %v4137_v31 = vpop.xlane.xlu1 %848  ;;  %v831_v34 = vpop.xlane.xlu0 %830 }
 0x19e   : > { %v1357_v35 = vrot.slane %v831_v34, %v4120_v20  ;;  %v1399_v27 = vrot.slane %v4137_v31, %v4174_v2  ;;  %v443_v34 = vld [vmem:[%s3811_s24 + $0x1e0] sm:$0xff]  ;;  %v4206_v31 = vsub.s32 %v1423_v12, %v3794_v18 }
 0x19f   : > { %v752_v48 = vmul.f32 %v3990_v11, %v443_v34 }
 0x1a0   : > { %v1359_v32 = vsel %vm1358_vm3, %v1357_v35, %v1352_v28  ;;  %965 = vadd.xlane.f32.xlu1 %v964_v36  ;;  %995 = vadd.xlane.f32.xlu0 %v994_v42  ;;  %v781_v28 = vmul.f32 %v4014_v39, %v472_v5  ;;  %v466_v5 = vld [vmem:[%s3811_s24 + $0x298] sm:$0xff] }
 0x1a1   : > { %v1366_v52 = vsel %vm1365_vm4, %v1364_v41, %v1359_v32  ;;  %v852_v53 = vpop.xlane.xlu1 %851  ;;  %v840_v54 = vpop.xlane.xlu0 %839  ;;  %v1066_v41 = vsel %vm5536_vm0, %v774_v8, 0.0 }
 0x1a2   : > { %v1373_v56 = vsel %vm1372_vm5, %v1371_v45, %v1366_v52  ;;  %v1378_v57 = vrot.slane %v840_v54, %v4142_v37  ;;  %v1406_v35 = vrot.slane %v852_v53, %v4177_v3  ;;  %v1430_v45 = vadd.s32 4294967184, %v4072_v38  ;;  %v436_v52 = vld [vmem:[%s3811_s24 + $0x1a8] sm:$0xff]  ;;  %v473_v53 = vld [vmem:[%s3811_s24 + $0x2d0] sm:$0xff] }
 0x1a3   : > { %v1087_v32 = vsel %vm5536_vm0, %v781_v28, 0.0  ;;  %v745_v63 = vmul.f32 %v3990_v11, %v436_v52  ;;  %v782_v1 = vmul.f32 %v4014_v39, %v473_v53 }
 0x1a4   : > { %v1380_v4 = vsel %vm5527_vm6, %v1378_v57, %v1373_v56  ;;  %1064 = vadd.xlane.f32.xlu1 %v1063_v61  ;;  %1085 = vadd.xlane.f32.xlu0 %v1084_v62  ;;  %v4224_v59 = vsub.s32 %v1430_v45, %v3794_v18  ;;  %v1111_v61 = vsel %vm5536_vm0, %v789_v47, 0.0  ;;  %v1000_v62 = vsel %vm5536_vm0, %v752_v48, 0.0  ;;  %v483_v45 = vld [vmem:[%s3811_s24 + $0x320] sm:$0xff] }
 0x1a5   : > { %v855_v9 = vpop.xlane.xlu1 %854  ;;  %v843_v17 = vpop.xlane.xlu0 %842  ;;  %v792_v52 = vmul.f32 %v4023_v15, %v483_v45 }
 0x1a6   : > { %v1385_v13 = vrot.slane %v843_v17, %v4165_v58  ;;  %v1413_v42 = vrot.slane %v855_v9, %v4182_v6  ;;  %v444_v9 = vld [vmem:[%s3811_s24 + $0x1e8] sm:$0xff] }
 0x1a7   : > { %v753_v28 = vmul.f32 %v3990_v11, %v444_v9 }
 0x1a8   : > { %v1387_v29 = vsel %vm1386_vm7, %v1385_v13, %v1380_v4  ;;  %977 = vadd.xlane.f32.xlu1 %v976_v22  ;;  %998 = vadd.xlane.f32.xlu0 %v997_v24  ;;  %v4238_v13 = vsub.s32 %v1437_v60, %v3794_v18  ;;  %v1090_v22 = vsel %vm5536_vm0, %v782_v1, 0.0  ;;  %v775_v24 = vmul.f32 %v4014_v39, %v466_v5 }
 0x1a9   : > { %v1394_v10 = vsel %vm1393_vm8, %v1392_v21, %v1387_v29  ;;  %v858_v36 = vpop.xlane.xlu1 %857  ;;  %v4202_v40 = vpop.xlane.xlu0 %917  ;;  %v979_v21 = vsel %vm5536_vm0, %v745_v63, 0.0  ;;  %v482_v29 = vld [vmem:[%s3811_s24 + $0x318] sm:$0xff]  ;;  %v1120_v63 = vsel %vm5536_vm0, %v792_v52, 0.0 }
 0x1aa   : > { %v1401_v43 = vsel %vm1400_vm9, %v1399_v27, %v1394_v10  ;;  %v1420_v44 = vrot.slane %v858_v36, %v4188_v14  ;;  %v1069_v36 = vsel %vm5536_vm0, %v775_v24, 0.0  ;;  %v651_v24 = vcombine.high %v3825_v33, %v3825_v33 }
 0x1ab   : > { %v1408_v46 = vsel %vm1407_vm10, %v1406_v35, %v1401_v43  ;;  %v783_v43 = vmul.f32 %v4014_v39, %v474_v30  ;;  %v1526_v45 = vrot.slane %v4202_v40, %v4087_v49  ;;  %v496_v40 = vld [vmem:[%s3811_s24 + $0x388] sm:$0xff] }
 0x1ac   : > { %v1415_v16 = vsel %vm1414_vm11, %v1413_v42, %v1408_v46  ;;  %1067 = vadd.xlane.f32.xlu1 %v1066_v41  ;;  %1088 = vadd.xlane.f32.xlu0 %v1087_v32  ;;  %v1003_v41 = vsel %vm5536_vm0, %v753_v28, 0.0  ;;  %v791_v42 = vmul.f32 %v4023_v15, %v482_v29  ;;  %v445_v46 = vld [vmem:[%s3811_s24 + $0x1f0] sm:$0xff] }
 0x1ad   : > { %v1422_v54 = vsel %vm1421_vm12, %v1420_v44, %v1415_v16  ;;  %v861_v55 = vpop.xlane.xlu1 %860  ;;  %v4220_v56 = vpop.xlane.xlu0 %923  ;;  %v1093_v16 = vsel %vm5536_vm0, %v783_v43, 0.0  ;;  %v754_v53 = vmul.f32 %v3990_v11, %v445_v46  ;;  %v4293_v43 = vrot.slane %v651_v24, %v3806_v26  ;;  %v497_v24 = vld [vmem:[%s3811_s24 + $0x390] sm:$0xff] }
 0x1ae   : > { %v1427_v57 = vrot.slane %v861_v55, %v4206_v31  ;;  %v1117_v48 = vsel %vm5536_vm0, %v791_v42, 0.0  ;;  %v475_v55 = vld [vmem:[%s3811_s24 + $0x2e0] sm:$0xff] }
 0x1af   : > { %v1006_v1 = vsel %vm5536_vm0, %v754_v53, 0.0  ;;  %v784_v5 = vmul.f32 %v4014_v39, %v475_v55 }
 0x1b0   : > { %v1429_v4 = vsel %vm1428_vm13, %v1427_v57, %v1422_v54  ;;  %1112 = vadd.xlane.f32.xlu1 %v1111_v61  ;;  %1001 = vadd.xlane.f32.xlu0 %v1000_v62  ;;  %v484_v54 = vld [vmem:[%s3811_s24 + $0x328] sm:$0xff] }
 0x1b1   : > { %v864_v17 = vpop.xlane.xlu1 %863  ;;  %v4234_v8 = vpop.xlane.xlu0 %881  ;;  %v1096_v29 = vsel %vm5536_vm0, %v784_v5, 0.0 }
 0x1b2   : > { %v1434_v12 = vrot.slane %v864_v17, %v4224_v59  ;;  %v485_v17 = vld [vmem:[%s3811_s24 + $0x330] sm:$0xff] }
 0x1b3   : > { %v794_v30 = vmul.f32 %v4023_v15, %v485_v17 }
 0x1b4   : > { %v1436_v27 = vsel %vm1435_vm14, %v1434_v12, %v1429_v4  ;;  %980 = vadd.xlane.f32.xlu1 %v979_v21  ;;  %1091 = vadd.xlane.f32.xlu0 %v1090_v22  ;;  %v793_v4 = vmul.f32 %v4023_v15, %v484_v54  ;;  %v491_v12 = vld [vmem:[%s3811_s24 + $0x360] sm:$0xff] }
 0x1b5   : > { %v867_v34 = vpop.xlane.xlu1 %866  ;;  %v4247_v35 = vpop.xlane.xlu0 %1016  ;;  %v487_v54 = vld [vmem:[%s3811_s24 + $0x340] sm:$0xff] }
 0x1b6   : > { %v1441_v10 = vrot.slane %v867_v34, %v4238_v13  ;;  %v800_v34 = vmul.f32 %v4023_v15, %v491_v12 }
 0x1b8   : > { %v4255_v44 = vsel %vm1442_vm15, %v1441_v10, %v1436_v27  ;;  %1070 = vadd.xlane.f32.xlu1 %v1069_v36  ;;  %1004 = vadd.xlane.f32.xlu0 %v1003_v41  ;;  %v1123_v27 = vsel %vm5536_vm0, %v793_v4, 0.0  ;;  %v486_v10 = vld [vmem:[%s3811_s24 + $0x338] sm:$0xff]  ;;  %v492_v41 = vld [vmem:[%s3811_s24 + $0x368] sm:$0xff]  ;;  %v1144_v52 = vsel %vm5536_vm0, %v800_v34, 0.0 }
 0x1b9   : > { %v870_v32 = vpop.xlane.xlu1 %869  ;;  %v4259_v47 = vpop.xlane.xlu0 %884  ;;  %v801_v53 = vmul.f32 %v4023_v15, %v492_v41  ;;  %v498_v41 = vld [vmem:[%s3811_s24 + $0x398] sm:$0xff] }
 0x1ba   : > { %v1447_v61 = vrot.slane %v870_v32, %v4087_v49  ;;  %v795_v32 = vmul.f32 %v4023_v15, %v486_v10  ;;  %v1471_v17 = vrot.slane %v4259_v47, %v4131_v25  ;;  %v806_v10 = vmul.f32 %v4293_v43, %v497_v24 }
 0x1bb   : > { %v1147_v5 = vsel %vm5536_vm0, %v801_v53, 0.0  ;;  %v490_v53 = vld [vmem:[%s3811_s24 + $0x358] sm:$0xff] }
 0x1bc   : > { %1118 = vadd.xlane.f32.xlu1 %v1117_v48  ;;  %1094 = vadd.xlane.f32.xlu0 %v1093_v16  ;;  %v1535_v48 = vrot.slane %v4220_v56, %v4105_v0  ;;  %v1126_v16 = vsel %vm5536_vm0, %v794_v30, 0.0  ;;  %v1129_v4 = vsel %vm5536_vm0, %v795_v32, 0.0 }
 0x1bd   : > { %v873_v57 = vpop.xlane.xlu1 %872  ;;  %v4267_v60 = vpop.xlane.xlu0 %932 }
 0x1be   : > { %v1451_v62 = vrot.slane %v873_v57, %v4090_v50 }
 0x1c0   : > { %v1452_v9 = vsel %vm1344_vm1, %v1451_v62, %v1447_v61  ;;  %1121 = vadd.xlane.f32.xlu1 %v1120_v63  ;;  %1007 = vadd.xlane.f32.xlu0 %v1006_v1  ;;  %v796_v63 = vmul.f32 %v4023_v15, %v487_v54  ;;  %v1466_v1 = vrot.slane %v4234_v8, %v4125_v19  ;;  %v499_v54 = vld [vmem:[%s3811_s24 + $0x3a0] sm:$0xff] }
 0x1c1   : > { %v876_v21 = vpop.xlane.xlu1 %875  ;;  %v4278_v22 = vpop.xlane.xlu0 %1022 }
 0x1c2   : > { %v1456_v28 = vrot.slane %v876_v21, %v4105_v0  ;;  %v488_v21 = vld [vmem:[%s3811_s24 + $0x348] sm:$0xff]  ;;  %v1132_v30 = vsel %vm5536_vm0, %v796_v63, 0.0  ;;  %v799_v63 = vmul.f32 %v4023_v15, %v490_v53 }
 0x1c3   : > { %v797_v34 = vmul.f32 %v4023_v15, %v488_v21  ;;  %v500_v21 = vld [vmem:[%s3811_s24 + $0x3a8] sm:$0xff] }
 0x1c4   : > { %v1457_v36 = vsel %vm1351_vm2, %v1456_v28, %v1452_v9  ;;  %1124 = vadd.xlane.f32.xlu1 %v1123_v27  ;;  %1097 = vadd.xlane.f32.xlu0 %v1096_v29  ;;  %v805_v9 = vmul.f32 %v4293_v43, %v496_v40 }
 0x1c5   : > { %v921_v42 = vpop.xlane.xlu1 %920  ;;  %v4290_v33 = vpop.xlane.xlu0 %935 }
 0x1c6   : > { %v1530_v46 = vrot.slane %v921_v42, %v4090_v50  ;;  %v1159_v47 = vsel %vm5536_vm0, %v805_v9, 0.0  ;;  %v1555_v24 = vrot.slane %v4290_v33, %v4142_v37 }
 0x1c8   : > { %v1531_v55 = vsel %vm1344_vm1, %v1530_v46, %v1526_v45  ;;  %1127 = vadd.xlane.f32.xlu1 %v1126_v16  ;;  %1145 = vadd.xlane.f32.xlu0 %v1144_v52  ;;  %v1162_v16 = vsel %vm5536_vm0, %v806_v10, 0.0  ;;  %v807_v52 = vmul.f32 %v4293_v43, %v498_v41  ;;  %v809_v10 = vmul.f32 %v4293_v43, %v500_v21 }
 0x1c9   : > { %v879_v57 = vpop.xlane.xlu1 %878  ;;  %v4307_v61 = vpop.xlane.xlu0 %1025  ;;  %v1536_v62 = vsel %vm1351_vm2, %v1535_v48, %v1531_v55  ;;  %v1135_v48 = vsel %vm5536_vm0, %v797_v34, 0.0 }
 0x1ca   : > { %v1461_v56 = vrot.slane %v879_v57, %v4120_v20 }
 0x1cc   : > { %v1462_v12 = vsel %vm1358_vm3, %v1461_v56, %v1457_v36  ;;  %1130 = vadd.xlane.f32.xlu1 %v1129_v4  ;;  %1148 = vadd.xlane.f32.xlu0 %v1147_v5  ;;  %v489_v36 = vld [vmem:[%s3811_s24 + $0x350] sm:$0xff]  ;;  %v1550_v4 = vrot.slane %v4267_v60, %v4131_v25 }
 0x1cd   : > { %v1467_v28 = vsel %vm1365_vm4, %v1466_v1, %v1462_v12  ;;  %v927_v8 = vpop.xlane.xlu1 %926  ;;  %v4323_v27 = vpop.xlane.xlu0 %893  ;;  %v798_v46 = vmul.f32 %v4023_v15, %v489_v36  ;;  %v808_v1 = vmul.f32 %v4293_v43, %v499_v54  ;;  %v446_v12 = vld [vmem:[%s3811_s24 + $0x1f8] sm:$0xff]  ;;  %v1698_v36 = vrot.slane %v4278_v22, %v4120_v20 }
 0x1ce   : > { %v4326_v29 = vsel %vm1372_vm5, %v1471_v17, %v1467_v28  ;;  %v1540_v32 = vrot.slane %v927_v8, %v4120_v20  ;;  %v1165_v17 = vsel %vm5536_vm0, %v807_v52, 0.0  ;;  %v1688_v8 = vrot.slane %v4247_v35, %v4090_v50 }
 0x1cf   : > { %v1138_v56 = vsel %vm5536_vm0, %v798_v46, 0.0  ;;  %v755_v34 = vmul.f32 %v3990_v11, %v446_v12  ;;  %v1141_v35 = vsel %vm5536_vm0, %v799_v63, 0.0  ;;  %v476_v46 = vld [vmem:[%s3811_s24 + $0x2e8] sm:$0xff]  ;;  %v1703_v11 = vrot.slane %v4307_v61, %v4125_v19  ;;  %v477_v63 = vld [vmem:[%s3811_s24 + $0x2f0] sm:$0xff] }
 0x1d0   : > { %1133 = vadd.xlane.f32.xlu1 %v1132_v30  ;;  %1160 = vadd.xlane.f32.xlu0 %v1159_v47  ;;  %v1541_v5 = vsel %vm1358_vm3, %v1540_v32, %v1536_v62  ;;  %v785_v53 = vmul.f32 %v4014_v39, %v476_v46  ;;  %v1171_v61 = vsel %vm5536_vm0, %v809_v10, 0.0  ;;  %v1486_v21 = vrot.slane %v4323_v27, %v4158_v51 }
 0x1d1   : > { %v4334_v42 = vpop.xlane.xlu0 %896  ;;  %v1014_v45 = vpop.xlane.xlu1 %1013 }
 0x1d2   : > { %v1684_v9 = vrot.slane %v1014_v45, %v4087_v49  ;;  %v1168_v45 = vsel %vm5536_vm0, %v808_v1, 0.0  ;;  %v502_v1 = vld [vmem:[%s3811_s24 + $0x3b8] sm:$0xff] }
 0x1d3   : > { %v811_v12 = vmul.f32 %v4293_v43, %v502_v1 }
 0x1d4   : > { %1136 = vadd.xlane.f32.xlu1 %v1135_v48  ;;  %1163 = vadd.xlane.f32.xlu0 %v1162_v16  ;;  %v1689_v41 = vsel %vm1344_vm1, %v1688_v8, %v1684_v9  ;;  %v501_v48 = vld [vmem:[%s3811_s24 + $0x3b0] sm:$0xff] }
 0x1d5   : > { %v4343_v55 = vpop.xlane.xlu0 %899  ;;  %v930_v40 = vpop.xlane.xlu1 %929 }
 0x1d6   : > { %v1545_v57 = vrot.slane %v930_v40, %v4125_v19  ;;  %v1496_v27 = vrot.slane %v4343_v55, %v4177_v3 }
 0x1d8   : > { %v1546_v28 = vsel %vm1365_vm4, %v1545_v57, %v1541_v5  ;;  %1139 = vadd.xlane.f32.xlu1 %v1138_v56  ;;  %1166 = vadd.xlane.f32.xlu0 %v1165_v17  ;;  %v1009_v57 = vsel %vm5536_vm0, %v755_v34, 0.0  ;;  %v810_v56 = vmul.f32 %v4293_v43, %v501_v48  ;;  %v786_v17 = vmul.f32 %v4014_v39, %v477_v63  ;;  %v504_v48 = vld [vmem:[%s3811_s24 + $0x3c8] sm:$0xff] }
 0x1d9   : > { %v1551_v60 = vsel %vm1372_vm5, %v1550_v4, %v1546_v28  ;;  %v903_v62 = vpop.xlane.xlu0 %902  ;;  %v1020_v30 = vpop.xlane.xlu1 %1019  ;;  %v1099_v28 = vsel %vm5536_vm0, %v785_v53, 0.0  ;;  %v813_v63 = vmul.f32 %v4293_v43, %v504_v48 }
 0x1da   : > { %v1693_v47 = vrot.slane %v1020_v30, %v4105_v0  ;;  %v4366_v33 = vsel %vm5527_vm6, %v1555_v24, %v1551_v60  ;;  %v1174_v8 = vsel %vm5536_vm0, %v810_v56, 0.0  ;;  %v503_v60 = vld [vmem:[%s3811_s24 + $0x3c0] sm:$0xff]  ;;  %v1102_v55 = vsel %vm5536_vm0, %v786_v17, 0.0 }
 0x1db   : > { %v495_v30 = vld [vmem:[%s3811_s24 + $0x380] sm:$0xff] }
 0x1dc   : > { %v1694_v32 = vsel %vm1351_vm2, %v1693_v47, %v1689_v41  ;;  %1142 = vadd.xlane.f32.xlu1 %v1141_v35  ;;  %1169 = vadd.xlane.f32.xlu0 %v1168_v45  ;;  %v1491_v47 = vrot.slane %v4334_v42, %v4174_v2  ;;  %v1501_v41 = vrot.slane %v903_v62, %v4182_v6  ;;  %v506_v62 = vld [vmem:[%s3811_s24 + $0x3d8] sm:$0xff] }
 0x1dd   : > { %v1699_v16 = vsel %vm1358_vm3, %v1698_v36, %v1694_v32  ;;  %v906_v22 = vpop.xlane.xlu0 %905  ;;  %v888_v52 = vpop.xlane.xlu1 %887  ;;  %v812_v42 = vmul.f32 %v4293_v43, %v503_v60  ;;  %v804_v45 = vmul.f32 %v4293_v43, %v495_v30  ;;  %v1177_v32 = vsel %vm5536_vm0, %v811_v12, 0.0  ;;  %v505_v12 = vld [vmem:[%s3811_s24 + $0x3d0] sm:$0xff] }
 0x1de   : > { %v4381_v54 = vsel %vm1365_vm4, %v1703_v11, %v1699_v16  ;;  %v1476_v40 = vrot.slane %v888_v52, %v4142_v37  ;;  %v1506_v46 = vrot.slane %v906_v22, %v4188_v14  ;;  %v1183_v60 = vsel %vm5536_vm0, %v813_v63, 0.0 }
 0x1e0   : > { %1010 = vadd.xlane.f32.xlu1 %v1009_v57  ;;  %1172 = vadd.xlane.f32.xlu0 %v1171_v61  ;;  %v1477_v24 = vsel %vm5527_vm6, %v1476_v40, %v4326_v29  ;;  %vm5528_vm6 = vcmask 1041409  }
 0x1e1   : > { %v909_v4 = vpop.xlane.xlu0 %908  ;;  %v891_v5 = vpop.xlane.xlu1 %890 }
 0x1e2   : > { %v1481_v9 = vrot.slane %v891_v5, %v4165_v58  ;;  %v1511_v16 = vrot.slane %v909_v4, %v4206_v31  ;;  %v1180_v4 = vsel %vm5536_vm0, %v812_v42, 0.0  ;;  %v1156_v5 = vsel %vm5536_vm0, %v804_v45, 0.0 }
 0x1e4   : > { %v1482_v34 = vsel %vm1386_vm7, %v1481_v9, %v1477_v24  ;;  %1100 = vadd.xlane.f32.xlu1 %v1099_v28  ;;  %1175 = vadd.xlane.f32.xlu0 %v1174_v8  ;;  %v815_v9 = vmul.f32 %v4293_v43, %v506_v62 }
 0x1e5   : > { %v1487_v10 = vsel %vm1393_vm8, %v1486_v21, %v1482_v34  ;;  %v912_v29 = vpop.xlane.xlu0 %911  ;;  %v4406_v36 = vpop.xlane.xlu1 %938  ;;  %v507_v21 = vld [vmem:[%s3811_s24 + $0x3e0] sm:$0xff] }
 0x1e6   : > { %v1492_v35 = vsel %vm1400_vm9, %v1491_v47, %v1487_v10  ;;  %v1516_v22 = vrot.slane %v912_v29, %v4224_v59  ;;  %v1189_v30 = vsel %vm5536_vm0, %v815_v9, 0.0  ;;  %v814_v47 = vmul.f32 %v4293_v43, %v505_v12  ;;  %v493_v10 = vld [vmem:[%s3811_s24 + $0x370] sm:$0xff] }
 0x1e7   : > { %v1497_v11 = vsel %vm1407_vm10, %v1496_v27, %v1492_v35  ;;  %v816_v34 = vmul.f32 %v4293_v43, %v507_v21  ;;  %v478_v27 = vld [vmem:[%s3811_s24 + $0x2f8] sm:$0xff]  ;;  %v802_v45 = vmul.f32 %v4023_v15, %v493_v10 }
 0x1e8   : > { %v1502_v52 = vsel %vm1414_vm11, %v1501_v41, %v1497_v11  ;;  %1103 = vadd.xlane.f32.xlu1 %v1102_v55  ;;  %1178 = vadd.xlane.f32.xlu0 %v1177_v32  ;;  %v1186_v41 = vsel %vm5536_vm0, %v814_v47, 0.0  ;;  %v787_v42 = vmul.f32 %v4014_v39, %v478_v27  ;;  %v494_v11 = vld [vmem:[%s3811_s24 + $0x378] sm:$0xff]  ;;  %v509_v39 = vld [vmem:[%s3811_s24 + $0x3f0] sm:$0xff] }
 0x1e9   : > { %v1507_v53 = vsel %vm1421_vm12, %v1506_v46, %v1502_v52  ;;  %v915_v40 = vpop.xlane.xlu0 %914  ;;  %v4422_v57 = vpop.xlane.xlu1 %1028  ;;  %v1192_v35 = vsel %vm5536_vm0, %v816_v34, 0.0  ;;  %v508_v46 = vld [vmem:[%s3811_s24 + $0x3e8] sm:$0xff]  ;;  %v803_v62 = vmul.f32 %v4023_v15, %v494_v11  ;;  %v818_v63 = vmul.f32 %v4293_v43, %v509_v39 }
 0x1ea   : > { %v1512_v61 = vsel %vm1428_vm13, %v1511_v16, %v1507_v53  ;;  %v1521_v56 = vrot.slane %v915_v40, %v4238_v13  ;;  %v1105_v48 = vsel %vm5536_vm0, %v787_v42, 0.0  ;;  %v1150_v16 = vsel %vm5536_vm0, %v802_v45, 0.0  ;;  %v510_v53 = vld [vmem:[%s3811_s24 + $0x3f8] sm:$0xff] }
 0x1eb   : > { %v1517_v1 = vsel %vm1435_vm14, %v1516_v22, %v1512_v61  ;;  %v817_v52 = vmul.f32 %v4293_v43, %v508_v46  ;;  %v1560_v46 = vrot.slane %v4406_v36, %v4165_v58 }
 0x1ec   : > { %v1522_v17 = vsel %vm1442_vm15, %v1521_v56, %v1517_v1  ;;  %1181 = vadd.xlane.f32.xlu0 %v1180_v4  ;;  %1157 = vadd.xlane.f32.xlu1 %v1156_v5  ;;  %v1153_v56 = vsel %vm5536_vm0, %v803_v62, 0.0  ;;  %v819_v1 = vmul.f32 %v4293_v43, %v510_v53  ;;  %v1198_v5 = vsel %vm5536_vm0, %v818_v63, 0.0 }
 0x1ed   : > { %v4436_v24 = vsel %vm5528_vm6, %v1522_v17, %v4255_v44  ;;  %v4438_v28 = vpop.xlane.xlu0 %1055  ;;  %v4440_v8 = vpop.xlane.xlu1 %941  ;;  %v1195_v61 = vsel %vm5536_vm0, %v817_v52, 0.0  ;;  %v1561_v39 = vsel %vm1386_vm7, %v1560_v46, %v4366_v33  ;;  %vm5535_vm6 = vcmask 1042434  }
 0x1ee   : > { %v1201_v9 = vsel %vm5536_vm0, %v819_v1, 0.0  ;;  %v1565_v11 = vrot.slane %v4440_v8, %v4158_v51  ;;  %vm2003_vm0 = vcmask 1044484  }
 0x1f0   : > { %1184 = vadd.xlane.f32.xlu0 %v1183_v60  ;;  %1190 = vadd.xlane.f32.xlu1 %v1189_v30 }
 0x1f1   : > { %v4448_v44 = vpop.xlane.xlu0 %1058  ;;  %v4450_v29 = vpop.xlane.xlu1 %1031 }
 0x1f4   : > { %1187 = vadd.xlane.f32.xlu0 %v1186_v41  ;;  %1193 = vadd.xlane.f32.xlu1 %v1192_v35 }
 0x1f5   : > { %v4458_v55 = vpop.xlane.xlu0 %968  ;;  %v945_v32 = vpop.xlane.xlu1 %944 }
 0x1f6   : > { %v1570_v52 = vrot.slane %v945_v32, %v4174_v2  ;;  %v1609_v23 = vrot.slane %v4458_v55, %v4090_v50 }
 0x1f8   : > { %1106 = vadd.xlane.f32.xlu0 %v1105_v48  ;;  %1151 = vadd.xlane.f32.xlu1 %v1150_v16 }
 0x1f9   : > { %v4466_v22 = vpop.xlane.xlu0 %971  ;;  %v4468_v40 = vpop.xlane.xlu1 %1034 }
 0x1fc   : > { %1196 = vadd.xlane.f32.xlu0 %v1195_v61  ;;  %1154 = vadd.xlane.f32.xlu1 %v1153_v56  ;;  %v1566_v61 = vsel %vm1393_vm8, %v1565_v11, %v1561_v39 }
 0x1fd   : > { %v4474_v4 = vpop.xlane.xlu0 %974  ;;  %v948_v15 = vpop.xlane.xlu1 %947  ;;  %v1571_v8 = vsel %vm1400_vm9, %v1570_v52, %v1566_v61 }
 0x1fe   : > { %v1575_v62 = vrot.slane %v948_v15, %v4177_v3  ;;  %v1619_v55 = vrot.slane %v4474_v4, %v4120_v20 }
 0x200   : > { %1199 = vadd.xlane.f32.xlu0 %v1198_v5  ;;  %1202 = vadd.xlane.f32.xlu1 %v1201_v9  ;;  %v1576_v32 = vsel %vm1407_vm10, %v1575_v62, %v1571_v8 }
 0x201   : > { %v4478_v17 = vpop.xlane.xlu1 %1037  ;;  %v4480_v12 = vpop.xlane.xlu0 %1061 }
 0x205   : > { %v951_v21 = vpop.xlane.xlu1 %950  ;;  %v4482_v60 = vpop.xlane.xlu0 %1109 }
 0x206   : > { %v1580_v53 = vrot.slane %v951_v21, %v4182_v6 }
 0x208   : > { %v1581_v33 = vsel %vm1414_vm11, %v1580_v53, %v1576_v32 }
 0x209   : > { %v4484_v30 = vpop.xlane.xlu1 %1040  ;;  %v4486_v43 = vpop.xlane.xlu0 %1115 }
 0x20a   : > { %5549 = vst [vmem:[#allocation12_spill] sm:$0xff] %v4486_v43 }
 0x20d   : > { %v954_v47 = vpop.xlane.xlu1 %953  ;;  %v4488_v34 = vpop.xlane.xlu0 %983 }
 0x20e   : > { %v1585_v56 = vrot.slane %v954_v47, %v4188_v14 }
 0x210   : > { %v1586_v5 = vsel %vm1421_vm12, %v1585_v56, %v1581_v33 }
 0x211   : > { %v4490_v27 = vpop.xlane.xlu1 %1043  ;;  %v4492_v10 = vpop.xlane.xlu0 %1073 }
 0x215   : > { %v957_v41 = vpop.xlane.xlu1 %956  ;;  %v4494_v35 = vpop.xlane.xlu0 %986 }
 0x216   : > { %v1590_v1 = vrot.slane %v957_v41, %v4206_v31 }
 0x218   : > { %v1591_v47 = vsel %vm1428_vm13, %v1590_v1, %v1586_v5 }
 0x219   : > { %v4496_v42 = vpop.xlane.xlu1 %1046  ;;  %v4498_v45 = vpop.xlane.xlu0 %1076 }
 0x21d   : > { %v960_v48 = vpop.xlane.xlu1 %959  ;;  %v4504_v16 = vpop.xlane.xlu0 %989 }
 0x21e   : > { %v1595_v15 = vrot.slane %v960_v48, %v4224_v59 }
 0x220   : > { %v1596_v11 = vsel %vm1435_vm14, %v1595_v15, %v1591_v47 }
 0x221   : > { %v4513_v36 = vpop.xlane.xlu1 %1049  ;;  %v4515_v63 = vpop.xlane.xlu0 %1079 }
 0x225   : > { %v963_v9 = vpop.xlane.xlu1 %962  ;;  %v993_v21 = vpop.xlane.xlu0 %992 }
 0x226   : > { %v1600_v46 = vrot.slane %v963_v9, %v4238_v13 }
 0x228   : > { %v1601_v52 = vsel %vm1442_vm15, %v1600_v46, %v1596_v11 }
 0x229   : > { %v4529_v41 = vsel %vm5535_vm6, %v1601_v52, %v4436_v24  ;;  %v4531_v48 = vpop.xlane.xlu1 %1052  ;;  %v4533_v62 = vpop.xlane.xlu0 %1082  ;;  %vm5556_vm6 = vcmask 458112  }
 0x22d   : > { %v966_v39 = vpop.xlane.xlu1 %965  ;;  %v996_v53 = vpop.xlane.xlu0 %995 }
 0x22e   : > { %v1605_v7 = vrot.slane %v966_v39, %v4087_v49 }
 0x230   : > { %v1610_v38 = vsel %vm1344_vm1, %v1609_v23, %v1605_v7 }
 0x231   : > { %v4535_v61 = vpop.xlane.xlu1 %1064  ;;  %v4537_v56 = vpop.xlane.xlu0 %1085 }
 0x232   : > { %5550 = vst [vmem:[#allocation13_spill] sm:$0xff] %v4537_v56 }
 0x235   : > { %v978_v8 = vpop.xlane.xlu1 %977  ;;  %v4539_v1 = vpop.xlane.xlu0 %998 }
 0x236   : > { %v1624_v56 = vrot.slane %v978_v8, %v4125_v19  ;;  %v1634_v8 = vrot.slane %v4488_v34, %v4142_v37  ;;  %v1708_v34 = vrot.slane %v4422_v57, %v4131_v25 }
 0x238   : > { %v1709_v57 = vsel %vm1372_vm5, %v1708_v34, %v4381_v54  ;;  %v1659_v34 = vrot.slane %v4539_v1, %v4182_v6 }
 0x239   : > { %v4541_v32 = vpop.xlane.xlu1 %1067  ;;  %v4543_v15 = vpop.xlane.xlu0 %1088 }
 0x23a   : > { %5551 = vst [vmem:[#allocation14_spill] sm:$0xff] %v4543_v15 }
 0x23d   : > { %v4545_v33 = vpop.xlane.xlu1 %1112  ;;  %v4547_v24 = vpop.xlane.xlu0 %1001 }
 0x241   : > { %v981_v5 = vpop.xlane.xlu1 %980  ;;  %v4549_v9 = vpop.xlane.xlu0 %1091 }
 0x242   : > { %5552 = vst [vmem:[#allocation15_spill] sm:$0xff] %v4549_v9  ;;  %v1614_v9 = vrot.slane %v4466_v22, %v4105_v0  ;;  %v1629_v39 = vrot.slane %v981_v5, %v4131_v25 }
 0x244   : > { %v1615_v15 = vsel %vm1351_vm2, %v1614_v9, %v1610_v38 }
 0x245   : > { %v4551_v47 = vpop.xlane.xlu1 %1070  ;;  %v4553_v46 = vpop.xlane.xlu0 %1004 }
 0x249   : > { %v4555_v11 = vpop.xlane.xlu1 %1118  ;;  %v4557_v52 = vpop.xlane.xlu0 %1094 }
 0x24a   : > { %5553 = vst [vmem:[#allocation16_spill] sm:$0xff] %v4557_v52 }
 0x24d   : > { %v4562_v26 = vpop.xlane.xlu1 %1121  ;;  %v4564_v18 = vpop.xlane.xlu0 %1007 }
 0x24e   : > { %5554 = vst [vmem:[#allocation17_spill] sm:$0xff] %v4562_v26  ;;  %v1620_v26 = vsel %vm1358_vm3, %v1619_v55, %v1615_v15  ;;  %v1639_v15 = vrot.slane %v4494_v35, %v4165_v58  ;;  %v1718_v35 = vrot.slane %v4468_v40, %v4165_v58  ;;  %v1733_v40 = vrot.slane %v4490_v27, %v4177_v3 }
 0x24f   : > { %v1625_v7 = vsel %vm1365_vm4, %v1624_v56, %v1620_v26  ;;  %v1644_v56 = vrot.slane %v4504_v16, %v4158_v51 }
 0x250   : > { %v1630_v38 = vsel %vm1372_vm5, %v1629_v39, %v1625_v7  ;;  %v1713_v7 = vrot.slane %v4450_v29, %v4142_v37  ;;  %v1728_v29 = vrot.slane %v4484_v30, %v4174_v2 }
 0x251   : > { %v4571_v43 = vpop.xlane.xlu1 %1124  ;;  %v4573_v52 = vpop.xlane.xlu0 %1097  ;;  %v1635_v9 = vsel %vm5556_vm6, %v1634_v8, %v1630_v38  ;;  %v1649_v38 = vrot.slane %v993_v21, %v4174_v2  ;;  %v1654_v21 = vrot.slane %v996_v53, %v4177_v3  ;;  %v1743_v53 = vrot.slane %v4513_v36, %v4188_v14 }
 0x252   : > { %5555 = vst [vmem:[#allocation18_spill] sm:$0xff] %v4573_v52  ;;  %v1640_v26 = vsel %vm1386_vm7, %v1639_v15, %v1635_v9  ;;  %v1723_v9 = vrot.slane %v4478_v17, %v4158_v51  ;;  %v1738_v17 = vrot.slane %v4496_v42, %v4182_v6  ;;  %v1664_v36 = vrot.slane %v4547_v24, %v4188_v14 }
 0x253   : > { %v1645_v39 = vsel %vm1393_vm8, %v1644_v56, %v1640_v26  ;;  %v1714_v26 = vsel %vm5556_vm6, %v1713_v7, %v1709_v57  ;;  %v1748_v7 = vrot.slane %v4531_v48, %v4206_v31  ;;  %v1674_v24 = vrot.slane %v4564_v18, %v4224_v59 }
 0x254   : > { %v1650_v15 = vsel %vm1400_vm9, %v1649_v38, %v1645_v39  ;;  %v1719_v56 = vsel %vm1386_vm7, %v1718_v35, %v1714_v26  ;;  %vm5537_vm6 = vcmask 1043459   ;;  %v1758_v18 = vrot.slane %v4448_v44, %v4238_v13 }
 0x255   : > { %v4580_v23 = vpop.xlane.xlu1 %1127  ;;  %v4582_v22 = vpop.xlane.xlu0 %1145  ;;  %v1655_v39 = vsel %vm1407_vm10, %v1654_v21, %v1650_v15  ;;  %v1724_v30 = vsel %vm1393_vm8, %v1723_v9, %v1719_v56  ;;  %v1767_v9 = vrot.slane %v4535_v61, %v4090_v50  ;;  %v1772_v21 = vrot.slane %v4541_v32, %v4105_v0 }
 0x256   : > { %v1729_v27 = vsel %vm1400_vm9, %v1728_v29, %v1724_v30  ;;  %v1660_v35 = vsel %vm1414_vm11, %v1659_v34, %v1655_v39  ;;  %v1763_v29 = vrot.slane %v4480_v12, %v4087_v49  ;;  %v1777_v61 = vrot.slane %v4551_v47, %v4120_v20 }
 0x257   : > { %v1734_v42 = vsel %vm1407_vm10, %v1733_v40, %v1729_v27  ;;  %v1665_v40 = vsel %vm1421_vm12, %v1664_v36, %v1660_v35  ;;  %v1753_v56 = vrot.slane %v4438_v28, %v4224_v59  ;;  %v1669_v12 = vrot.slane %v4553_v46, %v4206_v31 }
 0x258   : > { %v1739_v15 = vsel %vm1414_vm11, %v1738_v17, %v1734_v42  ;;  %v1768_v17 = vsel %vm1344_vm1, %v1767_v9, %v1763_v29  ;;  %v1782_v27 = vrot.slane %v4492_v10, %v4125_v19  ;;  %v1787_v29 = vrot.slane %v4498_v45, %v4131_v25 }
 0x259   : > { %v4588_v52 = vpop.xlane.xlu1 %1130  ;;  %v4590_v4 = vpop.xlane.xlu0 %1148  ;;  %v1744_v48 = vsel %vm1421_vm12, %v1743_v53, %v1739_v15  ;;  %v1773_v47 = vsel %vm1351_vm2, %v1772_v21, %v1768_v17  ;;  %v1670_v53 = vsel %vm1428_vm13, %v1669_v12, %v1665_v40  ;;  %v1846_v10 = vrot.slane %v4545_v33, %v4090_v50  ;;  %v5558_v17 = vld [vmem:[#allocation12_spill] sm:$0xff] }
 0x25a   : > { %v1749_v26 = vsel %vm1428_vm13, %v1748_v7, %v1744_v48  ;;  %v1778_v28 = vsel %vm1358_vm3, %v1777_v61, %v1773_v47  ;;  %v1675_v46 = vsel %vm1435_vm14, %v1674_v24, %v1670_v53  ;;  %v1842_v61 = vrot.slane %v4482_v60, %v4087_v49 }
 0x25b   : > { %v1754_v30 = vsel %vm1435_vm14, %v1753_v56, %v1749_v26  ;;  %v1783_v44 = vsel %vm1365_vm4, %v1782_v27, %v1778_v28  ;;  %v1797_v24 = vrot.slane %v4533_v62, %v4165_v58  ;;  %v1856_v33 = vrot.slane %v4555_v11, %v4120_v20  ;;  %v5560_v62 = vld [vmem:[#allocation14_spill] sm:$0xff]  ;;  %v5561_v11 = vld [vmem:[#allocation17_spill] sm:$0xff] }
 0x25c   : > { %v1759_v42 = vsel %vm1442_vm15, %v1758_v18, %v1754_v30  ;;  %v1788_v48 = vsel %vm1372_vm5, %v1787_v29, %v1783_v44  ;;  %v1847_v45 = vsel %vm1344_vm1, %v1846_v10, %v1842_v61  ;;  %v1807_v53 = vrot.slane %v5560_v62, %v4174_v2  ;;  %v5566_v62 = vld [vmem:[#allocation18_spill] sm:$0xff] }
 0x25d   : > { %v4597_v5 = vpop.xlane.xlu1 %1133  ;;  %v4599_v55 = vpop.xlane.xlu0 %1160  ;;  %v1861_v18 = vrot.slane %v5561_v11, %v4125_v19  ;;  %v1866_v27 = vrot.slane %v4571_v43, %v4131_v25  ;;  %v1876_v43 = vrot.slane %v4588_v52, %v4165_v58 }
 0x25e   : > { %v1925_v60 = vrot.slane %v4599_v55, %v4090_v50 }
 0x261   : > { %v4609_v8 = vpop.xlane.xlu1 %1136  ;;  %v4611_v16 = vpop.xlane.xlu0 %1163 }
 0x262   : > { %v1930_v28 = vrot.slane %v4611_v16, %v4105_v0 }
 0x265   : > { %v4628_v38 = vpop.xlane.xlu1 %1139  ;;  %v4630_v54 = vpop.xlane.xlu0 %1166 }
 0x266   : > { %v1935_v50 = vrot.slane %v4630_v54, %v4120_v20 }
 0x269   : > { %v4647_v57 = vpop.xlane.xlu1 %1142  ;;  %v4649_v1 = vpop.xlane.xlu0 %1169 }
 0x26d   : > { %v1011_v32 = vpop.xlane.xlu1 %1010  ;;  %v1173_v39 = vpop.xlane.xlu0 %1172 }
 0x26e   : > { %v1679_v34 = vrot.slane %v1011_v32, %v4238_v13  ;;  %v1851_v32 = vrot.slane %v5558_v17, %v4105_v0  ;;  %v1945_v20 = vrot.slane %v1173_v39, %v4131_v25 }
 0x270   : > { %v1680_v7 = vsel %vm1442_vm15, %v1679_v34, %v1675_v46  ;;  %v1852_v46 = vsel %vm1351_vm2, %v1851_v32, %v1847_v45 }
 0x271   : > { %v2002_v35 = vsel %vm5537_vm6, %v1680_v7, %v4529_v41  ;;  %v4681_v15 = vpop.xlane.xlu1 %1100  ;;  %v1176_v9 = vpop.xlane.xlu0 %1175  ;;  %v1792_v41 = vrot.slane %v4515_v63, %v4142_v37  ;;  %vm5557_vm6 = vcmask 458112   ;;  %v5559_v63 = vld [vmem:[#allocation13_spill] sm:$0xff]  ;;  %v1857_v55 = vsel %vm1358_vm3, %v1856_v33, %v1852_v46 }
 0x272   : > { %v4685_v36 = vsel %vm2003_vm0, %v1759_v42, %v2002_v35  ;;  %v1802_v30 = vrot.slane %v5559_v63, %v4158_v51  ;;  %v1871_v7 = vrot.slane %v4580_v23, %v4142_v37  ;;  %v1940_v42 = vrot.slane %v4649_v1, %v4125_v19 }
 0x273   : > { %v1793_v40 = vsel %vm5557_vm6, %v1792_v41, %v1788_v48  ;;  %v1862_v29 = vsel %vm1365_vm4, %v1861_v18, %v1857_v55  ;;  %v1881_v23 = vrot.slane %v4597_v5, %v4158_v51  ;;  %v1950_v19 = vrot.slane %v1176_v9, %v4142_v37 }
 0x274   : > { %v1798_v34 = vsel %vm1386_vm7, %v1797_v24, %v1793_v40  ;;  %v1867_v10 = vsel %vm1372_vm5, %v1866_v27, %v1862_v29  ;;  %v1886_v48 = vrot.slane %v4609_v8, %v4174_v2  ;;  %v1891_v41 = vrot.slane %v4628_v38, %v4177_v3 }
 0x275   : > { %v4692_v21 = vpop.xlane.xlu1 %1103  ;;  %v1179_v26 = vpop.xlane.xlu0 %1178  ;;  %v1803_v44 = vsel %vm1393_vm8, %v1802_v30, %v1798_v34  ;;  %v1901_v34 = vrot.slane %v4582_v22, %v4188_v14 }
 0x276   : > { %v1955_v52 = vrot.slane %v1179_v26, %v4165_v58  ;;  %v1808_v40 = vsel %vm1400_vm9, %v1807_v53, %v1803_v44  ;;  %v1896_v58 = vrot.slane %v4647_v57, %v4182_v6  ;;  %v5564_v26 = vld [vmem:[#allocation15_spill] sm:$0xff]  ;;  %v1822_v53 = vrot.slane %v5566_v62, %v4188_v14 }
 0x277   : > { %v1812_v45 = vrot.slane %v5564_v26, %v4177_v3  ;;  %v1832_v18 = vrot.slane %v4692_v21, %v4224_v59 }
 0x279   : > { %v1182_v56 = vpop.xlane.xlu0 %1181  ;;  %v1158_v12 = vpop.xlane.xlu1 %1157  ;;  %v1813_v17 = vsel %vm1407_vm10, %v1812_v45, %v1808_v40  ;;  %v5568_v40 = vld [vmem:[#allocation8_spill] sm:$0xff] }
 0x27a   : > { %v1921_v47 = vrot.slane %v1158_v12, %v4087_v49  ;;  %v1960_v5 = vrot.slane %v1182_v56, %v4158_v51 }
 0x27c   : > { %v1926_v49 = vsel %vm1344_vm1, %v1925_v60, %v1921_v47  ;;  %vm5562_vm1 = vmmov %vm5557_vm6  ;;  %v5565_v60 = vld [vmem:[#allocation16_spill] sm:$0xff] }
 0x27d   : > { %v1931_v0 = vsel %vm1351_vm2, %v1930_v28, %v1926_v49  ;;  %v1185_v16 = vpop.xlane.xlu0 %1184  ;;  %v1191_v35 = vpop.xlane.xlu1 %1190  ;;  %v1872_v39 = vsel %vm5562_vm1, %v1871_v7, %v1867_v10  ;;  %vm5563_vm2 = vmmov %vm5562_vm1  ;;  %v1817_v47 = vrot.slane %v5565_v60, %v4182_v6  ;;  %v5567_v10 = vld [vmem:[#allocation11_spill] sm:$0xff] }
 0x27e   : > { %v1936_v54 = vsel %vm1358_vm3, %v1935_v50, %v1931_v0  ;;  %v1877_v24 = vsel %vm1386_vm7, %v1876_v43, %v1872_v39  ;;  %v1965_v33 = vrot.slane %v1185_v16, %v4174_v2  ;;  %v1975_v27 = vrot.slane %v1191_v35, %v4182_v6 }
 0x27f   : > { %v1941_v1 = vsel %vm1365_vm4, %v1940_v42, %v1936_v54  ;;  %v1882_v38 = vsel %vm1393_vm8, %v1881_v23, %v1877_v24  ;;  %v1818_v11 = vsel %vm1414_vm11, %v1817_v47, %v1813_v17  ;;  %vm2005_vm3 = vcmask 1045509  }
 0x280   : > { %v1946_v25 = vsel %vm1372_vm5, %v1945_v20, %v1941_v1  ;;  %v1887_v56 = vsel %vm1400_vm9, %v1886_v48, %v1882_v38  ;;  %v1823_v7 = vsel %vm1421_vm12, %v1822_v53, %v1818_v11  ;;  %vm2007_vm4 = vcmask 1046534  }
 0x281   : > { %v1951_v37 = vsel %vm5563_vm2, %v1950_v19, %v1946_v25  ;;  %v1188_v9 = vpop.xlane.xlu0 %1187  ;;  %v1194_v61 = vpop.xlane.xlu1 %1193  ;;  %v1892_v32 = vsel %vm1407_vm10, %v1891_v41, %v1887_v56  ;;  %vm2009_vm5 = vcmask 1047559   ;;  %v2092_v24 = vsub.s32 1, %v5568_v40 }
 0x282   : > { %v1956_v8 = vsel %vm1386_vm7, %v1955_v52, %v1951_v37  ;;  %v1970_v12 = vrot.slane %v1188_v9, %v4177_v3  ;;  %v1897_v2 = vsel %vm1414_vm11, %v1896_v58, %v1892_v32  ;;  %v1827_v3 = vrot.slane %v4681_v15, %v4206_v31 }
 0x283   : > { %v1961_v51 = vsel %vm1393_vm8, %v1960_v5, %v1956_v8  ;;  %v1902_v46 = vsel %vm1421_vm12, %v1901_v34, %v1897_v2  ;;  %v1906_v15 = vrot.slane %v4590_v4, %v4206_v31  ;;  %v1980_v35 = vrot.slane %v1194_v61, %v4188_v14  ;;  %v5569_v8 = vld [vmem:[#allocation10_spill] sm:$0xff] }
 0x284   : > { %v1966_v57 = vsel %vm1400_vm9, %v1965_v33, %v1961_v51  ;;  %v1828_v21 = vsel %vm1428_vm13, %v1827_v3, %v1823_v7  ;;  %vm1206_vm7 = vcmp.lt.s32.totalorder %v5567_v10, 16  ;;  %v2159_v58 = vsub.s32 2, %v5568_v40  ;;  %v3430_v10 = vld [vmem:[%s3811_s24 + $0x88] sm:$0xff] }
 0x285   : > { %v1107_v63 = vpop.xlane.xlu0 %1106  ;;  %v1152_v30 = vpop.xlane.xlu1 %1151  ;;  %v1971_v28 = vsel %vm1407_vm10, %v1970_v12, %v1966_v57  ;;  %v1833_v6 = vsel %vm1435_vm14, %v1832_v18, %v1828_v21  ;;  %v1907_v44 = vsel %vm1428_vm13, %v1906_v15, %v1902_v46  ;;  %v2226_v51 = vsub.s32 3, %v5568_v40 }
 0x286   : > { %v1837_v50 = vrot.slane %v1107_v63, %v4238_v13  ;;  %v1911_v49 = vrot.slane %v1152_v30, %v4224_v59  ;;  %v1976_v0 = vsel %vm1414_vm11, %v1975_v27, %v1971_v28  ;;  %v2293_v56 = vsub.s32 4, %v5568_v40 }
 0x287   : > { %v1981_v29 = vsel %vm1421_vm12, %v1980_v35, %v1976_v0  ;;  %v2360_v17 = vsub.s32 5, %v5568_v40  ;;  %v2427_v57 = vsub.s32 6, %v5568_v40  ;;  %v2494_v30 = vsub.s32 7, %v5568_v40 }
 0x288   : > { %v1838_v43 = vsel %vm1442_vm15, %v1837_v50, %v1833_v6  ;;  %v1912_v20 = vsel %vm1435_vm14, %v1911_v49, %v1907_v44  ;;  %vm5570_vm8 = vcmask 261120  }
 0x289   : > { %v1197_v55 = vpop.xlane.xlu0 %1196  ;;  %v1155_v22 = vpop.xlane.xlu1 %1154  ;;  %v2006_v48 = vsel %vm2005_vm3, %v1838_v43, %v4685_v36  ;;  %vm5571_vm9 = vmmov %vm5570_vm8 }
 0x28a   : > { %v1916_v42 = vrot.slane %v1155_v22, %v4238_v13  ;;  %v1985_v16 = vrot.slane %v1197_v55, %v4206_v31  ;;  %vm5572_vm10 = vmmov %vm5570_vm8 }
 0x28b   : > { %vm5573_vm11 = vmmov %vm5570_vm8 }
 0x28c   : > { %v1917_v23 = vsel %vm1442_vm15, %v1916_v42, %v1912_v20  ;;  %v1986_v14 = vsel %vm1428_vm13, %v1985_v16, %v1981_v29  ;;  %v3428_v29 = vld [vmem:[%s3811_s24 + $0x8] sm:$0xff]  ;;  %vm5574_vm12 = vmmov %vm5570_vm8 }
 0x28d   : > { %v1200_v54 = vpop.xlane.xlu0 %1199  ;;  %v1203_v4 = vpop.xlane.xlu1 %1202  ;;  %v2008_v25 = vsel %vm2007_vm4, %v1917_v23, %v2006_v48  ;;  %vm5575_vm13 = vmmov %vm5570_vm8 }
 0x28e   : > { %v1990_v31 = vrot.slane %v1200_v54, %v4224_v59  ;;  %v1995_v19 = vrot.slane %v1203_v4, %v4238_v13  ;;  %vm5578_vm6 = vmmov %vm5570_vm8 }
 0x28f   : > { %vm5579_vm1 = vmmov %vm5578_vm6 }
 0x290   : > { %v1991_v1 = vsel %vm1435_vm14, %v1990_v31, %v1986_v14  ;;  %v3429_v31 = vld [vmem:[%s3811_s24] sm:$0xff]  ;;  %vm5576_vm14 = vmmov %vm5570_vm8 }
 0x291   : > { %v1996_v52 = vsel %vm1442_vm15, %v1995_v19, %v1991_v1  ;;  %vm5577_vm15 = vmmov %vm5570_vm8 }
 0x292   : > { %v2010_v39 = vsel %vm2009_vm5, %v1996_v52, %v2008_v25  ;;  %vm5580_vm2 = vmmov %vm5579_vm1 }
 0x293   : > { %v2012_v59 = vsel %vm1206_vm7, %v2010_v39, -1e+30  ;;  %v3431_v39 = vld [vmem:[%s3811_s24 + $0x80] sm:$0xff]  ;;  %vm5581_vm7 = vmmov %vm5579_vm1 }
 0x294   : > { %2013 = vmax.xlane.f32.xlu0 %v2012_v59 }
 0x321   : > { %v2014_v13 = vpop.xlane.xlu0 %2013 }
 0x322   : > { %v2015_v41 = vsub.f32 %v2012_v59, %v2014_v13  ;;  %v3432_v13 = vld [vmem:[%s3811_s24 + $0x10] sm:$0xff] }
 0x324   : > { %v2016_v5 = vmul.f32 1.442695, %v2015_v41 }
 0x326   : > { %3422 = vpow2.f32 %v2016_v5  ;;  %v3433_v5 = vld [vmem:[%s3811_s24 + $0x108] sm:$0xff] }
 0x330   : > { %v3423_v37 = vpop.eup %3422 }
 0x331   : > { %2018 = vadd.xlane.f32.xlu1 %v3423_v37 }
 0x3be   : > { %v2019_v9 = vpop.xlane.xlu1 %2018 }
 0x3bf   : > { %3424 = vrcp.f32 %v2019_v9  ;;  %v3434_v9 = vld [vmem:[%s3811_s24 + $0x100] sm:$0xff] }
 0x3c9   : > { %v3425_v36 = vpop.eup %3424 }
 0x3ca   : > { %v2021_v61 = vmul.f32 %v3425_v36, %v3423_v37 }
 0x3cc   : > { %v4813_v26 = vrot.slane %v2021_v61, %v5569_v8  ;;  %2022 = vst [vmem:[%s4817_s29] sm:$0xff] %v2021_v61  ;;  %v4822_v45 = vrot.slane %v2021_v61, %v2092_v24  ;;  %v4824_v38 = vrot.slane %v2021_v61, %v2159_v58  ;;  %v4831_v33 = vrot.slane %v2021_v61, %v2226_v51  ;;  %v3436_v51 = vld [vmem:[%s3811_s24 + $0x110] sm:$0xff] }
 0x3cd   : > { %v4838_v12 = vrot.slane %v2021_v61, %v2293_v56  ;;  %v4845_v32 = vrot.slane %v2021_v61, %v2360_v17  ;;  %v4852_v63 = vrot.slane %v2021_v61, %v2427_v57  ;;  %v4861_v60 = vrot.slane %v2021_v61, %v2494_v30  ;;  %v3435_v61 = vld [vmem:[%s3811_s24 + $0x90] sm:$0xff]  ;;  %v3437_v57 = vld [vmem:[%s3811_s24 + $0x180] sm:$0xff] }
 0x3ce   : > { %2032 = vbcast.lane.b32.xlu1 %v4813_v26, 264  ;;  %2028 = vbcast.lane.b32.xlu0 %v4813_v26, 256 }
 0x3d2   : > { %2095 = vbcast.lane.b32.xlu1 %v4822_v45, 256  ;;  %2162 = vbcast.lane.b32.xlu0 %v4824_v38, 256 }
 0x3d6   : > { %2099 = vbcast.lane.b32.xlu1 %v4822_v45, 264  ;;  %2036 = vbcast.lane.b32.xlu0 %v4813_v26, 272 }
 0x3da   : > { %2166 = vbcast.lane.b32.xlu1 %v4824_v38, 264  ;;  %2229 = vbcast.lane.b32.xlu0 %v4831_v33, 256 }
 0x3de   : > { %2103 = vbcast.lane.b32.xlu1 %v4822_v45, 272  ;;  %2170 = vbcast.lane.b32.xlu0 %v4824_v38, 272 }
 0x3e2   : > { %2233 = vbcast.lane.b32.xlu1 %v4831_v33, 264  ;;  %2300 = vbcast.lane.b32.xlu0 %v4838_v12, 264 }
 0x3e6   : > { %2296 = vbcast.lane.b32.xlu1 %v4838_v12, 256  ;;  %2107 = vbcast.lane.b32.xlu0 %v4822_v45, 280 }
 0x3ea   : > { %2040 = vbcast.lane.b32.xlu1 %v4813_v26, 280  ;;  %2363 = vbcast.lane.b32.xlu0 %v4845_v32, 256 }
 0x3ee   : > { %2237 = vbcast.lane.b32.xlu1 %v4831_v33, 272  ;;  %2174 = vbcast.lane.b32.xlu0 %v4824_v38, 280 }
 0x3f2   : > { %2367 = vbcast.lane.b32.xlu1 %v4845_v32, 264  ;;  %2430 = vbcast.lane.b32.xlu0 %v4852_v63, 256 }
 0x3f6   : > { %2304 = vbcast.lane.b32.xlu1 %v4838_v12, 272  ;;  %2044 = vbcast.lane.b32.xlu0 %v4813_v26, 288 }
 0x3fa   : > { %2434 = vbcast.lane.b32.xlu1 %v4852_v63, 264  ;;  %2241 = vbcast.lane.b32.xlu0 %v4831_v33, 280 }
 0x3fe   : > { %2111 = vbcast.lane.b32.xlu1 %v4822_v45, 288  ;;  %2497 = vbcast.lane.b32.xlu0 %v4861_v60, 256 }
 0x402   : > { %2371 = vbcast.lane.b32.xlu1 %v4845_v32, 272  ;;  %2178 = vbcast.lane.b32.xlu0 %v4824_v38, 288 }
 0x406   : > { %2501 = vbcast.lane.b32.xlu1 %v4861_v60, 264  ;;  %2438 = vbcast.lane.b32.xlu0 %v4852_v63, 272 }
 0x40a   : > { %2308 = vbcast.lane.b32.xlu1 %v4838_v12, 280  ;;  %2115 = vbcast.lane.b32.xlu0 %v4822_v45, 296 }
 0x40e   : > { %2048 = vbcast.lane.b32.xlu1 %v4813_v26, 296  ;;  %2375 = vbcast.lane.b32.xlu0 %v4845_v32, 280 }
 0x412   : > { %2245 = vbcast.lane.b32.xlu1 %v4831_v33, 288  ;;  %2182 = vbcast.lane.b32.xlu0 %v4824_v38, 296 }
 0x416   : > { %2505 = vbcast.lane.b32.xlu1 %v4861_v60, 272  ;;  %2442 = vbcast.lane.b32.xlu0 %v4852_v63, 280 }
 0x41a   : > { %2312 = vbcast.lane.b32.xlu1 %v4838_v12, 288  ;;  %2119 = vbcast.lane.b32.xlu0 %v4822_v45, 304 }
 0x41e   : > { %2052 = vbcast.lane.b32.xlu1 %v4813_v26, 304  ;;  %2379 = vbcast.lane.b32.xlu0 %v4845_v32, 288 }
 0x422   : > { %2249 = vbcast.lane.b32.xlu1 %v4831_v33, 296  ;;  %2186 = vbcast.lane.b32.xlu0 %v4824_v38, 304 }
 0x426   : > { %2509 = vbcast.lane.b32.xlu1 %v4861_v60, 280  ;;  %2446 = vbcast.lane.b32.xlu0 %v4852_v63, 288 }
 0x42a   : > { %2316 = vbcast.lane.b32.xlu1 %v4838_v12, 296  ;;  %2123 = vbcast.lane.b32.xlu0 %v4822_v45, 312 }
 0x42e   : > { %2056 = vbcast.lane.b32.xlu1 %v4813_v26, 312  ;;  %2383 = vbcast.lane.b32.xlu0 %v4845_v32, 296 }
 0x432   : > { %2253 = vbcast.lane.b32.xlu1 %v4831_v33, 304  ;;  %2190 = vbcast.lane.b32.xlu0 %v4824_v38, 312 }
 0x436   : > { %2513 = vbcast.lane.b32.xlu1 %v4861_v60, 288  ;;  %2450 = vbcast.lane.b32.xlu0 %v4852_v63, 296 }
 0x43a   : > { %2320 = vbcast.lane.b32.xlu1 %v4838_v12, 304  ;;  %2127 = vbcast.lane.b32.xlu0 %v4822_v45, 320 }
 0x43e   : > { %2060 = vbcast.lane.b32.xlu1 %v4813_v26, 320  ;;  %2387 = vbcast.lane.b32.xlu0 %v4845_v32, 304 }
 0x440   : > { %v2033_v47 = vpop.permute.xlu1 %2032  ;;  %v2029_v62 = vpop.permute.xlu0 %2028 }
 0x441   : > { %v2560_v23 = vmul.f32 %v3428_v29, %v2033_v47  ;;  %v2559_v19 = vmul.f32 %v3429_v31, %v2029_v62 }
 0x442   : > { %2257 = vbcast.lane.b32.xlu1 %v4831_v33, 312  ;;  %2194 = vbcast.lane.b32.xlu0 %v4824_v38, 320 }
 0x443   : > { %v2688_v52 = vsel %vm5570_vm8, %v2560_v23, 0.0  ;;  %v2687_v25 = vsel %vm5571_vm9, %v2559_v19, 0.0  ;;  %v3440_v19 = vld [vmem:[%s3811_s24 + $0x98] sm:$0xff]  ;;  %vm5582_vm8 = vmmov %vm5579_vm1 }
 0x444   : > { %v4899_v53 = vpop.permute.xlu1 %2095  ;;  %v4901_v2 = vpop.permute.xlu0 %2162  ;;  %v2689_v17 = vadd.f32 %v2688_v52, %v2687_v25  ;;  %v3442_v52 = vld [vmem:[%s3811_s24 + $0x308] sm:$0xff]  ;;  %vm5583_vm9 = vmmov %vm5579_vm1 }
 0x445   : > { %v2575_v59 = vmul.f32 %v3431_v39, %v4899_v53  ;;  %v2591_v36 = vmul.f32 %v3434_v9, %v4901_v2  ;;  %v3438_v2 = vld [vmem:[%s3811_s24 + $0x188] sm:$0xff]  ;;  %v3446_v9 = vld [vmem:[%s3811_s24 + $0x310] sm:$0xff] }
 0x446   : > { %2517 = vbcast.lane.b32.xlu1 %v4861_v60, 296  ;;  %2454 = vbcast.lane.b32.xlu0 %v4852_v63, 304 }
 0x447   : > { %v2724_v47 = vsel %vm5573_vm11, %v2575_v59, 0.0  ;;  %vm5585_vm11 = vmmov %vm5579_vm1 }
 0x448   : > { %v2100_v34 = vpop.permute.xlu1 %2099  ;;  %v2037_v3 = vpop.permute.xlu0 %2036 }
 0x449   : > { %v2576_v48 = vmul.f32 %v3430_v10, %v2100_v34  ;;  %v2561_v41 = vmul.f32 %v3432_v13, %v2037_v3  ;;  %v2761_v3 = vsel %vm5576_vm14, %v2591_v36, 0.0  ;;  %v3441_v10 = vld [vmem:[%s3811_s24 + $0x18] sm:$0xff]  ;;  %v3443_v13 = vld [vmem:[%s3811_s24 + $0x190] sm:$0xff]  ;;  %vm5588_vm14 = vmmov %vm5579_vm1 }
 0x44a   : > { %2324 = vbcast.lane.b32.xlu1 %v4838_v12, 312  ;;  %2131 = vbcast.lane.b32.xlu0 %v4822_v45, 328 }
 0x44b   : > { %v2725_v8 = vsel %vm5572_vm10, %v2576_v48, 0.0  ;;  %v2690_v62 = vsel %vm5574_vm12, %v2561_v41, 0.0  ;;  %vm5584_vm10 = vmmov %vm5579_vm1 }
 0x44c   : > { %v2167_v11 = vpop.permute.xlu1 %2166  ;;  %v4907_v18 = vpop.permute.xlu0 %2229  ;;  %v2691_v39 = vadd.f32 %v2690_v62, %v2689_v17  ;;  %v3449_v62 = vld [vmem:[%s3811_s24 + $0x200] sm:$0xff]  ;;  %vm5586_vm12 = vmmov %vm5579_vm1 }
 0x44d   : > { %v2592_v37 = vmul.f32 %v3433_v5, %v2167_v11  ;;  %v2607_v30 = vmul.f32 %v3437_v57, %v4907_v18  ;;  %v2726_v11 = vadd.f32 %v2725_v8, %v2724_v47  ;;  %v3444_v5 = vld [vmem:[%s3811_s24 + $0x118] sm:$0xff]  ;;  %v3447_v8 = vld [vmem:[%s3811_s24 + $0x288] sm:$0xff]  ;;  %v3448_v57 = vld [vmem:[%s3811_s24 + $0xa0] sm:$0xff] }
 0x44e   : > { %2064 = vbcast.lane.b32.xlu1 %v4813_v26, 328  ;;  %2391 = vbcast.lane.b32.xlu0 %v4845_v32, 312 }
 0x44f   : > { %v2762_v53 = vsel %vm5575_vm13, %v2592_v37, 0.0  ;;  %v3445_v37 = vld [vmem:[%s3811_s24 + $0x300] sm:$0xff]  ;;  %vm5587_vm13 = vmmov %vm5579_vm1 }
 0x450   : > { %v2104_v28 = vpop.permute.xlu1 %2103  ;;  %v4911_v46 = vpop.permute.xlu0 %2170  ;;  %v2763_v59 = vadd.f32 %v2762_v53, %v2761_v3 }
 0x451   : > { %v2577_v40 = vmul.f32 %v3435_v61, %v2104_v28  ;;  %v2593_v56 = vmul.f32 %v3436_v51, %v4911_v46  ;;  %v3439_v28 = vld [vmem:[%s3811_s24 + $0x208] sm:$0xff] }
 0x452   : > { %2261 = vbcast.lane.b32.xlu1 %v4831_v33, 320  ;;  %2198 = vbcast.lane.b32.xlu0 %v4824_v38, 328 }
 0x453   : > { %v2727_v18 = vsel %vm5577_vm15, %v2577_v40, 0.0  ;;  %v2764_v31 = vsel %vm5578_vm6, %v2593_v56, 0.0  ;;  %vm5589_vm15 = vmmov %vm5579_vm1 }
 0x454   : > { %v4915_v27 = vpop.permute.xlu1 %2233  ;;  %v4917_v50 = vpop.permute.xlu0 %2300  ;;  %v2728_v61 = vadd.f32 %v2727_v18, %v2726_v11  ;;  %v2765_v40 = vadd.f32 %v2764_v31, %v2763_v59  ;;  %v3451_v18 = vld [vmem:[%s3811_s24 + $0xa8] sm:$0xff]  ;;  %vm5590_vm6 = vmmov %vm5579_vm1 }
 0x455   : > { %v2608_v34 = vmul.f32 %v3438_v2, %v4915_v27  ;;  %v2624_v46 = vmul.f32 %v3439_v28, %v4917_v50  ;;  %v2798_v50 = vsel %vm5579_vm1, %v2607_v30, 0.0  ;;  %v3450_v2 = vld [vmem:[%s3811_s24 + $0x280] sm:$0xff] }
 0x456   : > { %2521 = vbcast.lane.b32.xlu1 %v4861_v60, 304  ;;  %2458 = vbcast.lane.b32.xlu0 %v4852_v63, 312 }
 0x458   : > { %v4921_v49 = vpop.permute.xlu1 %2296  ;;  %v4923_v55 = vpop.permute.xlu0 %2107 }
 0x459   : > { %v2578_v27 = vmul.f32 %v3440_v19, %v4923_v55  ;;  %v2799_v55 = vsel %vm5580_vm2, %v2608_v34, 0.0  ;;  %v2623_v53 = vmul.f32 %v3449_v62, %v4921_v49  ;;  %vm5591_vm2 = vmmov %vm5579_vm1  ;;  %v3460_v62 = vld [vmem:[%s3811_s24 + $0x210] sm:$0xff] }
 0x45a   : > { %2328 = vbcast.lane.b32.xlu1 %v4838_v12, 320  ;;  %2135 = vbcast.lane.b32.xlu0 %v4822_v45, 336  ;;  %v2800_v47 = vadd.f32 %v2799_v55, %v2798_v50 }
 0x45c   : > { %v4927_v22 = vpop.permute.xlu1 %2040  ;;  %v4929_v7 = vpop.permute.xlu0 %2363 }
 0x45d   : > { %v2562_v48 = vmul.f32 %v3441_v10, %v4927_v22  ;;  %v3452_v10 = vld [vmem:[%s3811_s24 + $0x20] sm:$0xff] }
 0x45e   : > { %2068 = vbcast.lane.b32.xlu1 %v4813_v26, 336  ;;  %2395 = vbcast.lane.b32.xlu0 %v4845_v32, 320 }
 0x460   : > { %v4933_v15 = vpop.permute.xlu1 %2237  ;;  %v4935_v42 = vpop.permute.xlu0 %2174 }
 0x461   : > { %v2609_v41 = vmul.f32 %v3443_v13, %v4933_v15  ;;  %v2594_v22 = vmul.f32 %v3444_v5, %v4935_v42  ;;  %v5025_v15 = vsel %vm5581_vm7, %v2624_v46, 0.0  ;;  %v2729_v42 = vsel %vm5582_vm8, %v2578_v27, 0.0  ;;  %v3455_v5 = vld [vmem:[%s3811_s24 + $0x28] sm:$0xff]  ;;  %vm5592_vm7 = vmmov %vm5579_vm1 }
 0x462   : > { %2265 = vbcast.lane.b32.xlu1 %v4831_v33, 328  ;;  %2202 = vbcast.lane.b32.xlu0 %v4824_v38, 336  ;;  %v2730_v28 = vadd.f32 %v2729_v42, %v2728_v61  ;;  %vm5593_vm8 = vmmov %vm5579_vm1 }
 0x463   : > { %v2801_v34 = vsel %vm5585_vm11, %v2609_v41, 0.0  ;;  %v2766_v3 = vsel %vm5586_vm12, %v2594_v22, 0.0  ;;  %vm5596_vm11 = vmmov %vm5579_vm1 }
 0x464   : > { %v4939_v21 = vpop.permute.xlu1 %2367  ;;  %v4941_v0 = vpop.permute.xlu0 %2430  ;;  %v2802_v13 = vadd.f32 %v2801_v34, %v2800_v47  ;;  %v2767_v41 = vadd.f32 %v2766_v3, %v2765_v40  ;;  %vm5597_vm12 = vmmov %vm5579_vm1 }
 0x465   : > { %v2640_v51 = vmul.f32 %v3447_v8, %v4939_v21  ;;  %v2639_v21 = vmul.f32 %v3450_v2, %v4929_v7 }
 0x466   : > { %2525 = vbcast.lane.b32.xlu1 %v4861_v60, 312  ;;  %2462 = vbcast.lane.b32.xlu0 %v4852_v63, 320 }
 0x467   : > { %v2873_v7 = vsel %vm5589_vm15, %v2640_v51, 0.0  ;;  %vm5600_vm15 = vmmov %vm5579_vm1 }
 0x468   : > { %v4945_v16 = vpop.permute.xlu1 %2304  ;;  %v4947_v6 = vpop.permute.xlu0 %2044 }
 0x46a   : > { %2332 = vbcast.lane.b32.xlu1 %v4838_v12, 328  ;;  %2139 = vbcast.lane.b32.xlu0 %v4822_v45, 344 }
 0x46c   : > { %v2435_v35 = vpop.permute.xlu1 %2434  ;;  %v4951_v44 = vpop.permute.xlu0 %2241 }
 0x46d   : > { %v2656_v25 = vmul.f32 %v3442_v52, %v2435_v35  ;;  %v2655_v35 = vmul.f32 %v3445_v37, %v4941_v0  ;;  %v2692_v0 = vsel %vm5583_vm9, %v2562_v48, 0.0  ;;  %v2563_v48 = vmul.f32 %v3452_v10, %v4947_v6  ;;  %vm5594_vm9 = vmmov %vm5579_vm1 }
 0x46e   : > { %2072 = vbcast.lane.b32.xlu1 %v4813_v26, 344  ;;  %2399 = vbcast.lane.b32.xlu0 %v4845_v32, 328  ;;  %v2693_v46 = vadd.f32 %v2692_v0, %v2691_v39  ;;  %v2872_v39 = vsel %vm5579_vm1, %v2639_v21, 0.0  ;;  %v3461_v21 = vld [vmem:[%s3811_s24 + $0x1a0] sm:$0xff] }
 0x46f   : > { %v2694_v0 = vsel %vm5593_vm8, %v2563_v48, 0.0  ;;  %v3464_v48 = vld [vmem:[%s3811_s24 + $0x30] sm:$0xff]  ;;  %vm5604_vm8 = vmmov %vm5579_vm1 }
 0x470   : > { %v4955_v43 = vpop.permute.xlu1 %2111  ;;  %v4957_v20 = vpop.permute.xlu0 %2497 }
 0x471   : > { %v2579_v30 = vmul.f32 %v3448_v57, %v4955_v43  ;;  %v2909_v43 = vsel %vm5587_vm13, %v2655_v35, 0.0  ;;  %v3459_v57 = vld [vmem:[%s3811_s24 + $0xb0] sm:$0xff]  ;;  %vm5598_vm13 = vmmov %vm5579_vm1 }
 0x472   : > { %2269 = vbcast.lane.b32.xlu1 %v4831_v33, 336  ;;  %2206 = vbcast.lane.b32.xlu0 %v4824_v38, 344 }
 0x473   : > { %v2731_v52 = vsel %vm5590_vm6, %v2579_v30, 0.0  ;;  %vm5601_vm6 = vmmov %vm5579_vm1 }
 0x474   : > { %v4961_v54 = vpop.permute.xlu1 %2371  ;;  %v4963_v4 = vpop.permute.xlu0 %2178  ;;  %v2732_v40 = vadd.f32 %v2731_v52, %v2730_v28 }
 0x476   : > { %2529 = vbcast.lane.b32.xlu1 %v4861_v60, 320  ;;  %2466 = vbcast.lane.b32.xlu0 %v4852_v63, 328 }
 0x478   : > { %v4969_v14 = vpop.permute.xlu1 %2501  ;;  %v2439_v1 = vpop.permute.xlu0 %2438 }
 0x479   : > { %v2657_v36 = vmul.f32 %v3446_v9, %v2439_v1  ;;  %v2910_v1 = vsel %vm5584_vm10, %v2656_v25, 0.0  ;;  %v3453_v25 = vld [vmem:[%s3811_s24 + $0x290] sm:$0xff]  ;;  %v2874_v9 = vadd.f32 %v2873_v7, %v2872_v39  ;;  %vm5595_vm10 = vmmov %vm5579_vm1 }
 0x47a   : > { %2336 = vbcast.lane.b32.xlu1 %v4838_v12, 336  ;;  %2143 = vbcast.lane.b32.xlu0 %v4822_v45, 352  ;;  %v2911_v31 = vadd.f32 %v2910_v1, %v2909_v43  ;;  %v2641_v59 = vmul.f32 %v3453_v25, %v4961_v54  ;;  %v3456_v54 = vld [vmem:[%s3811_s24 + $0x298] sm:$0xff]  ;;  %v2835_v47 = vsel %vm5595_vm10, %v2623_v53, 0.0  ;;  %v3462_v43 = vld [vmem:[%s3811_s24 + $0x128] sm:$0xff]  ;;  %v3465_v25 = vld [vmem:[%s3811_s24 + $0x2a0] sm:$0xff] }
 0x47b   : > { %v2912_v11 = vsel %vm5588_vm14, %v2657_v36, 0.0  ;;  %v3457_v36 = vld [vmem:[%s3811_s24 + $0x198] sm:$0xff]  ;;  %vm5599_vm14 = vmmov %vm5579_vm1 }
 0x47c   : > { %v4983_v24 = vpop.permute.xlu1 %2308  ;;  %v4985_v58 = vpop.permute.xlu0 %2115  ;;  %v2913_v55 = vadd.f32 %v2912_v11, %v2911_v31  ;;  %v2610_v61 = vmul.f32 %v3457_v36, %v4951_v44  ;;  %v2625_v44 = vmul.f32 %v3460_v62, %v4945_v16  ;;  %v2695_v11 = vadd.f32 %v2694_v0, %v2693_v46  ;;  %v3469_v0 = vld [vmem:[%s3811_s24 + $0x1a8] sm:$0xff]  ;;  %vm5606_vm10 = vmmov %vm5579_vm1  ;;  %v3471_v62 = vld [vmem:[%s3811_s24 + $0x220] sm:$0xff] }
 0x47d   : > { %v2580_v49 = vmul.f32 %v3451_v18, %v4985_v58  ;;  %v3454_v58 = vld [vmem:[%s3811_s24 + $0x318] sm:$0xff] }
 0x47e   : > { %2076 = vbcast.lane.b32.xlu1 %v4813_v26, 352  ;;  %2403 = vbcast.lane.b32.xlu0 %v4845_v32, 336  ;;  %v2803_v18 = vsel %vm5599_vm14, %v2610_v61, 0.0  ;;  %vm5610_vm14 = vmmov %vm5579_vm1 }
 0x47f   : > { %v2733_v6 = vsel %vm5591_vm2, %v2580_v49, 0.0  ;;  %vm5602_vm2 = vmmov %vm5579_vm1 }
 0x480   : > { %v5003_v29 = vpop.permute.xlu1 %2048  ;;  %v5005_v23 = vpop.permute.xlu0 %2375  ;;  %v2734_v2 = vadd.f32 %v2733_v6, %v2732_v40  ;;  %v3468_v40 = vld [vmem:[%s3811_s24 + $0x218] sm:$0xff] }
 0x481   : > { %v2564_v22 = vmul.f32 %v3455_v5, %v5003_v29  ;;  %v2642_v37 = vmul.f32 %v3456_v54, %v5005_v23  ;;  %v2875_v29 = vsel %vm5594_vm9, %v2641_v59, 0.0  ;;  %v3458_v23 = vld [vmem:[%s3811_s24 + $0x120] sm:$0xff]  ;;  %vm5605_vm9 = vmmov %vm5579_vm1 }
 0x482   : > { %2273 = vbcast.lane.b32.xlu1 %v4831_v33, 344  ;;  %2210 = vbcast.lane.b32.xlu0 %v4824_v38, 352  ;;  %v2595_v1 = vmul.f32 %v3458_v23, %v4963_v4  ;;  %v3466_v59 = vld [vmem:[%s3811_s24 + $0x380] sm:$0xff] }
 0x483   : > { %v2696_v3 = vsel %vm5596_vm11, %v2564_v22, 0.0  ;;  %v2877_v4 = vsel %vm5597_vm12, %v2642_v37, 0.0  ;;  %v2671_v46 = vmul.f32 %v3466_v59, %v4957_v20  ;;  %v2804_v22 = vadd.f32 %v2803_v18, %v2802_v13  ;;  %vm5607_vm11 = vmmov %vm5579_vm1 }
 0x484   : > { %v5029_v56 = vpop.permute.xlu1 %2245  ;;  %v5031_v17 = vpop.permute.xlu0 %2182  ;;  %v2768_v31 = vsel %vm5600_vm15, %v2595_v1, 0.0  ;;  %v2838_v1 = vsel %vm5605_vm9, %v2625_v44, 0.0  ;;  %vm5608_vm12 = vmmov %vm5579_vm1  ;;  %v2837_v44 = vadd.f32 %v5025_v15, %v2835_v47 }
 0x485   : > { %v2611_v34 = vmul.f32 %v3461_v21, %v5029_v56  ;;  %v2596_v53 = vmul.f32 %v3462_v43, %v5031_v17  ;;  %v2876_v56 = vadd.f32 %v2875_v29, %v2874_v9  ;;  %v2769_v54 = vadd.f32 %v2768_v31, %v2767_v41  ;;  %v3470_v29 = vld [vmem:[%s3811_s24 + $0x130] sm:$0xff]  ;;  %vm5611_vm15 = vmmov %vm5579_vm1 }
 0x486   : > { %2533 = vbcast.lane.b32.xlu1 %v4861_v60, 328  ;;  %2470 = vbcast.lane.b32.xlu0 %v4852_v63, 336  ;;  %v2946_v13 = vsel %vm5606_vm10, %v2671_v46, 0.0  ;;  %v3475_v46 = vld [vmem:[%s3811_s24 + $0xb8] sm:$0xff]  ;;  %vm5616_vm9 = vmmov %vm5579_vm1 }
 0x487   : > { %v2805_v39 = vsel %vm5601_vm6, %v2611_v34, 0.0  ;;  %vm5612_vm6 = vmmov %vm5579_vm1 }
 0x488   : > { %v5051_v19 = vpop.permute.xlu1 %2505  ;;  %v2443_v27 = vpop.permute.xlu0 %2442  ;;  %v2806_v41 = vadd.f32 %v2805_v39, %v2804_v22  ;;  %vm5617_vm10 = vmmov %vm5579_vm1 }
 0x489   : > { %v2658_v50 = vmul.f32 %v3454_v58, %v2443_v27  ;;  %v3463_v27 = vld [vmem:[%s3811_s24 + $0x388] sm:$0xff]  ;;  %v2697_v58 = vadd.f32 %v2696_v3, %v2695_v11  ;;  %v3472_v11 = vld [vmem:[%s3811_s24 + $0x398] sm:$0xff] }
 0x48a   : > { %2340 = vbcast.lane.b32.xlu1 %v4838_v12, 344  ;;  %2147 = vbcast.lane.b32.xlu0 %v4822_v45, 360  ;;  %v2672_v10 = vmul.f32 %v3463_v27, %v4969_v14  ;;  %v3467_v14 = vld [vmem:[%s3811_s24 + $0x390] sm:$0xff] }
 0x48b   : > { %v2914_v35 = vsel %vm5592_vm7, %v2658_v50, 0.0  ;;  %v2878_v50 = vadd.f32 %v2877_v4, %v2876_v56  ;;  %v2673_v6 = vmul.f32 %v3467_v14, %v5051_v19  ;;  %vm5603_vm7 = vmmov %vm5579_vm1  ;;  %v3473_v56 = vld [vmem:[%s3811_s24 + $0x320] sm:$0xff] }
 0x48c   : > { %v5070_v8 = vadd.f32 %v2914_v35, %v2913_v55  ;;  %v5072_v51 = vpop.permute.xlu1 %2312  ;;  %v2120_v42 = vpop.permute.xlu0 %2119  ;;  %v2770_v55 = vsel %vm5579_vm1, %v2596_v53, 0.0  ;;  %v2947_v61 = vsel %vm5604_vm8, %v2672_v10, 0.0  ;;  %vm5615_vm8 = vmmov %vm5579_vm1 }
 0x48d   : > { %v2581_v30 = vmul.f32 %v3459_v57, %v2120_v42  ;;  %v2626_v42 = vmul.f32 %v3468_v40, %v4983_v24  ;;  %v2771_v57 = vadd.f32 %v2770_v55, %v2769_v54  ;;  %v2627_v24 = vmul.f32 %v3471_v62, %v5072_v51  ;;  %v3477_v54 = vld [vmem:[%s3811_s24 + $0x2a8] sm:$0xff]  ;;  %v3480_v62 = vld [vmem:[%s3811_s24 + $0x3a0] sm:$0xff] }
 0x48e   : > { %2080 = vbcast.lane.b32.xlu1 %v4813_v26, 360  ;;  %2407 = vbcast.lane.b32.xlu0 %v4845_v32, 344  ;;  %v2948_v34 = vadd.f32 %v2947_v61, %v2946_v13  ;;  %v2839_v51 = vadd.f32 %v2838_v1, %v2837_v44 }
 0x48f   : > { %v2735_v16 = vsel %vm5598_vm13, %v2581_v30, 0.0  ;;  %v2949_v30 = vsel %vm5607_vm11, %v2673_v6, 0.0  ;;  %vm5609_vm13 = vmmov %vm5579_vm1  ;;  %v2842_v15 = vsel %vm5611_vm15, %v2627_v24, 0.0 }
 0x490   : > { %v5092_v49 = vadd.f32 %v2735_v16, %v2734_v2  ;;  %v2053_v28 = vpop.permute.xlu1 %2052  ;;  %v2380_v7 = vpop.permute.xlu0 %2379  ;;  %v2840_v16 = vsel %vm5610_vm14, %v2626_v42, 0.0  ;;  %vm5618_vm11 = vmmov %vm5579_vm1 }
 0x491   : > { %v2565_v52 = vmul.f32 %v3464_v48, %v2053_v28  ;;  %v2643_v17 = vmul.f32 %v3465_v25, %v2380_v7  ;;  %v2950_v7 = vadd.f32 %v2949_v30, %v2948_v34  ;;  %v2841_v27 = vadd.f32 %v2840_v16, %v2839_v51  ;;  %v3482_v16 = vld [vmem:[%s3811_s24 + $0x230] sm:$0xff]  ;;  %vm5621_vm14 = vmmov %vm5579_vm1 }
 0x492   : > { %2277 = vbcast.lane.b32.xlu1 %v4831_v33, 352  ;;  %2214 = vbcast.lane.b32.xlu0 %v4824_v38, 360  ;;  %vm5622_vm15 = vmmov %vm5579_vm1 }
 0x493   : > { %v2698_v5 = vsel %vm5602_vm2, %v2565_v52, 0.0  ;;  %v2879_v20 = vsel %vm5603_vm7, %v2643_v17, 0.0  ;;  %v3474_v17 = vld [vmem:[%s3811_s24 + $0x228] sm:$0xff]  ;;  %vm5613_vm2 = vmmov %vm5579_vm1 }
 0x494   : > { %v5109_v37 = vadd.f32 %v2698_v5, %v2697_v58  ;;  %v5111_v35 = vadd.f32 %v2879_v20, %v2878_v50  ;;  %v2250_v9 = vpop.permute.xlu1 %2249  ;;  %v2187_v36 = vpop.permute.xlu0 %2186  ;;  %v2843_v50 = vadd.f32 %v2842_v15, %v2841_v27  ;;  %vm5614_vm7 = vmmov %vm5579_vm1  ;;  %v3476_v20 = vld [vmem:[%s3811_s24 + $0x38] sm:$0xff] }
 0x495   : > { %v2612_v19 = vmul.f32 %v3469_v0, %v2250_v9  ;;  %v2597_v23 = vmul.f32 %v3470_v29, %v2187_v36 }
 0x496   : > { %2537 = vbcast.lane.b32.xlu1 %v4861_v60, 336  ;;  %2474 = vbcast.lane.b32.xlu0 %v4852_v63, 344 }
 0x497   : > { %v2807_v2 = vsel %vm5608_vm12, %v2612_v19, 0.0  ;;  %v2772_v21 = vsel %vm5609_vm13, %v2597_v23, 0.0  ;;  %v3478_v19 = vld [vmem:[%s3811_s24 + $0x1b0] sm:$0xff]  ;;  %v3479_v23 = vld [vmem:[%s3811_s24 + $0x138] sm:$0xff]  ;;  %vm5619_vm12 = vmmov %vm5579_vm1 }
 0x498   : > { %v2808_v3 = vadd.f32 %v2807_v2, %v2806_v41  ;;  %v2773_v4 = vadd.f32 %v2772_v21, %v2771_v57  ;;  %v2510_v43 = vpop.permute.xlu1 %2509  ;;  %v2447_v53 = vpop.permute.xlu0 %2446  ;;  %v3481_v2 = vld [vmem:[%s3811_s24 + $0x328] sm:$0xff]  ;;  %vm5620_vm13 = vmmov %vm5579_vm1 }
 0x499   : > { %v2674_v18 = vmul.f32 %v3472_v11, %v2510_v43  ;;  %v2659_v28 = vmul.f32 %v3473_v56, %v2447_v53 }
 0x49a   : > { %2344 = vbcast.lane.b32.xlu1 %v4838_v12, 352  ;;  %2151 = vbcast.lane.b32.xlu0 %v4822_v45, 368 }
 0x49b   : > { %v2951_v47 = vsel %vm5612_vm6, %v2674_v18, 0.0  ;;  %v2916_v31 = vsel %vm5579_vm1, %v2659_v28, 0.0  ;;  %v3483_v18 = vld [vmem:[%s3811_s24 + $0xc0] sm:$0xff]  ;;  %vm5623_vm6 = vmmov %vm5579_vm1 }
 0x49c   : > { %v2952_v10 = vadd.f32 %v2951_v47, %v2950_v7  ;;  %v2917_v48 = vadd.f32 %v2916_v31, %v5070_v8  ;;  %v2317_v52 = vpop.permute.xlu1 %2316  ;;  %v2124_v25 = vpop.permute.xlu0 %2123  ;;  %v3484_v31 = vld [vmem:[%s3811_s24 + $0x40] sm:$0xff] }
 0x49d   : > { %v2628_v59 = vmul.f32 %v3474_v17, %v2317_v52  ;;  %v2582_v58 = vmul.f32 %v3475_v46, %v2124_v25 }
 0x49e   : > { %2084 = vbcast.lane.b32.xlu1 %v4813_v26, 368  ;;  %2411 = vbcast.lane.b32.xlu0 %v4845_v32, 352 }
 0x49f   : > { %v2844_v39 = vsel %vm5613_vm2, %v2628_v59, 0.0  ;;  %v2737_v55 = vsel %vm5614_vm7, %v2582_v58, 0.0  ;;  %v3486_v58 = vld [vmem:[%s3811_s24 + $0x1b8] sm:$0xff]  ;;  %vm5624_vm2 = vmmov %vm5579_vm1 }
 0x4a0   : > { %v2845_v14 = vadd.f32 %v2844_v39, %v2843_v50  ;;  %v2738_v8 = vadd.f32 %v2737_v55, %v5092_v49  ;;  %v2057_v6 = vpop.permute.xlu1 %2056  ;;  %v2384_v5 = vpop.permute.xlu0 %2383  ;;  %v3487_v39 = vld [vmem:[%s3811_s24 + $0x140] sm:$0xff]  ;;  %vm5625_vm7 = vmmov %vm5579_vm1 }
 0x4a1   : > { %v2566_v22 = vmul.f32 %v3476_v20, %v2057_v6  ;;  %v2644_v9 = vmul.f32 %v3477_v54, %v2384_v5 }
 0x4a2   : > { %2281 = vbcast.lane.b32.xlu1 %v4831_v33, 360  ;;  %2218 = vbcast.lane.b32.xlu0 %v4824_v38, 368 }
 0x4a3   : > { %v2700_v36 = vsel %vm5615_vm8, %v2566_v22, 0.0  ;;  %v2881_v61 = vsel %vm5616_vm9, %v2644_v9, 0.0  ;;  %v3488_v22 = vld [vmem:[%s3811_s24 + $0x3a8] sm:$0xff]  ;;  %v3489_v9 = vld [vmem:[%s3811_s24 + $0x330] sm:$0xff]  ;;  %vm5626_vm8 = vmmov %vm5579_vm1 }
 0x4a4   : > { %v2701_v40 = vadd.f32 %v2700_v36, %v5109_v37  ;;  %v2882_v49 = vadd.f32 %v2881_v61, %v5111_v35  ;;  %v2254_v42 = vpop.permute.xlu1 %2253  ;;  %v2191_v0 = vpop.permute.xlu0 %2190  ;;  %vm5627_vm9 = vmmov %vm5579_vm1 }
 0x4a5   : > { %v2613_v29 = vmul.f32 %v3478_v19, %v2254_v42  ;;  %v2598_v1 = vmul.f32 %v3479_v23, %v2191_v0 }
 0x4a6   : > { %2541 = vbcast.lane.b32.xlu1 %v4861_v60, 344  ;;  %2478 = vbcast.lane.b32.xlu0 %v4852_v63, 352 }
 0x4a7   : > { %v2809_v13 = vsel %vm5617_vm10, %v2613_v29, 0.0  ;;  %v2774_v41 = vsel %vm5618_vm11, %v2598_v1, 0.0  ;;  %v3490_v29 = vld [vmem:[%s3811_s24 + $0x238] sm:$0xff]  ;;  %v3491_v1 = vld [vmem:[%s3811_s24 + $0xc8] sm:$0xff]  ;;  %vm5628_vm10 = vmmov %vm5579_vm1 }
 0x4a8   : > { %v2810_v57 = vadd.f32 %v2809_v13, %v2808_v3  ;;  %v2775_v37 = vadd.f32 %v2774_v41, %v2773_v4  ;;  %v2514_v30 = vpop.permute.xlu1 %2513  ;;  %v2451_v35 = vpop.permute.xlu0 %2450  ;;  %vm5629_vm11 = vmmov %vm5579_vm1 }
 0x4a9   : > { %v2675_v24 = vmul.f32 %v3480_v62, %v2514_v30  ;;  %v2660_v21 = vmul.f32 %v3481_v2, %v2451_v35 }
 0x4aa   : > { %2348 = vbcast.lane.b32.xlu1 %v4838_v12, 360  ;;  %2155 = vbcast.lane.b32.xlu0 %v4822_v45, 376 }
 0x4ab   : > { %v2953_v44 = vsel %vm5619_vm12, %v2675_v24, 0.0  ;;  %v2918_v34 = vsel %vm5620_vm13, %v2660_v21, 0.0  ;;  %v3492_v24 = vld [vmem:[%s3811_s24 + $0x48] sm:$0xff]  ;;  %v3493_v21 = vld [vmem:[%s3811_s24 + $0x2b8] sm:$0xff]  ;;  %vm5630_vm12 = vmmov %vm5579_vm1 }
 0x4ac   : > { %v2954_v43 = vadd.f32 %v2953_v44, %v2952_v10  ;;  %v2919_v3 = vadd.f32 %v2918_v34, %v2917_v48  ;;  %v2321_v53 = vpop.permute.xlu1 %2320  ;;  %v2128_v4 = vpop.permute.xlu0 %2127  ;;  %v3485_v10 = vld [vmem:[%s3811_s24 + $0x2b0] sm:$0xff]  ;;  %vm5631_vm13 = vmmov %vm5579_vm1 }
 0x4ad   : > { %v2629_v11 = vmul.f32 %v3482_v16, %v2321_v53  ;;  %v2583_v56 = vmul.f32 %v3483_v18, %v2128_v4  ;;  %v3494_v4 = vld [vmem:[%s3811_s24 + $0x1c0] sm:$0xff] }
 0x4ae   : > { %2088 = vbcast.lane.b32.xlu1 %v4813_v26, 376  ;;  %2415 = vbcast.lane.b32.xlu0 %v4845_v32, 360 }
 0x4af   : > { %v2846_v45 = vsel %vm5621_vm14, %v2629_v11, 0.0  ;;  %v2739_v28 = vsel %vm5622_vm15, %v2583_v56, 0.0  ;;  %v3495_v11 = vld [vmem:[%s3811_s24 + $0x148] sm:$0xff]  ;;  %vm5632_vm14 = vmmov %vm5579_vm1 }
 0x4b0   : > { %v2847_v51 = vadd.f32 %v2846_v45, %v2845_v14  ;;  %v2740_v7 = vadd.f32 %v2739_v28, %v2738_v8  ;;  %v2061_v15 = vpop.permute.xlu1 %2060  ;;  %v2388_v47 = vpop.permute.xlu0 %2387  ;;  %vm5633_vm15 = vmmov %vm5579_vm1 }
 0x4b1   : > { %v2567_v27 = vmul.f32 %v3484_v31, %v2061_v15  ;;  %v2645_v48 = vmul.f32 %v3485_v10, %v2388_v47  ;;  %v3496_v15 = vld [vmem:[%s3811_s24 + $0x3b0] sm:$0xff]  ;;  %v3497_v31 = vld [vmem:[%s3811_s24 + $0x338] sm:$0xff] }
 0x4b2   : > { %2285 = vbcast.lane.b32.xlu1 %v4831_v33, 368  ;;  %2222 = vbcast.lane.b32.xlu0 %v4824_v38, 376 }
 0x4b3   : > { %v2702_v26 = vsel %vm5623_vm6, %v2567_v27, 0.0  ;;  %v2883_v52 = vsel %vm5579_vm1, %v2645_v48, 0.0  ;;  %vm5634_vm6 = vmmov %vm5579_vm1 }
 0x4b4   : > { %v2703_v25 = vadd.f32 %v2702_v26, %v2701_v40  ;;  %v2884_v17 = vadd.f32 %v2883_v52, %v2882_v49  ;;  %v2258_v59 = vpop.permute.xlu1 %2257  ;;  %v2195_v46 = vpop.permute.xlu0 %2194 }
 0x4b5   : > { %v2614_v50 = vmul.f32 %v3486_v58, %v2258_v59  ;;  %v2599_v55 = vmul.f32 %v3487_v39, %v2195_v46  ;;  %v3499_v46 = vld [vmem:[%s3811_s24 + $0xd0] sm:$0xff]  ;;  %v2984_v39 = vld [vmem:[%s5522_s5 + $0x8] sm:$0xff] }
 0x4b6   : > { %2545 = vbcast.lane.b32.xlu1 %v4861_v60, 352  ;;  %2482 = vbcast.lane.b32.xlu0 %v4852_v63, 360 }
 0x4b7   : > { %v2811_v38 = vsel %vm5624_vm2, %v2614_v50, 0.0  ;;  %v2776_v14 = vsel %vm5625_vm7, %v2599_v55, 0.0  ;;  %v2983_v50 = vld [vmem:[%s5522_s5] sm:$0xff]  ;;  %v2985_v55 = vld [vmem:[%s5522_s5 + $0x10] sm:$0xff]  ;;  %vm5635_vm2 = vmmov %vm5579_vm1 }
 0x4b8   : > { %v2812_v8 = vadd.f32 %v2811_v38, %v2810_v57  ;;  %v2777_v6 = vadd.f32 %v2776_v14, %v2775_v37  ;;  %v2518_v5 = vpop.permute.xlu1 %2517  ;;  %v2455_v20 = vpop.permute.xlu0 %2454  ;;  %vm5636_vm7 = vmmov %vm5579_vm1 }
 0x4b9   : > { %v2676_v54 = vmul.f32 %v3488_v22, %v2518_v5  ;;  %v2661_v36 = vmul.f32 %v3489_v9, %v2455_v20  ;;  %v3074_v5 = vld [vmem:[%s5523_s6] sm:$0xff]  ;;  %v3075_v20 = vld [vmem:[%s5523_s6 + $0x8] sm:$0xff] }
 0x4ba   : > { %2352 = vbcast.lane.b32.xlu1 %v4838_v12, 368  ;;  %2419 = vbcast.lane.b32.xlu0 %v4845_v32, 368 }
 0x4bb   : > { %v2955_v61 = vsel %vm5626_vm8, %v2676_v54, 0.0  ;;  %v2920_v40 = vsel %vm5627_vm9, %v2661_v36, 0.0  ;;  %vm3655_vm8 = vmmov 0   ;;  %vm5638_vm9 = vmmov %vm5579_vm1 }
 0x4bc   : > { %v2956_v49 = vadd.f32 %v2955_v61, %v2954_v43  ;;  %v2921_v42 = vadd.f32 %v2920_v40, %v2919_v3  ;;  %v2325_v0 = vpop.permute.xlu1 %2324  ;;  %v2132_v19 = vpop.permute.xlu0 %2131  ;;  %v3372_v61 = vpack.c.bf16 %v3075_v20, %v3074_v5  ;;  %v5637_v40 = vmov 0.0  }
 0x4bd   : > { %v2630_v23 = vmul.f32 %v3490_v29, %v2325_v0  ;;  %v2584_v13 = vmul.f32 %v3491_v1, %v2132_v19  ;;  %3347 = vmatprep.mubr.msk.f32.mxu1 %vm3655_vm8, %v5637_v40  ;;  %v3501_v0 = vld [vmem:[%s3811_s24 + $0x2c0] sm:$0xff]  ;;  %3354 = vmatprep.mubr.msk.f32.mxu0 %vm3655_vm8, %v5637_v40  ;;  %vm5647_vm8 = vmmov %vm5579_vm1 }
 0x4be   : > { %2289 = vbcast.lane.b32.xlu1 %v4831_v33, 376  ;;  %2356 = vbcast.lane.b32.xlu0 %v4838_v12, 376 }
 0x4bf   : > { %v2848_v41 = vsel %vm5628_vm10, %v2630_v23, 0.0  ;;  %v2741_v57 = vsel %vm5629_vm11, %v2584_v13, 0.0  ;;  %vm5639_vm10 = vmmov %vm5579_vm1  ;;  %v382_v13 = vld [vmem:[%s373_s2] sm:$0xff]  ;;  %vm3076_vm11 = vcmask 130048  }
 0x4c0   : > { %v2849_v37 = vadd.f32 %v2848_v41, %v2847_v51  ;;  %v2742_v30 = vadd.f32 %v2741_v57, %v2740_v7  ;;  %v2065_v35 = vpop.permute.xlu1 %2064  ;;  %v2392_v62 = vpop.permute.xlu0 %2391 }
 0x4c1   : > { %v2568_v2 = vmul.f32 %v3492_v24, %v2065_v35  ;;  %v2646_v44 = vmul.f32 %v3493_v21, %v2392_v62  ;;  %v3502_v35 = vld [vmem:[%s3811_s24 + $0x1c8] sm:$0xff]  ;;  %v3503_v24 = vld [vmem:[%s3811_s24 + $0x150] sm:$0xff] }
 0x4c2   : > { %2549 = vbcast.lane.b32.xlu1 %v4861_v60, 360  ;;  %2423 = vbcast.lane.b32.xlu0 %v4845_v32, 376 }
 0x4c3   : > { %v2704_v33 = vsel %vm5630_vm12, %v2568_v2, 0.0  ;;  %v2885_v12 = vsel %vm5631_vm13, %v2646_v44, 0.0  ;;  %vm5640_vm12 = vmmov %vm5579_vm1 }
 0x4c4   : > { %v5200_v34 = vadd.f32 %v2704_v33, %v2703_v25  ;;  %v5202_v43 = vadd.f32 %v2885_v12, %v2884_v17  ;;  %v2262_v3 = vpop.permute.xlu1 %2261  ;;  %v2199_v53 = vpop.permute.xlu0 %2198  ;;  %v3498_v17 = vld [vmem:[%s3811_s24 + $0x240] sm:$0xff]  ;;  %vm5641_vm13 = vmmov %vm5579_vm1 }
 0x4c5   : > { %v2615_v16 = vmul.f32 %v3494_v4, %v2262_v3  ;;  %v2600_v18 = vmul.f32 %v3495_v11, %v2199_v53  ;;  %v3504_v3 = vld [vmem:[%s3811_s24 + $0x3b8] sm:$0xff]  ;;  %v3505_v4 = vld [vmem:[%s3811_s24 + $0x340] sm:$0xff] }
 0x4c6   : > { %2486 = vbcast.lane.b32.xlu1 %v4852_v63, 368  ;;  %2490 = vbcast.lane.b32.xlu0 %v4852_v63, 376 }
 0x4c7   : > { %v2813_v32 = vsel %vm5632_vm14, %v2615_v16, 0.0  ;;  %v2778_v56 = vsel %vm5633_vm15, %v2600_v18, 0.0  ;;  %vm5642_vm14 = vmmov %vm5579_vm1 }
 0x4c8   : > { %v5210_v45 = vadd.f32 %v2813_v32, %v2812_v8  ;;  %v5212_v28 = vadd.f32 %v2778_v56, %v2777_v6  ;;  %v2522_v51 = vpop.permute.xlu1 %2521  ;;  %v2459_v7 = vpop.permute.xlu0 %2458  ;;  %v3654_v8 = vmov 0.0|0.0   ;;  %v2986_v6 = vld [vmem:[%s5522_s5 + $0x18] sm:$0xff]  ;;  %vm5643_vm15 = vmmov %vm5579_vm1 }
 0x4c9   : > { %v2677_v47 = vmul.f32 %v3496_v15, %v2522_v51  ;;  %v2662_v27 = vmul.f32 %v3497_v31, %v2459_v7  ;;  %3365 = vmatprep.subr.bf16.mxu1 %v3654_v8  ;;  %3371 = vmatprep.subr.bf16.mxu0 %v3654_v8  ;;  %v3369_v29 = vpack.c.bf16 %v2986_v6, %v2985_v55  ;;  %v3506_v7 = vld [vmem:[%s3811_s24 + $0x248] sm:$0xff]  ;;  %v3507_v15 = vld [vmem:[%s3811_s24 + $0xd8] sm:$0xff] }
 0x4ca   : > { %2553 = vbcast.lane.b32.xlu1 %v4861_v60, 368  ;;  %3373 = vmatpush3.bf16.msra.mxu0 %v3372_v61  ;;  %v3512_v61 = vld [vmem:[%s3811_s24 + $0x3c0] sm:$0xff] }
 0x4cb   : > { %v2957_v63 = vsel %vm5634_vm6, %v2677_v47, 0.0  ;;  %v2922_v10 = vsel %vm5579_vm1, %v2662_v27, 0.0  ;;  %vm5644_vm6 = vmmov %vm5579_vm1 }
 0x4cc   : > { %v5219_v48 = vadd.f32 %v2957_v63, %v2956_v49  ;;  %v5221_v26 = vadd.f32 %v2922_v10, %v2921_v42  ;;  %v2329_v52 = vpop.permute.xlu1 %2328  ;;  %v2136_v25 = vpop.permute.xlu0 %2135  ;;  %v3500_v49 = vld [vmem:[%s3811_s24 + $0x50] sm:$0xff] }
 0x4cd   : > { %v2631_v59 = vmul.f32 %v3498_v17, %v2329_v52  ;;  %v2585_v58 = vmul.f32 %v3499_v46, %v2136_v25  ;;  %3355 = vmatmul.mubr.msk.f32.vlgmr.msra.gmra.mrb[2].mxu0 %vm3076_vm11, %v382_v13  ;;  %vm5650_vm11 = vmmov %vm5579_vm1 }
 0x4ce   : > { %2557 = vbcast.lane.b32.xlu1 %v4861_v60, 376  ;;  %v3366_v60 = vpack.c.bf16 %v2984_v39, %v2983_v50 }
 0x4cf   : > { %v2850_v38 = vsel %vm5635_vm2, %v2631_v59, 0.0  ;;  %v2743_v14 = vsel %vm5636_vm7, %v2585_v58, 0.0  ;;  %v3509_v59 = vld [vmem:[%s3811_s24 + $0x2c8] sm:$0xff]  ;;  %vm5645_vm2 = vmmov %vm5579_vm1 }
 0x4d0   : > { %v2851_v22 = vadd.f32 %v2850_v38, %v2849_v37  ;;  %v2744_v54 = vadd.f32 %v2743_v14, %v2742_v30  ;;  %v2069_v9 = vpop.permute.xlu1 %2068  ;;  %v2396_v36 = vpop.permute.xlu0 %2395  ;;  %3367 = vmatpush3.bf16.msra.mxu1 %v3366_v60  ;;  %vm5646_vm7 = vmmov %vm5579_vm1  ;;  %v3510_v14 = vld [vmem:[%s3811_s24 + $0x1d0] sm:$0xff]  ;;  %v3511_v60 = vld [vmem:[%s3811_s24 + $0x158] sm:$0xff] }
 0x4d1   : > { %v2569_v42 = vmul.f32 %v3500_v49, %v2069_v9  ;;  %v2647_v19 = vmul.f32 %v3501_v0, %v2396_v36  ;;  %3368 = vmatprep.subr.bf16.mxu1 %v3654_v8  ;;  %v3513_v49 = vld [vmem:[%s3811_s24 + $0x348] sm:$0xff] }
 0x4d3   : > { %v2706_v23 = vsel %vm5638_vm9, %v2569_v42, 0.0  ;;  %v2887_v1 = vsel %vm5639_vm10, %v2647_v19, 0.0  ;;  %vm5648_vm9 = vmmov %vm5579_vm1 }
 0x4d4   : > { %v2707_v41 = vadd.f32 %v2706_v23, %v5200_v34  ;;  %v2888_v57 = vadd.f32 %v2887_v1, %v5202_v43  ;;  %v2266_v37 = vpop.permute.xlu1 %2265  ;;  %v2203_v30 = vpop.permute.xlu0 %2202  ;;  %3370 = vmatpush3.bf16.msra.mxu1 %v3369_v29  ;;  %vm5649_vm10 = vmmov %vm5579_vm1 }
 0x4d5   : > { %v2616_v62 = vmul.f32 %v3502_v35, %v2266_v37  ;;  %v2601_v2 = vmul.f32 %v3503_v24, %v2203_v30  ;;  %v3515_v37 = vld [vmem:[%s3811_s24 + $0xe0] sm:$0xff] }
 0x4d7   : > { %v2815_v21 = vsel %vm5640_vm12, %v2616_v62, 0.0  ;;  %v2780_v44 = vsel %vm5641_vm13, %v2601_v2, 0.0  ;;  %vm5651_vm12 = vmmov %vm5579_vm1 }
 0x4d8   : > { %v2816_v33 = vadd.f32 %v2815_v21, %v5210_v45  ;;  %v2781_v12 = vadd.f32 %v2780_v44, %v5212_v28  ;;  %v2526_v34 = vpop.permute.xlu1 %2525  ;;  %v2463_v43 = vpop.permute.xlu0 %2462  ;;  %vm5652_vm13 = vmmov %vm5579_vm1 }
 0x4d9   : > { %v2678_v53 = vmul.f32 %v3504_v3, %v2526_v34  ;;  %v2663_v16 = vmul.f32 %v3505_v4, %v2463_v43  ;;  %v3517_v4 = vld [vmem:[%s3811_s24 + $0x1d8] sm:$0xff] }
 0x4db   : > { %v2959_v11 = vsel %vm5642_vm14, %v2678_v53, 0.0  ;;  %v2924_v18 = vsel %vm5643_vm15, %v2663_v16, 0.0  ;;  %vm5653_vm14 = vmmov %vm5579_vm1 }
 0x4dc   : > { %v2960_v32 = vadd.f32 %v2959_v11, %v5219_v48  ;;  %v2925_v56 = vadd.f32 %v2924_v18, %v5221_v26  ;;  %v2333_v45 = vpop.permute.xlu1 %2332  ;;  %v2140_v51 = vpop.permute.xlu0 %2139  ;;  %v3508_v48 = vld [vmem:[%s3811_s24 + $0x58] sm:$0xff]  ;;  %vm5654_vm15 = vmmov %vm5579_vm1 }
 0x4dd   : > { %v2632_v28 = vmul.f32 %v3506_v7, %v2333_v45  ;;  %v2586_v47 = vmul.f32 %v3507_v15, %v2140_v51 }
 0x4df   : > { %v2852_v31 = vsel %vm5644_vm6, %v2632_v28, 0.0  ;;  %v2745_v27 = vsel %vm5579_vm1, %v2586_v47, 0.0  ;;  %vm5655_vm6 = vmmov %vm5579_vm1 }
 0x4e0   : > { %v2853_v63 = vadd.f32 %v2852_v31, %v2851_v22  ;;  %v2746_v10 = vadd.f32 %v2745_v27, %v2744_v54  ;;  %v2073_v52 = vpop.permute.xlu1 %2072  ;;  %v2400_v25 = vpop.permute.xlu0 %2399 }
 0x4e1   : > { %v2570_v17 = vmul.f32 %v3508_v48, %v2073_v52  ;;  %v2648_v26 = vmul.f32 %v3509_v59, %v2400_v25  ;;  %v3518_v59 = vld [vmem:[%s3811_s24 + $0xe8] sm:$0xff] }
 0x4e3   : > { %v2708_v46 = vsel %vm5645_vm2, %v2570_v17, 0.0  ;;  %v2889_v58 = vsel %vm5646_vm7, %v2648_v26, 0.0  ;;  %vm5656_vm2 = vmmov %vm5579_vm1 }
 0x4e4   : > { %v2709_v50 = vadd.f32 %v2708_v46, %v2707_v41  ;;  %v5279_v39 = vadd.f32 %v2889_v58, %v2888_v57  ;;  %v2270_v55 = vpop.permute.xlu1 %2269  ;;  %v2207_v38 = vpop.permute.xlu0 %2206  ;;  %v3514_v41 = vld [vmem:[%s3811_s24 + $0x250] sm:$0xff]  ;;  %vm5657_vm7 = vmmov %vm5579_vm1 }
 0x4e5   : > { %v2617_v8 = vmul.f32 %v3510_v14, %v2270_v55  ;;  %v2602_v6 = vmul.f32 %v3511_v60, %v2207_v38  ;;  %v3519_v46 = vld [vmem:[%s3811_s24 + $0xf0] sm:$0xff]  ;;  %v3520_v14 = vld [vmem:[%s3811_s24 + $0x68] sm:$0xff] }
 0x4e6   : > { %v3521_v60 = vld [vmem:[%s3811_s24 + $0x2d0] sm:$0xff] }
 0x4e7   : > { %v2817_v5 = vsel %vm5647_vm8, %v2617_v8, 0.0  ;;  %v2782_v20 = vsel %vm5648_vm9, %v2602_v6, 0.0  ;;  %vm5658_vm8 = vmmov %vm5579_vm1 }
 0x4e8   : > { %v2818_v22 = vadd.f32 %v2817_v5, %v2816_v33  ;;  %v5285_v54 = vadd.f32 %v2782_v20, %v2781_v12  ;;  %v2530_v9 = vpop.permute.xlu1 %2529  ;;  %v2467_v36 = vpop.permute.xlu0 %2466  ;;  %v3516_v33 = vld [vmem:[%s3811_s24 + $0x60] sm:$0xff]  ;;  %vm5659_vm9 = vmmov %vm5579_vm1 }
 0x4e9   : > { %v2679_v40 = vmul.f32 %v3512_v61, %v2530_v9  ;;  %v2664_v42 = vmul.f32 %v3513_v49, %v2467_v36  ;;  %v3522_v5 = vld [vmem:[%s3811_s24 + $0x160] sm:$0xff]  ;;  %v3523_v9 = vld [vmem:[%s3811_s24 + $0x70] sm:$0xff]  ;;  %v3524_v61 = vld [vmem:[%s3811_s24 + $0x3c8] sm:$0xff] }
 0x4eb   : > { %v2961_v0 = vsel %vm5649_vm10, %v2679_v40, 0.0  ;;  %v2926_v19 = vsel %vm5650_vm11, %v2664_v42, 0.0  ;;  %vm5660_vm10 = vmmov %vm5579_vm1 }
 0x4ec   : > { %v5291_v29 = vadd.f32 %v2961_v0, %v2960_v32  ;;  %v5293_v23 = vadd.f32 %v2926_v19, %v2925_v56  ;;  %v2337_v1 = vpop.permute.xlu1 %2336  ;;  %v2144_v13 = vpop.permute.xlu0 %2143  ;;  %vm5661_vm11 = vmmov %vm5579_vm1 }
 0x4ed   : > { %v2633_v57 = vmul.f32 %v3514_v41, %v2337_v1  ;;  %v2587_v30 = vmul.f32 %v3515_v37, %v2144_v13  ;;  %v3525_v1 = vld [vmem:[%s3811_s24 + $0x168] sm:$0xff]  ;;  %v3526_v41 = vld [vmem:[%s3811_s24 + $0xf8] sm:$0xff] }
 0x4ef   : > { %v2854_v35 = vsel %vm5651_vm12, %v2633_v57, 0.0  ;;  %v2747_v62 = vsel %vm5652_vm13, %v2587_v30, 0.0  ;;  %vm5662_vm12 = vmmov %vm5579_vm1 }
 0x4f0   : > { %v5299_v24 = vadd.f32 %v2854_v35, %v2853_v63  ;;  %v2748_v2 = vadd.f32 %v2747_v62, %v2746_v10  ;;  %v2077_v21 = vpop.permute.xlu1 %2076  ;;  %v2404_v44 = vpop.permute.xlu0 %2403  ;;  %v3527_v62 = vld [vmem:[%s3811_s24 + $0x350] sm:$0xff]  ;;  %vm5663_vm13 = vmmov %vm5579_vm1 }
 0x4f1   : > { %v2571_v12 = vmul.f32 %v3516_v33, %v2077_v21  ;;  %v2649_v6 = vmul.f32 %v3521_v60, %v2404_v44  ;;  %v3528_v44 = vld [vmem:[%s3811_s24 + $0x170] sm:$0xff] }
 0x4f3   : > { %v2710_v34 = vsel %vm5653_vm14, %v2571_v12, 0.0  ;;  %v2891_v37 = vsel %vm5657_vm7, %v2649_v6, 0.0  ;;  %vm5664_vm14 = vmmov %vm5579_vm1 }
 0x4f4   : > { %v2711_v43 = vadd.f32 %v2710_v34, %v2709_v50  ;;  %v2274_v3 = vpop.permute.xlu1 %2273  ;;  %v2211_v53 = vpop.permute.xlu0 %2210  ;;  %vm5668_vm7 = vmmov %vm5579_vm1 }
 0x4f5   : > { %v2618_v16 = vmul.f32 %v3517_v4, %v2274_v3  ;;  %v2603_v20 = vmul.f32 %v3522_v5, %v2211_v53  ;;  %v3529_v3 = vld [vmem:[%s3811_s24 + $0x258] sm:$0xff] }
 0x4f7   : > { %v2819_v11 = vsel %vm5654_vm15, %v2618_v16, 0.0  ;;  %v2784_v30 = vsel %vm5658_vm8, %v2603_v20, 0.0  ;;  %vm5665_vm15 = vmmov %vm5579_vm1  ;;  %v3533_v20 = vld [vmem:[%s3811_s24 + $0x178] sm:$0xff] }
 0x4f8   : > { %v5305_v18 = vadd.f32 %v2819_v11, %v2818_v22  ;;  %v2534_v32 = vpop.permute.xlu1 %2533  ;;  %v2471_v56 = vpop.permute.xlu0 %2470  ;;  %vm5669_vm8 = vmmov %vm5579_vm1 }
 0x4f9   : > { %v2680_v40 = vmul.f32 %v3524_v61, %v2534_v32  ;;  %v2665_v21 = vmul.f32 %v3527_v62, %v2471_v56 }
 0x4fb   : > { %v2963_v34 = vsel %vm5661_vm11, %v2680_v40, 0.0  ;;  %vm5672_vm11 = vmmov %vm5579_vm1 }
 0x4fc   : > { %v2341_v45 = vpop.permute.xlu1 %2340  ;;  %v2148_v51 = vpop.permute.xlu0 %2147 }
 0x4fd   : > { %v2588_v26 = vmul.f32 %v3518_v59, %v2148_v51  ;;  %v2634_v53 = vmul.f32 %v3529_v3, %v2341_v45  ;;  %v3530_v51 = vld [vmem:[%s3811_s24 + $0x2d8] sm:$0xff]  ;;  %v2928_v45 = vsel %vm5663_vm13, %v2665_v21, 0.0  ;;  %vm5674_vm13 = vmmov %vm5579_vm1 }
 0x4ff   : > { %v2749_v38 = vsel %vm5655_vm6, %v2588_v26, 0.0  ;;  %vm5666_vm6 = vmmov %vm5579_vm1 }
 0x500   : > { %v2081_v7 = vpop.permute.xlu1 %2080  ;;  %v2408_v28 = vpop.permute.xlu0 %2407  ;;  %v2750_v49 = vadd.f32 %v2749_v38, %v2748_v2  ;;  %v2856_v6 = vsel %vm5666_vm6, %v2634_v53, 0.0  ;;  %vm5677_vm6 = vmmov %vm5579_vm1 }
 0x501   : > { %v2572_v8 = vmul.f32 %v3520_v14, %v2081_v7  ;;  %v2650_v7 = vmul.f32 %v3530_v51, %v2408_v28 }
 0x503   : > { %v2712_v19 = vsel %vm5656_vm2, %v2572_v8, 0.0  ;;  %vm5667_vm2 = vmmov %vm5579_vm1 }
 0x504   : > { %v2278_v15 = vpop.permute.xlu1 %2277  ;;  %v2215_v47 = vpop.permute.xlu0 %2214  ;;  %v2713_v4 = vadd.f32 %v2712_v19, %v2711_v43  ;;  %v2892_v43 = vadd.f32 %v2891_v37, %v5279_v39  ;;  %v2893_v39 = vsel %vm5579_vm1, %v2650_v7, 0.0  ;;  %v3536_v19 = vld [vmem:[%s3811_s24 + $0x2e0] sm:$0xff]  ;;  %v3538_v37 = vld [vmem:[%s3811_s24 + $0x358] sm:$0xff] }
 0x505   : > { %v2604_v13 = vmul.f32 %v3525_v1, %v2215_v47  ;;  %v3531_v47 = vld [vmem:[%s3811_s24 + $0x1e0] sm:$0xff] }
 0x506   : > { %v2619_v56 = vmul.f32 %v3531_v47, %v2278_v15  ;;  %v5355_v15 = vadd.f32 %v2963_v34, %v5291_v29 }
 0x508   : > { %v5307_v31 = vpop.permute.xlu1 %2537  ;;  %v5309_v27 = vpop.permute.xlu0 %2474  ;;  %v2821_v5 = vsel %vm5667_vm2, %v2619_v56, 0.0 }
 0x50c   : > { %v5311_v63 = vpop.permute.xlu1 %2344  ;;  %v2152_v10 = vpop.permute.xlu0 %2151 }
 0x50d   : > { %v2589_v58 = vmul.f32 %v3519_v46, %v2152_v10  ;;  %v2786_v10 = vsel %vm5662_vm12, %v2604_v13, 0.0  ;;  %v3537_v13 = vld [vmem:[%s3811_s24 + $0x1e8] sm:$0xff]  ;;  %vm5673_vm12 = vmmov %vm5579_vm1 }
 0x50f   : > { %v2751_v22 = vsel %vm5579_vm1, %v2589_v58, 0.0 }
 0x510   : > { %v2085_v52 = vpop.permute.xlu1 %2084  ;;  %v5313_v25 = vpop.permute.xlu0 %2411  ;;  %v2752_v35 = vadd.f32 %v2751_v22, %v2750_v49  ;;  %v3535_v49 = vld [vmem:[%s3811_s24 + $0x3d0] sm:$0xff] }
 0x511   : > { %v2573_v36 = vmul.f32 %v3523_v9, %v2085_v52  ;;  %v3532_v52 = vld [vmem:[%s3811_s24 + $0x78] sm:$0xff]  ;;  %v3534_v9 = vld [vmem:[%s3811_s24 + $0x260] sm:$0xff]  ;;  %v2651_v1 = vmul.f32 %v3536_v19, %v5313_v25  ;;  %v2857_v25 = vadd.f32 %v2856_v6, %v5299_v24  ;;  %v3540_v24 = vld [vmem:[%s3811_s24 + $0x1f0] sm:$0xff] }
 0x512   : > { %v2635_v29 = vmul.f32 %v3534_v9, %v5311_v63  ;;  %v3545_v9 = vld [vmem:[%s3811_s24 + $0x360] sm:$0xff] }
 0x513   : > { %v2714_v2 = vsel %vm5659_vm9, %v2573_v36, 0.0  ;;  %vm5670_vm9 = vmmov %vm5579_vm1 }
 0x514   : > { %v5315_v48 = vpop.permute.xlu1 %2281  ;;  %v2219_v17 = vpop.permute.xlu0 %2218  ;;  %v2715_v26 = vadd.f32 %v2714_v2, %v2713_v4 }
 0x515   : > { %v2605_v33 = vmul.f32 %v3528_v44, %v2219_v17  ;;  %v2785_v17 = vadd.f32 %v2784_v30, %v5285_v54  ;;  %v2666_v30 = vmul.f32 %v3538_v37, %v5309_v27  ;;  %v2894_v44 = vadd.f32 %v2893_v39, %v2892_v43 }
 0x516   : > { %v2858_v27 = vsel %vm5669_vm8, %v2635_v29, 0.0  ;;  %vm5680_vm8 = vmmov %vm5667_vm2 }
 0x517   : > { %v2788_v58 = vsel %vm5664_vm14, %v2605_v33, 0.0  ;;  %v2787_v38 = vadd.f32 %v2786_v10, %v2785_v17  ;;  %v3539_v33 = vld [vmem:[%s3811_s24 + $0x268] sm:$0xff]  ;;  %v2859_v56 = vadd.f32 %v2858_v27, %v2857_v25  ;;  %v3542_v17 = vld [vmem:[%s3811_s24 + $0x270] sm:$0xff]  ;;  %vm5675_vm14 = vmmov %vm5579_vm1 }
 0x518   : > { %v5319_v50 = vpop.permute.xlu1 %2541  ;;  %v5321_v55 = vpop.permute.xlu0 %2478  ;;  %v3549_v27 = vld [vmem:[%s3811_s24 + $0x3e0] sm:$0xff] }
 0x519   : > { %v2789_v36 = vadd.f32 %v2788_v58, %v2787_v38  ;;  %v2667_v29 = vmul.f32 %v3545_v9, %v5321_v55 }
 0x51c   : > { %v5330_v42 = vpop.permute.xlu1 %2348  ;;  %v2156_v0 = vpop.permute.xlu0 %2155 }
 0x51d   : > { %v2590_v57 = vmul.f32 %v3526_v41, %v2156_v0  ;;  %v2681_v0 = vmul.f32 %v3535_v49, %v5307_v31  ;;  %v2620_v41 = vmul.f32 %v3537_v13, %v5315_v48  ;;  %v5375_v31 = vadd.f32 %v2928_v45, %v5293_v23 }
 0x51e   : > { %v2636_v48 = vmul.f32 %v3539_v33, %v5330_v42 }
 0x51f   : > { %v2753_v12 = vsel %vm5660_vm10, %v2590_v57, 0.0  ;;  %v5383_v53 = vsel %vm5670_vm9, %v2681_v0, 0.0  ;;  %vm5671_vm10 = vmmov %vm5579_vm1  ;;  %v2823_v4 = vsel %vm5672_vm11, %v2620_v41, 0.0  ;;  %v3548_v41 = vld [vmem:[%s3811_s24 + $0x368] sm:$0xff] }
 0x520   : > { %v2754_v16 = vadd.f32 %v2753_v12, %v2752_v35  ;;  %v2089_v11 = vpop.permute.xlu1 %2088  ;;  %v5343_v32 = vpop.permute.xlu0 %2415  ;;  %v2822_v12 = vadd.f32 %v2821_v5, %v5305_v18  ;;  %v2895_v23 = vsel %vm5671_vm10, %v2651_v1, 0.0  ;;  %v2860_v10 = vsel %vm5674_vm13, %v2636_v48, 0.0  ;;  %vm5681_vm9 = vmmov %vm5667_vm2 }
 0x521   : > { %v2574_v59 = vmul.f32 %v3532_v52, %v2089_v11  ;;  %v2930_v11 = vsel %vm5673_vm12, %v2666_v30, 0.0  ;;  %v3541_v52 = vld [vmem:[%s3811_s24 + $0x2e8] sm:$0xff]  ;;  %v2861_v6 = vadd.f32 %v2860_v10, %v2859_v56  ;;  %vm5682_vm10 = vcmask 1042434   ;;  %vm5683_vm11 = vmmov %vm5667_vm2 }
 0x522   : > { %v2755_v46 = vrot.slane %v2754_v16, 4  ;;  %v2824_v43 = vadd.f32 %v2823_v4, %v2822_v12  ;;  %v2931_v48 = vadd.f32 %v2930_v11, %v5375_v31  ;;  %v2932_v12 = vsel %vm5681_vm9, %v2667_v29, 0.0  ;;  %vm5684_vm12 = vmmov %vm5667_vm2 }
 0x523   : > { %v2716_v28 = vsel %vm5665_vm15, %v2574_v59, 0.0  ;;  %v2652_v59 = vmul.f32 %v3541_v52, %v5343_v32  ;;  %vm5676_vm15 = vmmov %vm5579_vm1  ;;  %vm5678_vm1 = vcmask 1041409  }
 0x524   : > { %v2756_v14 = vadd.f32 %v2755_v46, %v2754_v16  ;;  %v2717_v54 = vadd.f32 %v2716_v28, %v2715_v26  ;;  %v2286_v8 = vpop.permute.xlu1 %2285  ;;  %v2223_v60 = vpop.permute.xlu0 %2222  ;;  %v2896_v46 = vadd.f32 %v2895_v23, %v2894_v44  ;;  %v3543_v28 = vld [vmem:[%s3811_s24 + $0x3d8] sm:$0xff]  ;;  %vm5685_vm13 = vmmov %vm5667_vm2 }
 0x525   : > { %v2606_v22 = vmul.f32 %v3533_v20, %v2223_v60  ;;  %v2621_v16 = vmul.f32 %v3540_v24, %v2286_v8  ;;  %v2682_v38 = vmul.f32 %v3543_v28, %v5319_v50  ;;  %v3544_v8 = vld [vmem:[%s3811_s24 + $0x2f0] sm:$0xff]  ;;  %v3546_v50 = vld [vmem:[%s3811_s24 + $0x1f8] sm:$0xff] }
 0x526   : > { %v2757_v61 = vrot.slane %v2756_v14, 2  ;;  %v2718_v40 = vrot.slane %v2717_v54, 4 }
 0x527   : > { %v2790_v57 = vsel %vm5668_vm7, %v2606_v22, 0.0  ;;  %vm5679_vm7 = vmmov %vm5667_vm2 }
 0x528   : > { %v2758_v35 = vadd.f32 %v2757_v61, %v2756_v14  ;;  %v2719_v63 = vadd.f32 %v2718_v40, %v2717_v54  ;;  %v2791_v62 = vadd.f32 %v2790_v57, %v2789_v36  ;;  %v5372_v21 = vpop.permute.xlu1 %2545  ;;  %v2483_v2 = vpop.permute.xlu0 %2482  ;;  %v2825_v14 = vsel %vm5675_vm14, %v2621_v16, 0.0  ;;  %v3547_v40 = vld [vmem:[%s3811_s24 + $0x278] sm:$0xff]  ;;  %vm5686_vm14 = vmmov %vm5667_vm2 }
 0x529   : > { %v2897_v36 = vsel %vm5677_vm6, %v2652_v59, 0.0  ;;  %v2826_v19 = vadd.f32 %v2825_v14, %v2824_v43  ;;  %v2668_v57 = vmul.f32 %v3548_v41, %v2483_v2  ;;  %v2683_v2 = vmul.f32 %v3549_v27, %v5372_v21  ;;  %v3553_v43 = vld [vmem:[%s3811_s24 + $0x378] sm:$0xff]  ;;  %vm5688_vm6 = vmmov %vm5667_vm2 }
 0x52a   : > { %v2720_v34 = vrot.slane %v2719_v63, 2  ;;  %v2792_v3 = vrot.slane %v2791_v62, 4  ;;  %v2759_v42 = vrot.slane %v2758_v35, 1  ;;  %v2966_v59 = vadd.f32 %v5383_v53, %v5355_v15 }
 0x52c   : > { %v2721_v18 = vadd.f32 %v2720_v34, %v2719_v63  ;;  %v2793_v51 = vadd.f32 %v2792_v3, %v2791_v62  ;;  %v2353_v7 = vpop.permute.xlu1 %2352  ;;  %v2420_v47 = vpop.permute.xlu0 %2419  ;;  %v2760_v32 = vadd.f32 %v2759_v42, %v2758_v35  ;;  %v2898_v35 = vadd.f32 %v2897_v36, %v2896_v46  ;;  %v3550_v34 = vld [vmem:[%s3811_s24 + $0x2f8] sm:$0xff] }
 0x52d   : > { %v2637_v26 = vmul.f32 %v3542_v17, %v2353_v7  ;;  %v2653_v60 = vmul.f32 %v3544_v8, %v2420_v47  ;;  %v2967_v42 = vsel %vm5683_vm11, %v2682_v38, 0.0  ;;  %v2933_v7 = vadd.f32 %v2932_v12, %v2931_v48 }
 0x52e   : > { %v2722_v45 = vrot.slane %v2721_v18, 1  ;;  %v2794_v58 = vrot.slane %v2793_v51, 2  ;;  %v2969_v17 = vsel %vm5686_vm14, %v2683_v2, 0.0 }
 0x52f   : > { %v2862_v54 = vsel %vm5676_vm15, %v2637_v26, 0.0  ;;  %v2899_v37 = vsel %vm5667_vm2, %v2653_v60, 0.0  ;;  %v3552_v26 = vld [vmem:[%s3811_s24 + $0x370] sm:$0xff]  ;;  %vm5687_vm15 = vmmov %vm5667_vm2 }
 0x530   : > { %v2723_v39 = vadd.f32 %v2722_v45, %v2721_v18  ;;  %v2795_v5 = vadd.f32 %v2794_v58, %v2793_v51  ;;  %v2290_v20 = vpop.permute.xlu1 %2289  ;;  %v2357_v22 = vpop.permute.xlu0 %2356  ;;  %v2863_v13 = vadd.f32 %v2862_v54, %v2861_v6  ;;  %v2900_v4 = vadd.f32 %v2899_v37, %v2898_v35  ;;  %v3551_v51 = vld [vmem:[%s3811_s24 + $0x3e8] sm:$0xff] }
 0x531   : > { %v2622_v61 = vmul.f32 %v3546_v50, %v2290_v20  ;;  %v2638_v49 = vmul.f32 %v3547_v40, %v2357_v22  ;;  %v2934_v18 = vsel %vm5684_vm12, %v2668_v57, 0.0  ;;  %v2968_v54 = vadd.f32 %v2967_v42, %v2966_v59  ;;  %v3554_v22 = vld [vmem:[%s3811_s24 + $0x3f0] sm:$0xff]  ;;  %v3555_v57 = vld [vmem:[%s3811_s24 + $0x3f8] sm:$0xff]  ;;  %s3193_s24 = sshll.u32 %s4817_s29, 4  ;;  %s3194_s24 = int_to_ptr.vmem [resolvable:$true] %s3193_s24 }
 0x532   : > { %v2995_v0 = vsel %vm5678_vm1, %v2760_v32, %v2723_v39  ;;  %v2796_v1 = vrot.slane %v2795_v5, 1  ;;  %v2935_v58 = vadd.f32 %v2934_v18, %v2933_v7  ;;  %vm5689_vm1 = vmmov %vm5667_vm2  ;;  %s3556_s14 = scalar_lea.vmem %s3194_s24, 128  ;;  %p3563_p1 = scmp.lt.s32.totalorder %s3194_s24, %s3561_s17 }
 0x533   : > { %v2827_v30 = vsel %vm5679_vm7, %v2622_v61, 0.0  ;;  %v2864_v55 = vsel %vm5680_vm8, %v2638_v49, 0.0  ;;  %vm5690_vm2 = vmmov %vm5689_vm1  ;;  %vm5691_vm7 = vcmask 1043459   ;;  %p3557_p12 = scmp.ne.s32.totalorder %s3194_s24, %s3556_s14  ;;  %p3564_p2 = scmp.lt.s32.totalorder %s3562_s21, %s3556_s14 }
 0x534   : > { %v2797_v63 = vadd.f32 %v2796_v1, %v2795_v5  ;;  %v2828_v62 = vadd.f32 %v2827_v30, %v2826_v19  ;;  %v2865_v25 = vadd.f32 %v2864_v55, %v2863_v13  ;;  %v2550_v44 = vpop.permute.xlu1 %2549  ;;  %v2424_v33 = vpop.permute.xlu0 %2423  ;;  %v2970_v5 = vadd.f32 %v2969_v17, %v2968_v54  ;;  %vm5692_vm8 = vmmov %vm5689_vm1 }
 0x535   : > { %v2654_v3 = vmul.f32 %v3550_v34, %v2424_v33  ;;  %v2684_v31 = vmul.f32 %v3551_v51, %v2550_v44  ;;  %p3558_p13 = pnand %p3557_p12, %p3746_p5  ;;  %p3565_p3 = por %p3564_p2, %p3563_p1 }
 0x536   : > { %v2996_v23 = vsel %vm5682_vm10, %v2797_v63, %v2995_v0  ;;  %v2829_v24 = vrot.slane %v2828_v62, 4  ;;  %v2866_v16 = vrot.slane %v2865_v25, 4 }
 0x537   : > { %v2901_v11 = vsel %vm5685_vm13, %v2654_v3, 0.0  ;;  %v2971_v8 = vsel %vm5687_vm15, %v2684_v31, 0.0  ;;  %p3559_p0 = pneg %p3558_p13 }
 0x538   : > { %v2830_v47 = vadd.f32 %v2829_v24, %v2828_v62  ;;  %v2867_v21 = vadd.f32 %v2866_v16, %v2865_v25  ;;  %v2902_v56 = vadd.f32 %v2901_v11, %v2900_v4  ;;  %v2487_v10 = vpop.permute.xlu1 %2486  ;;  %v2491_v52 = vpop.permute.xlu0 %2490  ;;  %v2972_v40 = vadd.f32 %v2971_v8, %v2970_v5 }
 0x539   : > { %v2669_v46 = vmul.f32 %v3552_v26, %v2487_v10  ;;  %v2670_v45 = vmul.f32 %v3553_v43, %v2491_v52  ;;  %p3566_p4 = pnand %p3565_p3, %p3559_p0 }
 0x53a   : > { %v2831_v28 = vrot.slane %v2830_v47, 2  ;;  %v2868_v38 = vrot.slane %v2867_v21, 2  ;;  %v2903_v14 = vrot.slane %v2902_v56, 4 }
 0x53b   : > { %v2936_v60 = vsel %vm5688_vm6, %v2669_v46, 0.0  ;;  %v2938_v20 = vsel %vm5689_vm1, %v2670_v45, 0.0 }
 0x53c   : > { %v2832_v6 = vadd.f32 %v2831_v28, %v2830_v47  ;;  %v2869_v32 = vadd.f32 %v2868_v38, %v2867_v21  ;;  %v2904_v39 = vadd.f32 %v2903_v14, %v2902_v56  ;;  %v2937_v15 = vadd.f32 %v2936_v60, %v2935_v58  ;;  %v2554_v53 = vpop.permute.xlu1 %2553 }
 0x53d   : > { %v2685_v9 = vmul.f32 %v3554_v22, %v2554_v53 }
 0x53e   : > { %v2833_v29 = vrot.slane %v2832_v6, 1  ;;  %v2870_v36 = vrot.slane %v2869_v32, 1  ;;  %v2905_v50 = vrot.slane %v2904_v39, 2  ;;  %v2939_v61 = vadd.f32 %v2938_v20, %v2937_v15 }
 0x53f   : > { %v2973_v49 = vsel %vm5690_vm2, %v2685_v9, 0.0 }
 0x540   : > { %v2834_v0 = vadd.f32 %v2833_v29, %v2832_v6  ;;  %v2871_v19 = vadd.f32 %v2870_v36, %v2869_v32  ;;  %v2906_v1 = vadd.f32 %v2905_v50, %v2904_v39  ;;  %v2940_v13 = vrot.slane %v2939_v61, 4  ;;  %v2558_v41 = vpop.permute.xlu1 %2557 }
 0x541   : > { %v2686_v37 = vmul.f32 %v3555_v57, %v2558_v41  ;;  %v2974_v35 = vadd.f32 %v2973_v49, %v2972_v40 }
 0x542   : > { %v2907_v30 = vrot.slane %v2906_v1, 1  ;;  %v2941_v55 = vadd.f32 %v2940_v13, %v2939_v61  ;;  %v2997_v63 = vsel %vm5691_vm7, %v2834_v0, %v2996_v23 }
 0x543   : > { %v2975_v62 = vsel %vm5692_vm8, %v2686_v37, 0.0  ;;  %v2998_v25 = vsel %vm2003_vm0, %v2871_v19, %v2997_v63  ;;  %vm5693_vm0 = vmmov %vm5689_vm1 }
 0x544   : > { %v2908_v44 = vadd.f32 %v2907_v30, %v2906_v1  ;;  %v2942_v33 = vrot.slane %v2941_v55, 2  ;;  %v2976_v48 = vadd.f32 %v2975_v62, %v2974_v35 }
 0x546   : > { %v2943_v12 = vadd.f32 %v2942_v33, %v2941_v55  ;;  %v2977_v27 = vrot.slane %v2976_v48, 4  ;;  %v2999_v2 = vsel %vm2005_vm3, %v2908_v44, %v2998_v25 }
 0x548   : > { %v2944_v34 = vrot.slane %v2943_v12, 1  ;;  %v2978_v3 = vadd.f32 %v2977_v27, %v2976_v48 }
 0x54a   : > { %v2945_v4 = vadd.f32 %v2944_v34, %v2943_v12  ;;  %v2979_v24 = vrot.slane %v2978_v3, 2 }
 0x54c   : > { %v2980_v23 = vadd.f32 %v2979_v24, %v2978_v3  ;;  %v3000_v16 = vsel %vm2007_vm4, %v2945_v4, %v2999_v2 }
 0x54e   : > { %v2981_v42 = vrot.slane %v2980_v23, 1 }
 0x550   : > { %v2982_v18 = vadd.f32 %v2981_v42, %v2980_v23 }
 0x552   : > { %v3001_v51 = vsel %vm2009_vm5, %v2982_v18, %v3000_v16 }
 0x553   : > { %3348 = vmatmul.mubr.msk.f32.vlgmr.msra.gmra.mrb[0].mxu1 %vm5693_vm0, %v3001_v51 }
 0x5a0   : > { %v3146_v31 = vpop.f32.mrb[2].mxu0 }
 0x5a1   : > { %v3356_v11 = vpop.f32.mrb[3].mxu0 }
 0x5a2   : > { %3569 = shalt.err (!%p3566_p4)
}
 0x5a3   : > { %s3570_s29 = scalar_lea.hbm %s5442_s26, 128  ;;  %s3574_s2 = scalar_lea.hbm %s5526_s9, 256 }
 0x5a4   : > { %p3571_p7 = scmp.ne.s32.totalorder %s5442_s26, %s3570_s29  ;;  %p3575_p10 = scmp.lt.u32.totalorder %s5442_s26, %s5526_s9 }
 0x5a5   : > { %p3576_p11 = scmp.lt.u32.totalorder %s3574_s2, %s3570_s29  ;;  %p3578_p13 = scmp.lt.u32.totalorder %s3570_s29, %s5442_s26 }
 0x5a6   : > { %p3572_p8 = pnand %p3571_p7, %p3746_p5 }
 0x5a7   : > { %p3577_p12 = por %p3576_p11, %p3575_p10 }
 0x5a8   : > { %p3573_p9 = pneg %p3572_p8 }
 0x5a9   : > { %p3579_p0 = por %p3578_p13, %p3577_p12 }
 0x5ab   : > { %p3580_p1 = pnand %p3579_p0, %p3573_p9 }
 0x5ad   : > { %3583 = shalt.err (!%p3580_p1)
}
 0x5ae   : > { %3375 = dma.vmem_to_hbm [thread:$0]  (%p3746_p5), %s3194_s24, 128, %s5442_s26, %s3167_s28   ;;  %v5694_v47 = vld [vmem:[#allocation9_spill] sm:$0xff]  ;;  %v3323_v10 = vld [vmem:[%s5524_s7] ss:$0 sm:$0xff] }
 0x5af   : > { %s5695_s21 = sshll.u32 %s4807_s27, 3  ;;  %s5474_s26 = scalar_lea.hbm %s5525_s8, %s3326_s0 }
 0x5b0   : > { %s358_s29 = scalar_lea.vmem [#allocation2], %s5695_s21  ;;  %s3162_s24 = scalar_lea.sflag [#allocation3], %s4807_s27 }
 0x5b1   : > { %s3180_s22 = sshll.u32 %s358_s29, 4  ;;  %s3657_s25 = smov [#allocation2]   ;;  %s5476_s22 = int_to_ptr.vmem [resolvable:$true] %s3180_s22 }
 0x5b2   : > { %s3584_s28 = scalar_lea.vmem %s5476_s22, 128  ;;  %s3588_s13 = sshll.u32 %s3657_s25, 4  ;;  %s3589_s13 = int_to_ptr.vmem [resolvable:$false] %s3588_s13 }
 0x5b3   : > { %p3585_p2 = scmp.ne.s32.totalorder %s5476_s22, %s3584_s28  ;;  %s3590_s16 = scalar_lea.vmem %s3589_s13, 256 }
 0x5b4   : > { %p3591_p7 = scmp.lt.s32.totalorder %s5476_s22, %s3589_s13  ;;  %p3592_p8 = scmp.lt.s32.totalorder %s3590_s16, %s3584_s28 }
 0x5b5   : > { %p3586_p3 = pnand %p3585_p2, %p3746_p5 }
 0x5b6   : > { %p3593_p9 = por %p3592_p8, %p3591_p7 }
 0x5b7   : > { %p3587_p4 = pneg %p3586_p3 }
 0x5b9   : > { %p3594_p10 = pnand %p3593_p9, %p3587_p4 }
 0x626   : > { %v3070_v7 = vpop.f32.mrb[0].mxu1 }
 0x627   : > { %v3071_v21 = vadd.f32 %v3070_v7, %v5694_v47  ;;  %v3349_v56 = vpop.f32.mrb[1].mxu1 }
 0x629   : > { %v3150_v52 = vadd.f32 %v3146_v31, %v3071_v21 }
 0x62b   : > { %v3158_v59 = vadd.f32 %v3323_v10, %v3150_v52 }
 0x62d   : > { %3426 = vtanh.f32 %v3158_v59 }
 0x637   : > { %v3427_v17 = vpop.eup %3426 }
 0x638   : > { %3160 = vst [vmem:[%s358_s29] sm:$0xff] %v3427_v17 }
 0x639   : > { %3597 = shalt.err (!%p3594_p10)
}
 0x63a   : > { %s3598_s27 = scalar_lea.hbm %s5474_s26, 128  ;;  %s3602_s17 = scalar_lea.hbm %s5525_s8, 256 }
 0x63b   : > { %p3599_p11 = scmp.ne.s32.totalorder %s5474_s26, %s3598_s27  ;;  %p3603_p0 = scmp.lt.u32.totalorder %s5474_s26, %s5525_s8 }
 0x63c   : > { %p3604_p1 = scmp.lt.u32.totalorder %s3602_s17, %s3598_s27  ;;  %p3606_p3 = scmp.lt.u32.totalorder %s3598_s27, %s5474_s26 }
 0x63d   : > { %p3600_p12 = pnand %p3599_p11, %p3746_p5 }
 0x63e   : > { %p3605_p2 = por %p3604_p1, %p3603_p0 }
 0x63f   : > { %p3601_p13 = pneg %p3600_p12 }
 0x640   : > { %p3607_p4 = por %p3606_p3, %p3605_p2 }
 0x642   : > { %p3608_p7 = pnand %p3607_p4, %p3601_p13 }
 0x644   : > { %3611 = shalt.err (!%p3608_p7)
}
 0x645   : > { %3374 = dma.vmem_to_hbm [thread:$0]  (%p3746_p5), %s5476_s22, 128, %s5474_s26, %s3162_s24  }
 0x646 PF: > { %p3385_p8 = scmp.ge.s32.totalorder %s3650_s12, 2  ;;  %s3205_s23 = sand.u32 1, %s3638_s30  }
 0x647   : > { %s3206_s2 = scalar_lea.sflag [#allocation3], %s3205_s23 }
 0x648   : > { %p3379_p9 = pnand %p3385_p8, %p3750_p6 }
 0x64a   : > { %3629 = dma.done.wait (!%p3379_p9), %s3206_s2, 128  }
 0x64b   : > { %3631 = vsyncadd (!%p3379_p9), %s3206_s2, 4294967168  ;;  %s3215_s28 = scalar_lea.sflag [#allocation5], %s3205_s23 }
 0x64c   : > { %3633 = dma.done.wait (!%p3379_p9), %s3215_s28, 128  }
 0x64d   : > { %3635 = vsyncadd (!%p3379_p9), %s3215_s28, 4294967168  ;;  %p23_p5 = scmp.ge.s32.totalorder %s3733_s15, 4   ;;  %s5696_s30 = smov %s3642_s10 }
 0x64e   : > { %s5697_s10 = smov %s3646_s11  ;;  %s5698_s11 = smov %s3744_s18 }
 0x64f   : > { %s5699_s12 = smov %s3733_s15  ;;  %25 = sbr.rel (!%p23_p5) target bundleno = 8 (0x8), region = 110 }
 0x656   :  { %3220 = vsyncpa [#allocation3], 1 }
 0x657   :  { %3222 = vsyncpa [#allocation3 + $0x1], 1 }
 0x658   :  { %3223 = vsyncpa [#allocation5], 1 }
 0x659   :  { %3225 = vsyncpa [#allocation5 + $0x1], 1 }

</bundles_post_ra>
